<compile_context>
chip_gen: v6e
topology: v6e:2x2x1
jax: 0.10.0
libtpu: 0.0.40
codegen_flags: <defaults>
</compile_context>

<pallas_src>
import math
import functools

import jax
import jax.numpy as jnp
from jax.experimental import pallas as pl
from jax.experimental.pallas import tpu as pltpu


_SQRT_2_OVER_PI = math.sqrt(2.0 / math.pi)
_LN_EPS = 1e-5  # torch.nn.LayerNorm default


# ----------------------------------------------------------------------------- chip config

def _detect_vmem_bytes():
    try:
        return int(pltpu.get_tpu_info().vmem_capacity_bytes)
    except Exception:
        return 64 * 1024 * 1024   # conservative (v7x per-TC)


_VMEM_PHYS = _detect_vmem_bytes()
_VMEM_LIMIT = min(96 * 1024 * 1024, max(32 * 1024 * 1024, (_VMEM_PHYS * 3) // 4))
_ROW_CAP = 512 if _VMEM_PHYS >= 128 * 1024 * 1024 else 256

_SINGLE_BUFFER = None


def _probe_single_buffer():
    """Check pipeline_mode=pl.Buffered(1) end-to-end (construct + lower + run)."""
    def _k(x_ref, o_ref):
        o_ref[...] = x_ref[...] + 1.0
    try:
        spec = pl.BlockSpec((8, 128), lambda i: (0, 0), pipeline_mode=pl.Buffered(1))
        out = pl.pallas_call(
            _k,
            out_shape=jax.ShapeDtypeStruct((8, 128), jnp.float32),
            grid=(1,),
            in_specs=[spec],
            out_specs=pl.BlockSpec((8, 128), lambda i: (0, 0)),
        )(jnp.zeros((8, 128), jnp.float32))
        jax.block_until_ready(out)
        return True
    except Exception:
        return False


def _single_buffer_ok():
    global _SINGLE_BUFFER
    if _SINGLE_BUFFER is None:
        _SINGLE_BUFFER = _probe_single_buffer()
    return _SINGLE_BUFFER


def _const_spec(block_shape, index_map):
    """Spec for an operand whose block never changes across the grid: single-buffer it
    (no wasted double-buffer VMEM) when the runtime supports pipeline_mode."""
    if _SINGLE_BUFFER:
        return pl.BlockSpec(block_shape, index_map, pipeline_mode=pl.Buffered(1))
    return pl.BlockSpec(block_shape, index_map)


def _cparams(semantics=None):
    return pltpu.CompilerParams(dimension_semantics=semantics,
                                vmem_limit_bytes=_VMEM_LIMIT)


def _row_tile(m, cap=None):
    """Largest legal row-block: full rows if small, else a multiple-of-8 divisor <= cap."""
    cap = cap or _ROW_CAP
    if m <= cap:
        return m
    for t in range(cap - cap % 8, 7, -8):
        if m % t == 0:
            return t
    return m


# ----------------------------------------------------------------------------- math helpers

def _gelu_tanh(y):
    return 0.5 * y * (1.0 + jnp.tanh(_SQRT_2_OVER_PI * (y + 0.044715 * y * y * y)))


def _ln(z, g, b):
    mu = jnp.mean(z, axis=-1, keepdims=True)
    var = jnp.mean((z - mu) ** 2, axis=-1, keepdims=True)
    return (z - mu) * jax.lax.rsqrt(var + _LN_EPS) * g + b


def _bf16(x):
    return x.astype(jnp.bfloat16)


# ----------------------------------------------------------------------------- kernels

def _attn_block_kernel(x_ref, rp_ref, te_ref, wqkv_ref, bqkv_ref, wo_ref, bo_ref,
                       g1_ref, b1_ref, x1_ref, sr_ref, *, num_heads, scale):
    """Full TimeAwareAttention block for one batch element + residual + norm1 + seq-mean."""
    x = x_ref[0]                                        # (S, E) — residual input
    xp = x + rp_ref[0] + te_ref[...]                    # rel-pos + time-encoding add
    qkv = jnp.dot(_bf16(xp), _bf16(wqkv_ref[...]),
                  preferred_element_type=jnp.float32) + bqkv_ref[...]   # (S, 3E)
    S, E = x.shape
    Dh = E // num_heads
    head_outs = []
    for h in range(num_heads):                          # static unroll over heads
        q = _bf16(qkv[:, h * Dh:(h + 1) * Dh])
        k = _bf16(qkv[:, E + h * Dh:E + (h + 1) * Dh])
        v = _bf16(qkv[:, 2 * E + h * Dh:2 * E + (h + 1) * Dh])
        s = jax.lax.dot_general(q, k, (((1,), (1,)), ((), ())),
                                preferred_element_type=jnp.float32) * scale
        m = jnp.max(s, axis=-1, keepdims=True)
        p = jnp.exp(s - m)
        l = jnp.sum(p, axis=-1, keepdims=True)
        o = jnp.dot(_bf16(p), v, preferred_element_type=jnp.float32)
        head_outs.append(o * pl.reciprocal(l, approx=True))
    attn = jnp.concatenate(head_outs, axis=-1)          # (S, E)
    y = jnp.dot(_bf16(attn), _bf16(wo_ref[...]),
                preferred_element_type=jnp.float32) + bo_ref[...]
    x1 = _ln(x + y, g1_ref[...], b1_ref[...])
    x1_ref[0] = x1
    sr_ref[0] = jnp.mean(x1, axis=0, keepdims=True)     # seq_repr contribution (1, E)


def _liquid_cells_kernel(n_ref, x_ref, h0_ref, w1h_ref, w1x_ref, b1_ref,
                         ln1g_ref, ln1b_ref, w2_ref, b2_ref, w3_ref, b3_ref,
                         tmw_ref, tmb_ref, lng_ref, lnb_ref, o_ref, h_scr):
    """One LiquidCell (fast/medium/slow chosen by grid index) — full Euler integration
    with a dynamic trip count from SMEM, plus the final LayerNorm."""
    c = pl.program_id(0)
    n = n_ref[c]                                        # Euler updates = adapt_steps - 1
    dt = 1.0 / n.astype(jnp.float32)
    x = x_ref[...]                                      # (B, E)

    # loop-invariant weights / broadcasts hoisted out of the loop
    w1h = _bf16(w1h_ref[0])
    w2 = _bf16(w2_ref[0])
    w3 = _bf16(w3_ref[0])                               # 1/time_constant pre-folded
    ln1g, ln1b = ln1g_ref[0], ln1b_ref[0]
    b2v, b3v = b2_ref[0], b3_ref[0]
    tmw, tmb = tmw_ref[0], tmb_ref[0]
    # cat([h, x]) @ W1 == h @ W1_h + x @ W1_x; the x-part is loop-invariant.
    zx = jnp.dot(_bf16(x), _bf16(w1x_ref[0]),
                 preferred_element_type=jnp.float32) + b1_ref[0]

    h_scr[...] = h0_ref[0]

    @pl.loop(0, n)
    def _(i):
        h = h_scr[...]
        z = jnp.dot(_bf16(h), w1h, preferred_element_type=jnp.float32) + zx
        z = _gelu_tanh(_ln(z, ln1g, ln1b))
        z = _gelu_tanh(jnp.dot(_bf16(z), w2, preferred_element_type=jnp.float32) + b2v)
        dh = jnp.dot(_bf16(z), w3, preferred_element_type=jnp.float32) + b3v
        t_prev = i.astype(jnp.float32) * dt
        time_mod = jnp.tanh(t_prev * tmw + tmb)         # (1, H)
        h_scr[...] = h + dt * dh * time_mod

    o_ref[0] = _ln(h_scr[...], lng_ref[0], lnb_ref[0])


def _norm2_router_kernel(x1_ref, lq_ref, g2_ref, b2_ref, wa_ref, wb_ref, rb_ref,
                         x2_ref, rh_ref):
    """x2 = LN(x1 + liquid) and router hidden gelu(x2@Wa + liquid@Wb + b) in one pass
    (no (M, 2E) concat materialized)."""
    lq = lq_ref[...]
    x2 = _ln(x1_ref[...] + lq, g2_ref[...], b2_ref[...])
    x2_ref[...] = x2
    rh = (jnp.dot(_bf16(x2), _bf16(wa_ref[...]), preferred_element_type=jnp.float32)
          + jnp.dot(_bf16(lq), _bf16(wb_ref[...]), preferred_element_type=jnp.float32)
          + rb_ref[...])
    rh_ref[...] = _gelu_tanh(rh)


def _moe_kernel(x2_ref, gate_ref, w1_ref, b1_ref, lng_ref, lnb_ref,
                w2_ref, b2_ref, g3_ref, bb3_ref, o_ref, acc_ref,
                *, hidden, num_experts):
    """All experts accumulated over an 'arbitrary' grid axis; epilogue = residual + norm3.
    Experts are zero-padded to the widest; LayerNorm statistics are masked to each
    expert's true width."""
    e = pl.program_id(1)

    @pl.when(e == 0)
    def _():
        acc_ref[...] = jnp.zeros_like(acc_ref)

    hmax = w1_ref.shape[-1]
    he = (e + 1) * hidden                               # true expert width (traced)
    cnt = he.astype(jnp.float32)
    col = jax.lax.broadcasted_iota(jnp.int32, (1, hmax), 1)
    mask = (col < he).astype(jnp.float32)               # (1, Hmax)

    x2 = x2_ref[...]
    z = jnp.dot(_bf16(x2), _bf16(w1_ref[0]),
                preferred_element_type=jnp.float32) + b1_ref[0]
    zm = z * mask
    mu = jnp.sum(zm, axis=-1, keepdims=True) / cnt
    d = (z - mu) * mask
    var = jnp.sum(d * d, axis=-1, keepdims=True) / cnt
    h = _gelu_tanh(d * jax.lax.rsqrt(var + _LN_EPS) * lng_ref[0] + lnb_ref[0])
    y = jnp.dot(_bf16(h), _bf16(w2_ref[0]),
                preferred_element_type=jnp.float32) + b2_ref[0]

    eidx = jax.lax.broadcasted_iota(jnp.int32, (1, num_experts), 1)
    gsel = jnp.sum(jnp.where(eidx == e, gate_ref[...], 0.0), axis=-1, keepdims=True)
    acc_ref[...] += gsel * y

    @pl.when(e == num_experts - 1)
    def _():
        o_ref[...] = _ln(x2_ref[...] + acc_ref[...], g3_ref[...], bb3_ref[...])


# ----------------------------------------------------------------------------- wrappers

def attention_block(x, rel_pos, te, pa, g1, b1, num_heads):
    B, S, E = x.shape
    scale = 1.0 / math.sqrt(E // num_heads)
    kernel = functools.partial(_attn_block_kernel, num_heads=num_heads, scale=scale)
    return pl.pallas_call(
        kernel,
        out_shape=(jax.ShapeDtypeStruct((B, S, E), jnp.float32),
                   jax.ShapeDtypeStruct((B, 1, E), jnp.float32)),
        grid=(B,),
        in_specs=[
            pl.BlockSpec((1, S, E), lambda b: (b, 0, 0)),
            _const_spec((1, S, E), lambda b: (0, 0, 0)),
            _const_spec((1, E), lambda b: (0, 0)),
            _const_spec((E, 3 * E), lambda b: (0, 0)),
            _const_spec((1, 3 * E), lambda b: (0, 0)),
            _const_spec((E, E), lambda b: (0, 0)),
            _const_spec((1, E), lambda b: (0, 0)),
            _const_spec((1, E), lambda b: (0, 0)),
            _const_spec((1, E), lambda b: (0, 0)),
        ],
        out_specs=[pl.BlockSpec((1, S, E), lambda b: (b, 0, 0)),
                   pl.BlockSpec((1, 1, E), lambda b: (b, 0, 0))],
        compiler_params=_cparams(("parallel",)),
    )(x, rel_pos, te, pa["wqkv"], pa["bqkv"].reshape(1, 3 * E),
      pa["wo"], pa["bo"].reshape(1, E), g1.reshape(1, E), b1.reshape(1, E))


def liquid_cells(pliq, seq_repr, h0, n_upd):
    """All three LiquidCells in one call; grid=(3,) 'parallel' (one cell per grid step)."""
    B, E = seq_repr.shape
    H = h0.shape[-1]

    def cell_spec(shape):
        nd = len(shape)
        return pl.BlockSpec((1,) + tuple(shape[1:]),
                            lambda c, n, _nd=nd: (c,) + (0,) * (_nd - 1))

    grid_spec = pltpu.PrefetchScalarGridSpec(
        num_scalar_prefetch=1,
        grid=(3,),
        in_specs=[
            _const_spec((B, E), lambda c, n: (0, 0)),   # seq_repr (same for all cells)
            cell_spec((3, B, H)),                       # h0 per cell
            cell_spec(pliq["w1_h"].shape),
            cell_spec(pliq["w1_x"].shape),
            cell_spec(pliq["b1"].shape),
            cell_spec(pliq["ln1_g"].shape),
            cell_spec(pliq["ln1_b"].shape),
            cell_spec(pliq["w2"].shape),
            cell_spec(pliq["b2"].shape),
            cell_spec(pliq["w3"].shape),
            cell_spec(pliq["b3"].shape),
            cell_spec(pliq["tm_w"].shape),
            cell_spec(pliq["tm_b"].shape),
            cell_spec(pliq["ln_g"].shape),
            cell_spec(pliq["ln_b"].shape),
        ],
        out_specs=pl.BlockSpec((1, B, H), lambda c, n: (c, 0, 0)),
        scratch_shapes=[pltpu.VMEM((B, H), jnp.float32)],
    )
    return pl.pallas_call(
        _liquid_cells_kernel,
        out_shape=jax.ShapeDtypeStruct((3, B, H), jnp.float32),
        grid_spec=grid_spec,
        compiler_params=_cparams(("parallel",)),
    )(n_upd, seq_repr, h0,
      pliq["w1_h"], pliq["w1_x"], pliq["b1"], pliq["ln1_g"], pliq["ln1_b"],
      pliq["w2"], pliq["b2"], pliq["w3"], pliq["b3"],
      pliq["tm_w"], pliq["tm_b"], pliq["ln_g"], pliq["ln_b"])


def norm2_router(x1f, liqf, g2, b2, wa, wb, rb1):
    M, E = x1f.shape
    Hh = wa.shape[1]
    tm = _row_tile(M)
    return pl.pallas_call(
        _norm2_router_kernel,
        out_shape=(jax.ShapeDtypeStruct((M, E), jnp.float32),
                   jax.ShapeDtypeStruct((M, Hh), jnp.float32)),
        grid=(M // tm,),
        in_specs=[
            pl.BlockSpec((tm, E), lambda i: (i, 0)),
            pl.BlockSpec((tm, E), lambda i: (i, 0)),
            _const_spec((1, E), lambda i: (0, 0)),
            _const_spec((1, E), lambda i: (0, 0)),
            _const_spec((E, Hh), lambda i: (0, 0)),
            _const_spec((E, Hh), lambda i: (0, 0)),
            _const_spec((1, Hh), lambda i: (0, 0)),
        ],
        out_specs=[pl.BlockSpec((tm, E), lambda i: (i, 0)),
                   pl.BlockSpec((tm, Hh), lambda i: (i, 0))],
        compiler_params=_cparams(("parallel",)),
    )(x1f, liqf, g2.reshape(1, E), b2.reshape(1, E), wa, wb, rb1.reshape(1, Hh))


def moe_block(x2, gates, pm, g3, b3, num_experts):
    M, E = x2.shape
    Hmax = pm["w1"].shape[-1]
    hidden = Hmax // num_experts
    tm = _row_tile(M)
    kernel = functools.partial(_moe_kernel, hidden=hidden, num_experts=num_experts)
    return pl.pallas_call(
        kernel,
        out_shape=jax.ShapeDtypeStruct((M, E), jnp.float32),
        grid=(M // tm, num_experts),
        in_specs=[
            pl.BlockSpec((tm, E), lambda i, e: (i, 0)),
            pl.BlockSpec((tm, num_experts), lambda i, e: (i, 0)),
            pl.BlockSpec((1, E, Hmax), lambda i, e: (e, 0, 0)),
            pl.BlockSpec((1, 1, Hmax), lambda i, e: (e, 0, 0)),
            pl.BlockSpec((1, 1, Hmax), lambda i, e: (e, 0, 0)),
            pl.BlockSpec((1, 1, Hmax), lambda i, e: (e, 0, 0)),
            pl.BlockSpec((1, Hmax, E), lambda i, e: (e, 0, 0)),
            pl.BlockSpec((1, 1, E), lambda i, e: (e, 0, 0)),
            _const_spec((1, E), lambda i, e: (0, 0)),
            _const_spec((1, E), lambda i, e: (0, 0)),
        ],
        out_specs=pl.BlockSpec((tm, E), lambda i, e: (i, 0)),
        scratch_shapes=[pltpu.VMEM((tm, E), jnp.float32)],
        compiler_params=_cparams(("parallel", "arbitrary")),
    )(x2, gates, pm["w1"], pm["b1"], pm["ln_g"], pm["ln_b"], pm["w2"], pm["b2"],
      g3.reshape(1, E), b3.reshape(1, E))


# ----------------------------------------------------------------------------- layer

def make_layer_fn(num_heads, num_experts, use_time_step=True):
    """Single-jit forward of LiquidTransformerLayer (eval-mode dropout)."""
    _single_buffer_ok()   # probe once, outside the jit trace

    @jax.jit
    def fwd(params, x, liquid_states, time_step):
        B, S, E = x.shape
        M = B * S
        pa = params["attn"]

        # ---------------- TimeAwareAttention + residual + norm1 ----------------
        rel_pos = pa["rel_pos"][:, :S, :]   # TODO(synk): assumes S <= 512 (as in torch)
        if use_time_step:
            h1 = jax.nn.gelu(time_step * pa["te_w1"][0] + pa["te_b1"], approximate=True)
            te = (h1 @ pa["te_w2"] + pa["te_b2"]).reshape(1, E)
        else:
            te = jnp.zeros((1, E), jnp.float32)
        x1, sr = attention_block(x, rel_pos, te, pa,
                                 params["norm1_g"], params["norm1_b"], num_heads)
        seq_repr = sr[:, 0, :]                           # (B, E)

        # ---------------- HierarchicalLiquidCell ----------------
        pliq = params["liquid"]

        def get_state(name):
            v = liquid_states.get(name)
            return v if v is not None else jnp.zeros_like(seq_repr)

        h0 = jnp.stack([get_state("fast"), get_state("medium"), get_state("slow")])

        # complexity gates -> per-cell Euler update counts (scalar prefetch, no host sync)
        cg = jax.nn.sigmoid(jnp.einsum("be,ceh->cbh", seq_repr, pliq["gate_w"])
                            + pliq["gate_b"][:, None, :])
        means = jnp.mean(cg, axis=(1, 2))                # (3,)
        ode_steps = jnp.array([5.0, 10.0, 15.0], jnp.float32)
        n_upd = (4.0 + jnp.floor(means * ode_steps)).astype(jnp.int32)   # adapt_steps - 1

        h_new = liquid_cells(pliq, seq_repr, h0, n_upd)  # (3, B, E)
        fast_h, medium_h, slow_h = h_new[0], h_new[1], h_new[2]
        wmix = jax.nn.softmax(seq_repr @ pliq["mix_w"] + pliq["mix_b"], axis=-1)
        liquid_out = (wmix[:, 0:1] * fast_h + wmix[:, 1:2] * medium_h
                      + wmix[:, 2:3] * slow_h)
        new_states = {"fast": fast_h, "medium": medium_h, "slow": slow_h,
                      "combined": liquid_out}

        # ---------------- norm2 + MoE router hidden (fused) ----------------
        pm = params["moe"]
        liquid_flat = jnp.broadcast_to(liquid_out[:, None, :], (B, S, E)).reshape(M, E)
        x2, rh = norm2_router(x1.reshape(M, E), liquid_flat,
                              params["norm2_g"], params["norm2_b"],
                              pm["router_wa"], pm["router_wb"], pm["router_b1"])

        router_logits = rh @ pm["router_w2"] + pm["router_b2"]      # tiny N: plain XLA
        router_probs = jax.nn.softmax(router_logits, axis=-1)
        uh = jax.nn.gelu(x2 @ pm["unc_w1"] + pm["unc_b1"], approximate=True)
        uncertainty = jax.nn.sigmoid(uh @ pm["unc_w2"] + pm["unc_b2"])[:, 0]

        k = 2  # the torch module overwrites the adaptive k with 2
        topk_probs, topk_idx = jax.lax.top_k(router_probs, k)
        topk_probs = topk_probs / jnp.sum(topk_probs, axis=-1, keepdims=True)
        onehot = jax.nn.one_hot(topk_idx, num_experts, dtype=jnp.float32)  # (M, k, NE)
        gates = jnp.sum(onehot * topk_probs[..., None], axis=1)            # (M, NE)
        loads = jnp.sum(onehot, axis=(0, 1))                               # (NE,)

        # ---------------- all experts + residual + norm3 (fused) ----------------
        x3 = moe_block(x2, gates, pm, params["norm3_g"], params["norm3_b"], num_experts)

        expert_loads = loads / jnp.sum(loads)
        uniform = 1.0 / num_experts
        aux = {"load_balance_loss": 0.01 * jnp.mean((expert_loads - uniform) ** 2),
               "expert_loads": expert_loads,
               "mean_uncertainty": jnp.mean(uncertainty)}

        return x3.reshape(B, S, E), new_states, aux

    return fwd


# ----------------------------------------------------------------------------- params

class _Init:
    def __init__(self, seed):
        self._key = jax.random.PRNGKey(seed)

    def _next(self):
        self._key, sub = jax.random.split(self._key)
        return sub

    def normal(self, shape, scale=0.05):
        return scale * jax.random.normal(self._next(), shape, dtype=jnp.float32)

    def zeros(self, shape):
        return jnp.zeros(shape, jnp.float32)

    def ones(self, shape):
        return jnp.ones(shape, jnp.float32)


def init_params(E, num_heads, num_experts, seed=42):
    assert E % num_heads == 0
    rng = _Init(seed)
    hidden = 4 * E                 # MoE hidden_dim = embed_size * 4
    hmax = hidden * num_experts    # widest expert; all experts zero-padded to this

    # --- TimeAwareAttention ---
    wq, bq = rng.normal((E, E)), rng.normal((E,), 0.02)
    wk, bk = rng.normal((E, E)), rng.normal((E,), 0.02)
    wv, bv = rng.normal((E, E)), rng.normal((E,), 0.02)
    attn = dict(
        rel_pos=rng.normal((1, 512, E), 0.02),
        wqkv=jnp.concatenate([wq, wk, wv], axis=1),     # fused QKV projection
        bqkv=jnp.concatenate([bq, bk, bv]),
        wo=rng.normal((E, E)), bo=rng.normal((E,), 0.02),
        te_w1=rng.normal((1, E // 2)), te_b1=rng.normal((E // 2,), 0.02),
        te_w2=rng.normal((E // 2, E)), te_b2=rng.normal((E,), 0.02),
    )

    # --- HierarchicalLiquidCell: stack [fast, medium, slow] on a leading cell axis ---
    def one_cell(inp, hid, tc):
        w1 = rng.normal((hid + inp, hid * 4))
        return dict(
            w1_h=w1[:hid], w1_x=w1[hid:],               # split of cat([h, x]) @ W1
            b1=rng.normal((1, hid * 4), 0.02),
            ln1_g=rng.ones((1, hid * 4)), ln1_b=rng.zeros((1, hid * 4)),
            w2=rng.normal((hid * 4, hid * 2)), b2=rng.normal((1, hid * 2), 0.02),
            # 1/time_constant folded into the last linear (a torch importer does the same)
            w3=rng.normal((hid * 2, hid)) / tc, b3=rng.normal((1, hid), 0.02) / tc,
            gate_w=rng.normal((inp, hid)), gate_b=rng.normal((hid,), 0.02),
            tm_w=rng.normal((1, hid)), tm_b=rng.normal((1, hid), 0.02),
            ln_g=rng.ones((1, hid)), ln_b=rng.zeros((1, hid)),
        )

    cells = [one_cell(E, E, tc) for tc in (0.1, 1.0, 10.0)]
    liquid = {k: jnp.stack([c[k] for c in cells]) for k in cells[0]}
    liquid["mix_w"] = rng.normal((E, 3))
    liquid["mix_b"] = rng.normal((3,), 0.02)

    # --- AdaptiveMixtureOfExperts: experts padded to hmax and stacked ---
    w1 = jnp.zeros((num_experts, E, hmax), jnp.float32)
    b1 = jnp.zeros((num_experts, 1, hmax), jnp.float32)
    ln_g = jnp.ones((num_experts, 1, hmax), jnp.float32)
    ln_b = jnp.zeros((num_experts, 1, hmax), jnp.float32)
    w2 = jnp.zeros((num_experts, hmax, E), jnp.float32)
    b2 = jnp.zeros((num_experts, 1, E), jnp.float32)
    for i in range(num_experts):
        he = hidden * (i + 1)
        w1 = w1.at[i, :, :he].set(rng.normal((E, he)))
        b1 = b1.at[i, 0, :he].set(rng.normal((he,), 0.02))
        w2 = w2.at[i, :he, :].set(rng.normal((he, E)))
        b2 = b2.at[i, 0, :].set(rng.normal((E,), 0.02))
    moe = dict(
        w1=w1, b1=b1, ln_g=ln_g, ln_b=ln_b, w2=w2, b2=b2,
        router_wa=rng.normal((E, hidden)),   # x-half of router.0 weight
        router_wb=rng.normal((E, hidden)),   # liquid-half of router.0 weight
        router_b1=rng.normal((hidden,), 0.02),
        router_w2=rng.normal((hidden, num_experts)),
        router_b2=rng.normal((num_experts,), 0.02),
        unc_w1=rng.normal((E, hidden // 2)), unc_b1=rng.normal((hidden // 2,), 0.02),
        unc_w2=rng.normal((hidden // 2, 1)), unc_b2=rng.normal((1,), 0.02),
    )

    return dict(
        attn=attn, liquid=liquid, moe=moe,
        norm1_g=rng.ones((E,)), norm1_b=rng.zeros((E,)),
        norm2_g=rng.ones((E,)), norm2_b=rng.zeros((E,)),
        norm3_g=rng.ones((E,)), norm3_b=rng.zeros((E,)),
    )


# ----------------------------------------------------------------------------- main

if __name__ == "__main__":
    E, num_heads, num_experts = 32, 4, 4
    B, S = 2, 8

    params = init_params(E, num_heads, num_experts, seed=42)

    key = jax.random.PRNGKey(0)
    kx, kf, km, ks = jax.random.split(key, 4)
    x = jax.random.normal(kx, (B, S, E), dtype=jnp.float32)
    liquid_states = {
        "fast": 0.1 * jax.random.normal(kf, (B, E), dtype=jnp.float32),
        "medium": 0.1 * jax.random.normal(km, (B, E), dtype=jnp.float32),
        "slow": 0.1 * jax.random.normal(ks, (B, E), dtype=jnp.float32),
    }

    layer = make_layer_fn(num_heads, num_experts, use_time_step=True)
    out, new_states, aux = layer(params, x, liquid_states, 0.5)

    jax.block_until_ready(out)
    jax.block_until_ready(new_states["combined"])
    jax.block_until_ready(aux["load_balance_loss"])

    assert out.shape == (B, S, E)
    assert new_states["fast"].shape == (B, E)
    assert aux["expert_loads"].shape == (num_experts,)
    assert bool(jnp.all(jnp.isfinite(out)))
    print("KERNEL_OK")
</pallas_src>

<mosaic_0001>
module attributes {stable_mosaic.version = 11 : i64} {
  func.func @_k(%arg0: i32, %arg1: memref<8x128xf32, #tpu.memory_space<vmem>>, %arg2: memref<8x128xf32, #tpu.memory_space<vmem>>) attributes {dimension_semantics = [#tpu.dimension_semantics<arbitrary>], iteration_bounds = array<i64: 1>, scalar_prefetch = 0 : i64, scratch_operands = 0 : i64, tpu.core_type = #tpu.core_type<tc>, window_params = [{pipeline_mode = #tpu.pipeline_mode<synchronous>, transform_indices = @transform_0, window_bounds = array<i64: 8, 128>}, {pipeline_mode = #tpu.pipeline_mode<synchronous>, transform_indices = @transform_1, window_bounds = array<i64: 8, 128>}]} {
    %c0 = arith.constant 0 : index
    %c0_0 = arith.constant 0 : index
    %0 = vector.load %arg1[%c0, %c0_0] : memref<8x128xf32, #tpu.memory_space<vmem>>, vector<8x128xf32>
    %cst = arith.constant 1.000000e+00 : f32
    %1 = vector.broadcast %cst : f32 to vector<8x128xf32>
    %2 = arith.addf %0, %1 : vector<8x128xf32>
    %c0_1 = arith.constant 0 : index
    %c0_2 = arith.constant 0 : index
    %3 = vector.load %arg2[%c0_1, %c0_2] : memref<8x128xf32, #tpu.memory_space<vmem>>, vector<8x128xf32>
    tpu.vector_store %arg2[%c0_1, %c0_2], %2 {strides = array<i32>} : memref<8x128xf32, #tpu.memory_space<vmem>>, vector<8x128xf32>,
    return
  }
  func.func @transform_0(%arg0: i32) -> (i32, i32) {
    %c0_i32 = arith.constant 0 : i32
    %c0_i32_0 = arith.constant 0 : i32
    %c0_i32_1 = arith.constant 0 : i32
    return %c0_i32, %c0_i32_0 : i32, i32
  }
  func.func @transform_1(%arg0: i32) -> (i32, i32) {
    %c0_i32 = arith.constant 0 : i32
    %c0_i32_0 = arith.constant 0 : i32
    %c0_i32_1 = arith.constant 0 : i32
    return %c0_i32, %c0_i32_0 : i32, i32
  }
}

module attributes {stable_mosaic.version = 11 : i64} {
  func.func @_attn_block_kernel(%arg0: i32, %arg1: memref<1x8x32xf32, #tpu.memory_space<vmem>>, %arg2: memref<1x8x32xf32, #tpu.memory_space<vmem>>, %arg3: memref<1x32xf32, #tpu.memory_space<vmem>>, %arg4: memref<32x96xf32, #tpu.memory_space<vmem>>, %arg5: memref<1x96xf32, #tpu.memory_space<vmem>>, %arg6: memref<32x32xf32, #tpu.memory_space<vmem>>, %arg7: memref<1x32xf32, #tpu.memory_space<vmem>>, %arg8: memref<1x32xf32, #tpu.memory_space<vmem>>, %arg9: memref<1x32xf32, #tpu.memory_space<vmem>>, %arg10: memref<1x8x32xf32, #tpu.memory_space<vmem>>, %arg11: memref<1x1x32xf32, #tpu.memory_space<vmem>>) attributes {dimension_semantics = [#tpu.dimension_semantics<parallel>], iteration_bounds = array<i64: 2>, scalar_prefetch = 0 : i64, scratch_operands = 0 : i64, tpu.core_type = #tpu.core_type<tc>, window_params = [{transform_indices = @transform_0, window_bounds = array<i64: 1, 8, 32>}, {pipeline_mode = #tpu.pipeline_mode<synchronous>, transform_indices = @transform_1, window_bounds = array<i64: 1, 8, 32>}, {pipeline_mode = #tpu.pipeline_mode<synchronous>, transform_indices = @transform_2, window_bounds = array<i64: 1, 32>}, {pipeline_mode = #tpu.pipeline_mode<synchronous>, transform_indices = @transform_3, window_bounds = array<i64: 32, 96>}, {pipeline_mode = #tpu.pipeline_mode<synchronous>, transform_indices = @transform_4, window_bounds = array<i64: 1, 96>}, {pipeline_mode = #tpu.pipeline_mode<synchronous>, transform_indices = @transform_5, window_bounds = array<i64: 32, 32>}, {pipeline_mode = #tpu.pipeline_mode<synchronous>, transform_indices = @transform_6, window_bounds = array<i64: 1, 32>}, {pipeline_mode = #tpu.pipeline_mode<synchronous>, transform_indices = @transform_7, window_bounds = array<i64: 1, 32>}, {pipeline_mode = #tpu.pipeline_mode<synchronous>, transform_indices = @transform_8, window_bounds = array<i64: 1, 32>}, {transform_indices = @transform_9, window_bounds = array<i64: 1, 8, 32>}, {transform_indices = @transform_10, window_bounds = array<i64: 1, 1, 32>}]} {
    %c0 = arith.constant 0 : index
    %c0_0 = arith.constant 0 : index
    %c0_1 = arith.constant 0 : index
    %0 = vector.load %arg1[%c0, %c0_0, %c0_1] : memref<1x8x32xf32, #tpu.memory_space<vmem>>, vector<1x8x32xf32>
    %1 = vector.shape_cast %0 : vector<1x8x32xf32> to vector<8x32xf32>
    %c0_2 = arith.constant 0 : index
    %c0_3 = arith.constant 0 : index
    %c0_4 = arith.constant 0 : index
    %2 = vector.load %arg2[%c0_2, %c0_3, %c0_4] : memref<1x8x32xf32, #tpu.memory_space<vmem>>, vector<1x8x32xf32>
    %3 = vector.shape_cast %2 : vector<1x8x32xf32> to vector<8x32xf32>
    %4 = arith.addf %1, %3 : vector<8x32xf32>
    %c0_5 = arith.constant 0 : index
    %c0_6 = arith.constant 0 : index
    %5 = vector.load %arg3[%c0_5, %c0_6] : memref<1x32xf32, #tpu.memory_space<vmem>>, vector<1x32xf32>
    %6 = vector.broadcast %5 : vector<1x32xf32> to vector<8x32xf32>
    %7 = arith.addf %4, %6 : vector<8x32xf32>
    %8 = arith.truncf %7 : vector<8x32xf32> to vector<8x32xbf16>
    %c0_7 = arith.constant 0 : index
    %c0_8 = arith.constant 0 : index
    %9 = vector.load %arg4[%c0_7, %c0_8] : memref<32x96xf32, #tpu.memory_space<vmem>>, vector<32x96xf32>
    %10 = arith.truncf %9 : vector<32x96xf32> to vector<32x96xbf16>
    %cst = arith.constant dense<0.000000e+00> : vector<8x96xf32>
    %11 = tpu.matmul %8, %10, %cst {dimension_numbers = #tpu.dot_dimension_numbers<[1], [0], [0], [1], [0, 0, 1, 1], [], []>} : vector<8x32xbf16>, vector<32x96xbf16>, vector<8x96xf32> -> vector<8x96xf32>
    %c0_9 = arith.constant 0 : index
    %c0_10 = arith.constant 0 : index
    %12 = vector.load %arg5[%c0_9, %c0_10] : memref<1x96xf32, #tpu.memory_space<vmem>>, vector<1x96xf32>
    %13 = vector.broadcast %12 : vector<1x96xf32> to vector<8x96xf32>
    %14 = arith.addf %11, %13 : vector<8x96xf32>
    %15 = vector.extract_strided_slice %14 {offsets = [0, 0], sizes = [8, 8], strides = [1, 1]} : vector<8x96xf32> to vector<8x8xf32>
    %16 = arith.truncf %15 : vector<8x8xf32> to vector<8x8xbf16>
    %17 = vector.extract_strided_slice %14 {offsets = [0, 32], sizes = [8, 8], strides = [1, 1]} : vector<8x96xf32> to vector<8x8xf32>
    %18 = arith.truncf %17 : vector<8x8xf32> to vector<8x8xbf16>
    %19 = vector.extract_strided_slice %14 {offsets = [0, 64], sizes = [8, 8], strides = [1, 1]} : vector<8x96xf32> to vector<8x8xf32>
    %20 = arith.truncf %19 : vector<8x8xf32> to vector<8x8xbf16>
    %cst_11 = arith.constant dense<0.000000e+00> : vector<8x8xf32>
    %21 = tpu.matmul %16, %18, %cst_11 {dimension_numbers = #tpu.dot_dimension_numbers<[1], [1], [0], [0], [0, 0, 1, 0], [], []>} : vector<8x8xbf16>, vector<8x8xbf16>, vector<8x8xf32> -> vector<8x8xf32>
    %cst_12 = arith.constant 0.353553385 : f32
    %22 = vector.broadcast %cst_12 : f32 to vector<8x8xf32>
    %23 = arith.mulf %21, %22 : vector<8x8xf32>
    %cst_13 = arith.constant dense<0xFF800000> : vector<8xf32>
    %24 = vector.multi_reduction <maximumf>, %23, %cst_13 [1] : vector<8x8xf32> to vector<8xf32>
    %25 = vector.shape_cast %24 : vector<8xf32> to vector<8x1xf32>
    %26 = vector.broadcast %25 : vector<8x1xf32> to vector<8x8xf32>
    %27 = arith.subf %23, %26 : vector<8x8xf32>
    %28 = math.exp %27 : vector<8x8xf32>
    %cst_14 = arith.constant dense<0.000000e+00> : vector<8xf32>
    %29 = vector.multi_reduction <add>, %28, %cst_14 [1] : vector<8x8xf32> to vector<8xf32>
    %30 = vector.shape_cast %29 : vector<8xf32> to vector<8x1xf32>
    %31 = arith.truncf %28 : vector<8x8xf32> to vector<8x8xbf16>
    %cst_15 = arith.constant dense<0.000000e+00> : vector<8x8xf32>
    %32 = tpu.matmul %31, %20, %cst_15 {dimension_numbers = #tpu.dot_dimension_numbers<[1], [0], [0], [1], [0, 0, 1, 1], [], []>} : vector<8x8xbf16>, vector<8x8xbf16>, vector<8x8xf32> -> vector<8x8xf32>
    %33 = tpu.reciprocal %30 {approx = true} : vector<8x1xf32> -> vector<8x1xf32>
    %34 = vector.broadcast %33 : vector<8x1xf32> to vector<8x8xf32>
    %35 = arith.mulf %32, %34 : vector<8x8xf32>
    %36 = vector.extract_strided_slice %14 {offsets = [0, 8], sizes = [8, 8], strides = [1, 1]} : vector<8x96xf32> to vector<8x8xf32>
    %37 = arith.truncf %36 : vector<8x8xf32> to vector<8x8xbf16>
    %38 = vector.extract_strided_slice %14 {offsets = [0, 40], sizes = [8, 8], strides = [1, 1]} : vector<8x96xf32> to vector<8x8xf32>
    %39 = arith.truncf %38 : vector<8x8xf32> to vector<8x8xbf16>
    %40 = vector.extract_strided_slice %14 {offsets = [0, 72], sizes = [8, 8], strides = [1, 1]} : vector<8x96xf32> to vector<8x8xf32>
    %41 = arith.truncf %40 : vector<8x8xf32> to vector<8x8xbf16>
    %cst_16 = arith.constant dense<0.000000e+00> : vector<8x8xf32>
    %42 = tpu.matmul %37, %39, %cst_16 {dimension_numbers = #tpu.dot_dimension_numbers<[1], [1], [0], [0], [0, 0, 1, 0], [], []>} : vector<8x8xbf16>, vector<8x8xbf16>, vector<8x8xf32> -> vector<8x8xf32>
    %cst_17 = arith.constant 0.353553385 : f32
    %43 = vector.broadcast %cst_17 : f32 to vector<8x8xf32>
    %44 = arith.mulf %42, %43 : vector<8x8xf32>
    %cst_18 = arith.constant dense<0xFF800000> : vector<8xf32>
    %45 = vector.multi_reduction <maximumf>, %44, %cst_18 [1] : vector<8x8xf32> to vector<8xf32>
    %46 = vector.shape_cast %45 : vector<8xf32> to vector<8x1xf32>
    %47 = vector.broadcast %46 : vector<8x1xf32> to vector<8x8xf32>
    %48 = arith.subf %44, %47 : vector<8x8xf32>
    %49 = math.exp %48 : vector<8x8xf32>
    %cst_19 = arith.constant dense<0.000000e+00> : vector<8xf32>
    %50 = vector.multi_reduction <add>, %49, %cst_19 [1] : vector<8x8xf32> to vector<8xf32>
    %51 = vector.shape_cast %50 : vector<8xf32> to vector<8x1xf32>
    %52 = arith.truncf %49 : vector<8x8xf32> to vector<8x8xbf16>
    %cst_20 = arith.constant dense<0.000000e+00> : vector<8x8xf32>
    %53 = tpu.matmul %52, %41, %cst_20 {dimension_numbers = #tpu.dot_dimension_numbers<[1], [0], [0], [1], [0, 0, 1, 1], [], []>} : vector<8x8xbf16>, vector<8x8xbf16>, vector<8x8xf32> -> vector<8x8xf32>
    %54 = tpu.reciprocal %51 {approx = true} : vector<8x1xf32> -> vector<8x1xf32>
    %55 = vector.broadcast %54 : vector<8x1xf32> to vector<8x8xf32>
    %56 = arith.mulf %53, %55 : vector<8x8xf32>
    %57 = vector.extract_strided_slice %14 {offsets = [0, 16], sizes = [8, 8], strides = [1, 1]} : vector<8x96xf32> to vector<8x8xf32>
    %58 = arith.truncf %57 : vector<8x8xf32> to vector<8x8xbf16>
    %59 = vector.extract_strided_slice %14 {offsets = [0, 48], sizes = [8, 8], strides = [1, 1]} : vector<8x96xf32> to vector<8x8xf32>
    %60 = arith.truncf %59 : vector<8x8xf32> to vector<8x8xbf16>
    %61 = vector.extract_strided_slice %14 {offsets = [0, 80], sizes = [8, 8], strides = [1, 1]} : vector<8x96xf32> to vector<8x8xf32>
    %62 = arith.truncf %61 : vector<8x8xf32> to vector<8x8xbf16>
    %cst_21 = arith.constant dense<0.000000e+00> : vector<8x8xf32>
    %63 = tpu.matmul %58, %60, %cst_21 {dimension_numbers = #tpu.dot_dimension_numbers<[1], [1], [0], [0], [0, 0, 1, 0], [], []>} : vector<8x8xbf16>, vector<8x8xbf16>, vector<8x8xf32> -> vector<8x8xf32>
    %cst_22 = arith.constant 0.353553385 : f32
    %64 = vector.broadcast %cst_22 : f32 to vector<8x8xf32>
    %65 = arith.mulf %63, %64 : vector<8x8xf32>
    %cst_23 = arith.constant dense<0xFF800000> : vector<8xf32>
    %66 = vector.multi_reduction <maximumf>, %65, %cst_23 [1] : vector<8x8xf32> to vector<8xf32>
    %67 = vector.shape_cast %66 : vector<8xf32> to vector<8x1xf32>
    %68 = vector.broadcast %67 : vector<8x1xf32> to vector<8x8xf32>
    %69 = arith.subf %65, %68 : vector<8x8xf32>
    %70 = math.exp %69 : vector<8x8xf32>
    %cst_24 = arith.constant dense<0.000000e+00> : vector<8xf32>
    %71 = vector.multi_reduction <add>, %70, %cst_24 [1] : vector<8x8xf32> to vector<8xf32>
    %72 = vector.shape_cast %71 : vector<8xf32> to vector<8x1xf32>
    %73 = arith.truncf %70 : vector<8x8xf32> to vector<8x8xbf16>
    %cst_25 = arith.constant dense<0.000000e+00> : vector<8x8xf32>
    %74 = tpu.matmul %73, %62, %cst_25 {dimension_numbers = #tpu.dot_dimension_numbers<[1], [0], [0], [1], [0, 0, 1, 1], [], []>} : vector<8x8xbf16>, vector<8x8xbf16>, vector<8x8xf32> -> vector<8x8xf32>
    %75 = tpu.reciprocal %72 {approx = true} : vector<8x1xf32> -> vector<8x1xf32>
    %76 = vector.broadcast %75 : vector<8x1xf32> to vector<8x8xf32>
    %77 = arith.mulf %74, %76 : vector<8x8xf32>
    %78 = vector.extract_strided_slice %14 {offsets = [0, 24], sizes = [8, 8], strides = [1, 1]} : vector<8x96xf32> to vector<8x8xf32>
    %79 = arith.truncf %78 : vector<8x8xf32> to vector<8x8xbf16>
    %80 = vector.extract_strided_slice %14 {offsets = [0, 56], sizes = [8, 8], strides = [1, 1]} : vector<8x96xf32> to vector<8x8xf32>
    %81 = arith.truncf %80 : vector<8x8xf32> to vector<8x8xbf16>
    %82 = vector.extract_strided_slice %14 {offsets = [0, 88], sizes = [8, 8], strides = [1, 1]} : vector<8x96xf32> to vector<8x8xf32>
    %83 = arith.truncf %82 : vector<8x8xf32> to vector<8x8xbf16>
    %cst_26 = arith.constant dense<0.000000e+00> : vector<8x8xf32>
    %84 = tpu.matmul %79, %81, %cst_26 {dimension_numbers = #tpu.dot_dimension_numbers<[1], [1], [0], [0], [0, 0, 1, 0], [], []>} : vector<8x8xbf16>, vector<8x8xbf16>, vector<8x8xf32> -> vector<8x8xf32>
    %cst_27 = arith.constant 0.353553385 : f32
    %85 = vector.broadcast %cst_27 : f32 to vector<8x8xf32>
    %86 = arith.mulf %84, %85 : vector<8x8xf32>
    %cst_28 = arith.constant dense<0xFF800000> : vector<8xf32>
    %87 = vector.multi_reduction <maximumf>, %86, %cst_28 [1] : vector<8x8xf32> to vector<8xf32>
    %88 = vector.shape_cast %87 : vector<8xf32> to vector<8x1xf32>
    %89 = vector.broadcast %88 : vector<8x1xf32> to vector<8x8xf32>
    %90 = arith.subf %86, %89 : vector<8x8xf32>
    %91 = math.exp %90 : vector<8x8xf32>
    %cst_29 = arith.constant dense<0.000000e+00> : vector<8xf32>
    %92 = vector.multi_reduction <add>, %91, %cst_29 [1] : vector<8x8xf32> to vector<8xf32>
    %93 = vector.shape_cast %92 : vector<8xf32> to vector<8x1xf32>
    %94 = arith.truncf %91 : vector<8x8xf32> to vector<8x8xbf16>
    %cst_30 = arith.constant dense<0.000000e+00> : vector<8x8xf32>
    %95 = tpu.matmul %94, %83, %cst_30 {dimension_numbers = #tpu.dot_dimension_numbers<[1], [0], [0], [1], [0, 0, 1, 1], [], []>} : vector<8x8xbf16>, vector<8x8xbf16>, vector<8x8xf32> -> vector<8x8xf32>
    %96 = tpu.reciprocal %93 {approx = true} : vector<8x1xf32> -> vector<8x1xf32>
    %97 = vector.broadcast %96 : vector<8x1xf32> to vector<8x8xf32>
    %98 = arith.mulf %95, %97 : vector<8x8xf32>
    %99 = tpu.concatenate %35, %56, %77, %98 in 1 : vector<8x8xf32>, vector<8x8xf32>, vector<8x8xf32>, vector<8x8xf32> -> vector<8x32xf32>
    %100 = arith.truncf %99 : vector<8x32xf32> to vector<8x32xbf16>
    %c0_31 = arith.constant 0 : index
    %c0_32 = arith.constant 0 : index
    %101 = vector.load %arg6[%c0_31, %c0_32] : memref<32x32xf32, #tpu.memory_space<vmem>>, vector<32x32xf32>
    %102 = arith.truncf %101 : vector<32x32xf32> to vector<32x32xbf16>
    %cst_33 = arith.constant dense<0.000000e+00> : vector<8x32xf32>
    %103 = tpu.matmul %100, %102, %cst_33 {dimension_numbers = #tpu.dot_dimension_numbers<[1], [0], [0], [1], [0, 0, 1, 1], [], []>} : vector<8x32xbf16>, vector<32x32xbf16>, vector<8x32xf32> -> vector<8x32xf32>
    %c0_34 = arith.constant 0 : index
    %c0_35 = arith.constant 0 : index
    %104 = vector.load %arg7[%c0_34, %c0_35] : memref<1x32xf32, #tpu.memory_space<vmem>>, vector<1x32xf32>
    %105 = vector.broadcast %104 : vector<1x32xf32> to vector<8x32xf32>
    %106 = arith.addf %103, %105 : vector<8x32xf32>
    %107 = arith.addf %1, %106 : vector<8x32xf32>
    %c0_36 = arith.constant 0 : index
    %c0_37 = arith.constant 0 : index
    %108 = vector.load %arg8[%c0_36, %c0_37] : memref<1x32xf32, #tpu.memory_space<vmem>>, vector<1x32xf32>
    %c0_38 = arith.constant 0 : index
    %c0_39 = arith.constant 0 : index
    %109 = vector.load %arg9[%c0_38, %c0_39] : memref<1x32xf32, #tpu.memory_space<vmem>>, vector<1x32xf32>
    %cst_40 = arith.constant dense<0.000000e+00> : vector<8xf32>
    %110 = vector.multi_reduction <add>, %107, %cst_40 [1] : vector<8x32xf32> to vector<8xf32>
    %111 = vector.shape_cast %110 : vector<8xf32> to vector<8x1xf32>
    %cst_41 = arith.constant 3.200000e+01 : f32
    %112 = vector.broadcast %cst_41 : f32 to vector<8x1xf32>
    %113 = arith.divf %111, %112 : vector<8x1xf32>
    %114 = vector.broadcast %113 : vector<8x1xf32> to vector<8x32xf32>
    %115 = arith.subf %107, %114 : vector<8x32xf32>
    %116 = arith.mulf %115, %115 : vector<8x32xf32>
    %cst_42 = arith.constant dense<0.000000e+00> : vector<8xf32>
    %117 = vector.multi_reduction <add>, %116, %cst_42 [1] : vector<8x32xf32> to vector<8xf32>
    %118 = vector.shape_cast %117 : vector<8xf32> to vector<8x1xf32>
    %cst_43 = arith.constant 3.200000e+01 : f32
    %119 = vector.broadcast %cst_43 : f32 to vector<8x1xf32>
    %120 = arith.divf %118, %119 : vector<8x1xf32>
    %121 = vector.broadcast %113 : vector<8x1xf32> to vector<8x32xf32>
    %122 = arith.subf %107, %121 : vector<8x32xf32>
    %cst_44 = arith.constant 9.99999974E-6 : f32
    %123 = vector.broadcast %cst_44 : f32 to vector<8x1xf32>
    %124 = arith.addf %120, %123 : vector<8x1xf32>
    %125 = math.rsqrt %124 : vector<8x1xf32>
    %126 = vector.broadcast %125 : vector<8x1xf32> to vector<8x32xf32>
    %127 = arith.mulf %122, %126 : vector<8x32xf32>
    %128 = vector.broadcast %108 : vector<1x32xf32> to vector<8x32xf32>
    %129 = arith.mulf %127, %128 : vector<8x32xf32>
    %130 = vector.broadcast %109 : vector<1x32xf32> to vector<8x32xf32>
    %131 = arith.addf %129, %130 : vector<8x32xf32>
    %c0_45 = arith.constant 0 : index
    %c0_46 = arith.constant 0 : index
    %c0_47 = arith.constant 0 : index
    %132 = vector.load %arg10[%c0_45, %c0_46, %c0_47] : memref<1x8x32xf32, #tpu.memory_space<vmem>>, vector<1x8x32xf32>
    %133 = vector.shape_cast %132 : vector<1x8x32xf32> to vector<8x32xf32>
    %134 = vector.shape_cast %131 : vector<8x32xf32> to vector<1x8x32xf32>
    tpu.vector_store %arg10[%c0_45, %c0_46, %c0_47], %134 {strides = array<i32>} : memref<1x8x32xf32, #tpu.memory_space<vmem>>, vector<1x8x32xf32>,
    %cst_48 = arith.constant dense<0.000000e+00> : vector<32xf32>
    %135 = vector.multi_reduction <add>, %131, %cst_48 [0] : vector<8x32xf32> to vector<32xf32>
    %136 = vector.shape_cast %135 : vector<32xf32> to vector<1x32xf32>
    %cst_49 = arith.constant 8.000000e+00 : f32
    %137 = vector.broadcast %cst_49 : f32 to vector<1x32xf32>
    %138 = arith.divf %136, %137 : vector<1x32xf32>
    %c0_50 = arith.constant 0 : index
    %c0_51 = arith.constant 0 : index
    %c0_52 = arith.constant 0 : index
    %139 = vector.load %arg11[%c0_50, %c0_51, %c0_52] : memref<1x1x32xf32, #tpu.memory_space<vmem>>, vector<1x1x32xf32>
    %140 = vector.shape_cast %139 : vector<1x1x32xf32> to vector<1x32xf32>
    %141 = vector.shape_cast %138 : vector<1x32xf32> to vector<1x1x32xf32>
    tpu.vector_store %arg11[%c0_50, %c0_51, %c0_52], %141 {strides = array<i32>} : memref<1x1x32xf32, #tpu.memory_space<vmem>>, vector<1x1x32xf32>,
    return
  }
  func.func @transform_0(%arg0: i32) -> (i32, i32, i32) {
    %c0_i32 = arith.constant 0 : i32
    %c0_i32_0 = arith.constant 0 : i32
    %c0_i32_1 = arith.constant 0 : i32
    return %arg0, %c0_i32, %c0_i32_0 : i32, i32, i32
  }
  func.func @transform_1(%arg0: i32) -> (i32, i32, i32) {
    %c0_i32 = arith.constant 0 : i32
    %c0_i32_0 = arith.constant 0 : i32
    %c0_i32_1 = arith.constant 0 : i32
    %c0_i32_2 = arith.constant 0 : i32
    return %c0_i32, %c0_i32_0, %c0_i32_1 : i32, i32, i32
  }
  func.func @transform_2(%arg0: i32) -> (i32, i32) {
    %c0_i32 = arith.constant 0 : i32
    %c0_i32_0 = arith.constant 0 : i32
    %c0_i32_1 = arith.constant 0 : i32
    return %c0_i32, %c0_i32_0 : i32, i32
  }
  func.func @transform_3(%arg0: i32) -> (i32, i32) {
    %c0_i32 = arith.constant 0 : i32
    %c0_i32_0 = arith.constant 0 : i32
    %c0_i32_1 = arith.constant 0 : i32
    return %c0_i32, %c0_i32_0 : i32, i32
  }
  func.func @transform_4(%arg0: i32) -> (i32, i32) {
    %c0_i32 = arith.constant 0 : i32
    %c0_i32_0 = arith.constant 0 : i32
    %c0_i32_1 = arith.constant 0 : i32
    return %c0_i32, %c0_i32_0 : i32, i32
  }
  func.func @transform_5(%arg0: i32) -> (i32, i32) {
    %c0_i32 = arith.constant 0 : i32
    %c0_i32_0 = arith.constant 0 : i32
    %c0_i32_1 = arith.constant 0 : i32
    return %c0_i32, %c0_i32_0 : i32, i32
  }
  func.func @transform_6(%arg0: i32) -> (i32, i32) {
    %c0_i32 = arith.constant 0 : i32
    %c0_i32_0 = arith.constant 0 : i32
    %c0_i32_1 = arith.constant 0 : i32
    return %c0_i32, %c0_i32_0 : i32, i32
  }
  func.func @transform_7(%arg0: i32) -> (i32, i32) {
    %c0_i32 = arith.constant 0 : i32
    %c0_i32_0 = arith.constant 0 : i32
    %c0_i32_1 = arith.constant 0 : i32
    return %c0_i32, %c0_i32_0 : i32, i32
  }
  func.func @transform_8(%arg0: i32) -> (i32, i32) {
    %c0_i32 = arith.constant 0 : i32
    %c0_i32_0 = arith.constant 0 : i32
    %c0_i32_1 = arith.constant 0 : i32
    return %c0_i32, %c0_i32_0 : i32, i32
  }
  func.func @transform_9(%arg0: i32) -> (i32, i32, i32) {
    %c0_i32 = arith.constant 0 : i32
    %c0_i32_0 = arith.constant 0 : i32
    %c0_i32_1 = arith.constant 0 : i32
    return %arg0, %c0_i32, %c0_i32_0 : i32, i32, i32
  }
  func.func @transform_10(%arg0: i32) -> (i32, i32, i32) {
    %c0_i32 = arith.constant 0 : i32
    %c0_i32_0 = arith.constant 0 : i32
    %c0_i32_1 = arith.constant 0 : i32
    return %arg0, %c0_i32, %c0_i32_0 : i32, i32, i32
  }
}

module attributes {stable_mosaic.version = 11 : i64} {
  func.func @_liquid_cells_kernel(%arg0: i32, %arg1: memref<3xi32, #tpu.memory_space<smem>>, %arg2: memref<2x32xf32, #tpu.memory_space<vmem>>, %arg3: memref<1x2x32xf32, #tpu.memory_space<vmem>>, %arg4: memref<1x32x128xf32, #tpu.memory_space<vmem>>, %arg5: memref<1x32x128xf32, #tpu.memory_space<vmem>>, %arg6: memref<1x1x128xf32, #tpu.memory_space<vmem>>, %arg7: memref<1x1x128xf32, #tpu.memory_space<vmem>>, %arg8: memref<1x1x128xf32, #tpu.memory_space<vmem>>, %arg9: memref<1x128x64xf32, #tpu.memory_space<vmem>>, %arg10: memref<1x1x64xf32, #tpu.memory_space<vmem>>, %arg11: memref<1x64x32xf32, #tpu.memory_space<vmem>>, %arg12: memref<1x1x32xf32, #tpu.memory_space<vmem>>, %arg13: memref<1x1x32xf32, #tpu.memory_space<vmem>>, %arg14: memref<1x1x32xf32, #tpu.memory_space<vmem>>, %arg15: memref<1x1x32xf32, #tpu.memory_space<vmem>>, %arg16: memref<1x1x32xf32, #tpu.memory_space<vmem>>, %arg17: memref<1x2x32xf32, #tpu.memory_space<vmem>>, %arg18: memref<2x32xf32, #tpu.memory_space<vmem>>) attributes {dimension_semantics = [#tpu.dimension_semantics<parallel>], iteration_bounds = array<i64: 3>, scalar_prefetch = 1 : i64, scratch_operands = 1 : i64, tpu.core_type = #tpu.core_type<tc>, window_params = [{pipeline_mode = #tpu.pipeline_mode<synchronous>, transform_indices = @transform_0, window_bounds = array<i64: 2, 32>}, {transform_indices = @transform_1, window_bounds = array<i64: 1, 2, 32>}, {transform_indices = @transform_2, window_bounds = array<i64: 1, 32, 128>}, {transform_indices = @transform_3, window_bounds = array<i64: 1, 32, 128>}, {transform_indices = @transform_4, window_bounds = array<i64: 1, 1, 128>}, {transform_indices = @transform_5, window_bounds = array<i64: 1, 1, 128>}, {transform_indices = @transform_6, window_bounds = array<i64: 1, 1, 128>}, {transform_indices = @transform_7, window_bounds = array<i64: 1, 128, 64>}, {transform_indices = @transform_8, window_bounds = array<i64: 1, 1, 64>}, {transform_indices = @transform_9, window_bounds = array<i64: 1, 64, 32>}, {transform_indices = @transform_10, window_bounds = array<i64: 1, 1, 32>}, {transform_indices = @transform_11, window_bounds = array<i64: 1, 1, 32>}, {transform_indices = @transform_12, window_bounds = array<i64: 1, 1, 32>}, {transform_indices = @transform_13, window_bounds = array<i64: 1, 1, 32>}, {transform_indices = @transform_14, window_bounds = array<i64: 1, 1, 32>}, {transform_indices = @transform_15, window_bounds = array<i64: 1, 2, 32>}]} {
    %0 = arith.index_cast %arg0 : i32 to index
    %1 = memref.load %arg1[%0] : memref<3xi32, #tpu.memory_space<smem>>
    %2 = arith.sitofp %1 : i32 to f32
    %cst = arith.constant 1.000000e+00 : f32
    %3 = arith.divf %cst, %2 : f32
    %c0 = arith.constant 0 : index
    %c0_0 = arith.constant 0 : index
    %4 = vector.load %arg2[%c0, %c0_0] : memref<2x32xf32, #tpu.memory_space<vmem>>, vector<2x32xf32>
    %c0_1 = arith.constant 0 : index
    %c0_2 = arith.constant 0 : index
    %c0_3 = arith.constant 0 : index
    %5 = vector.load %arg4[%c0_1, %c0_2, %c0_3] : memref<1x32x128xf32, #tpu.memory_space<vmem>>, vector<1x32x128xf32>
    %6 = vector.shape_cast %5 : vector<1x32x128xf32> to vector<32x128xf32>
    %7 = arith.truncf %6 : vector<32x128xf32> to vector<32x128xbf16>
    %c0_4 = arith.constant 0 : index
    %c0_5 = arith.constant 0 : index
    %c0_6 = arith.constant 0 : index
    %8 = vector.load %arg9[%c0_4, %c0_5, %c0_6] : memref<1x128x64xf32, #tpu.memory_space<vmem>>, vector<1x128x64xf32>
    %9 = vector.shape_cast %8 : vector<1x128x64xf32> to vector<128x64xf32>
    %10 = arith.truncf %9 : vector<128x64xf32> to vector<128x64xbf16>
    %c0_7 = arith.constant 0 : index
    %c0_8 = arith.constant 0 : index
    %c0_9 = arith.constant 0 : index
    %11 = vector.load %arg11[%c0_7, %c0_8, %c0_9] : memref<1x64x32xf32, #tpu.memory_space<vmem>>, vector<1x64x32xf32>
    %12 = vector.shape_cast %11 : vector<1x64x32xf32> to vector<64x32xf32>
    %13 = arith.truncf %12 : vector<64x32xf32> to vector<64x32xbf16>
    %c0_10 = arith.constant 0 : index
    %c0_11 = arith.constant 0 : index
    %c0_12 = arith.constant 0 : index
    %14 = vector.load %arg7[%c0_10, %c0_11, %c0_12] : memref<1x1x128xf32, #tpu.memory_space<vmem>>, vector<1x1x128xf32>
    %15 = vector.shape_cast %14 : vector<1x1x128xf32> to vector<1x128xf32>
    %c0_13 = arith.constant 0 : index
    %c0_14 = arith.constant 0 : index
    %c0_15 = arith.constant 0 : index
    %16 = vector.load %arg8[%c0_13, %c0_14, %c0_15] : memref<1x1x128xf32, #tpu.memory_space<vmem>>, vector<1x1x128xf32>
    %17 = vector.shape_cast %16 : vector<1x1x128xf32> to vector<1x128xf32>
    %c0_16 = arith.constant 0 : index
    %c0_17 = arith.constant 0 : index
    %c0_18 = arith.constant 0 : index
    %18 = vector.load %arg10[%c0_16, %c0_17, %c0_18] : memref<1x1x64xf32, #tpu.memory_space<vmem>>, vector<1x1x64xf32>
    %19 = vector.shape_cast %18 : vector<1x1x64xf32> to vector<1x64xf32>
    %c0_19 = arith.constant 0 : index
    %c0_20 = arith.constant 0 : index
    %c0_21 = arith.constant 0 : index
    %20 = vector.load %arg12[%c0_19, %c0_20, %c0_21] : memref<1x1x32xf32, #tpu.memory_space<vmem>>, vector<1x1x32xf32>
    %21 = vector.shape_cast %20 : vector<1x1x32xf32> to vector<1x32xf32>
    %c0_22 = arith.constant 0 : index
    %c0_23 = arith.constant 0 : index
    %c0_24 = arith.constant 0 : index
    %22 = vector.load %arg13[%c0_22, %c0_23, %c0_24] : memref<1x1x32xf32, #tpu.memory_space<vmem>>, vector<1x1x32xf32>
    %23 = vector.shape_cast %22 : vector<1x1x32xf32> to vector<1x32xf32>
    %c0_25 = arith.constant 0 : index
    %c0_26 = arith.constant 0 : index
    %c0_27 = arith.constant 0 : index
    %24 = vector.load %arg14[%c0_25, %c0_26, %c0_27] : memref<1x1x32xf32, #tpu.memory_space<vmem>>, vector<1x1x32xf32>
    %25 = vector.shape_cast %24 : vector<1x1x32xf32> to vector<1x32xf32>
    %26 = arith.truncf %4 : vector<2x32xf32> to vector<2x32xbf16>
    %c0_28 = arith.constant 0 : index
    %c0_29 = arith.constant 0 : index
    %c0_30 = arith.constant 0 : index
    %27 = vector.load %arg5[%c0_28, %c0_29, %c0_30] : memref<1x32x128xf32, #tpu.memory_space<vmem>>, vector<1x32x128xf32>
    %28 = vector.shape_cast %27 : vector<1x32x128xf32> to vector<32x128xf32>
    %29 = arith.truncf %28 : vector<32x128xf32> to vector<32x128xbf16>
    %cst_31 = arith.constant dense<0.000000e+00> : vector<2x128xf32>
    %30 = tpu.matmul %26, %29, %cst_31 {dimension_numbers = #tpu.dot_dimension_numbers<[1], [0], [0], [1], [0, 0, 1, 1], [], []>} : vector<2x32xbf16>, vector<32x128xbf16>, vector<2x128xf32> -> vector<2x128xf32>
    %c0_32 = arith.constant 0 : index
    %c0_33 = arith.constant 0 : index
    %c0_34 = arith.constant 0 : index
    %31 = vector.load %arg6[%c0_32, %c0_33, %c0_34] : memref<1x1x128xf32, #tpu.memory_space<vmem>>, vector<1x1x128xf32>
    %32 = vector.shape_cast %31 : vector<1x1x128xf32> to vector<1x128xf32>
    %33 = vector.broadcast %32 : vector<1x128xf32> to vector<2x128xf32>
    %34 = arith.addf %30, %33 : vector<2x128xf32>
    %c0_35 = arith.constant 0 : index
    %c0_36 = arith.constant 0 : index
    %c0_37 = arith.constant 0 : index
    %35 = vector.load %arg3[%c0_35, %c0_36, %c0_37] : memref<1x2x32xf32, #tpu.memory_space<vmem>>, vector<1x2x32xf32>
    %36 = vector.shape_cast %35 : vector<1x2x32xf32> to vector<2x32xf32>
    %c0_38 = arith.constant 0 : index
    %c0_39 = arith.constant 0 : index
    %37 = vector.load %arg18[%c0_38, %c0_39] : memref<2x32xf32, #tpu.memory_space<vmem>>, vector<2x32xf32>
    tpu.vector_store %arg18[%c0_38, %c0_39], %36 {strides = array<i32>} : memref<2x32xf32, #tpu.memory_space<vmem>>, vector<2x32xf32>,
    %c0_i32 = arith.constant 0 : i32
    %38 = arith.subi %1, %c0_i32 : i32
    %c1_i32 = arith.constant 1 : i32
    %c1_i32_40 = arith.constant 1 : i32
    %39 = arith.subi %c1_i32, %c1_i32_40 : i32
    %40 = arith.addi %38, %39 : i32
    %c1_i32_41 = arith.constant 1 : i32
    %41 = arith.divsi %40, %c1_i32_41 : i32
    %c1_i32_42 = arith.constant 1 : i32
    %c0_i32_43 = arith.constant 0 : i32
    %c0_i32_44 = arith.constant 0 : i32
    %42 = arith.subi %41, %c0_i32_44 : i32
    %43 = arith.addi %c0_i32_44, %42 : i32
    %c1_i32_45 = arith.constant 1 : i32
    scf.for %arg19 = %c0_i32_44 to %43 step %c1_i32_45  : i32 {
      %74 = arith.muli %arg19, %c1_i32_42 : i32
      %75 = arith.addi %c0_i32_43, %74 : i32
      %c0_62 = arith.constant 0 : index
      %c0_63 = arith.constant 0 : index
      %76 = vector.load %arg18[%c0_62, %c0_63] : memref<2x32xf32, #tpu.memory_space<vmem>>, vector<2x32xf32>
      %77 = arith.truncf %76 : vector<2x32xf32> to vector<2x32xbf16>
      %cst_64 = arith.constant dense<0.000000e+00> : vector<2x128xf32>
      %78 = tpu.matmul %77, %7, %cst_64 {dimension_numbers = #tpu.dot_dimension_numbers<[1], [0], [0], [1], [0, 0, 1, 1], [], []>} : vector<2x32xbf16>, vector<32x128xbf16>, vector<2x128xf32> -> vector<2x128xf32>
      %79 = arith.addf %78, %34 : vector<2x128xf32>
      %cst_65 = arith.constant dense<0.000000e+00> : vector<2xf32>
      %80 = vector.multi_reduction <add>, %79, %cst_65 [1] : vector<2x128xf32> to vector<2xf32>
      %81 = vector.shape_cast %80 : vector<2xf32> to vector<2x1xf32>
      %cst_66 = arith.constant 1.280000e+02 : f32
      %82 = vector.broadcast %cst_66 : f32 to vector<2x1xf32>
      %83 = arith.divf %81, %82 : vector<2x1xf32>
      %84 = vector.broadcast %83 : vector<2x1xf32> to vector<2x128xf32>
      %85 = arith.subf %79, %84 : vector<2x128xf32>
      %86 = arith.mulf %85, %85 : vector<2x128xf32>
      %cst_67 = arith.constant dense<0.000000e+00> : vector<2xf32>
      %87 = vector.multi_reduction <add>, %86, %cst_67 [1] : vector<2x128xf32> to vector<2xf32>
      %88 = vector.shape_cast %87 : vector<2xf32> to vector<2x1xf32>
      %cst_68 = arith.constant 1.280000e+02 : f32
      %89 = vector.broadcast %cst_68 : f32 to vector<2x1xf32>
      %90 = arith.divf %88, %89 : vector<2x1xf32>
      %91 = vector.broadcast %83 : vector<2x1xf32> to vector<2x128xf32>
      %92 = arith.subf %79, %91 : vector<2x128xf32>
      %cst_69 = arith.constant 9.99999974E-6 : f32
      %93 = vector.broadcast %cst_69 : f32 to vector<2x1xf32>
      %94 = arith.addf %90, %93 : vector<2x1xf32>
      %95 = math.rsqrt %94 : vector<2x1xf32>
      %96 = vector.broadcast %95 : vector<2x1xf32> to vector<2x128xf32>
      %97 = arith.mulf %92, %96 : vector<2x128xf32>
      %98 = vector.broadcast %15 : vector<1x128xf32> to vector<2x128xf32>
      %99 = arith.mulf %97, %98 : vector<2x128xf32>
      %100 = vector.broadcast %17 : vector<1x128xf32> to vector<2x128xf32>
      %101 = arith.addf %99, %100 : vector<2x128xf32>
      %cst_70 = arith.constant 5.000000e-01 : f32
      %102 = vector.broadcast %cst_70 : f32 to vector<2x128xf32>
      %103 = arith.mulf %102, %101 : vector<2x128xf32>
      %cst_71 = arith.constant 4.471500e-02 : f32
      %104 = vector.broadcast %cst_71 : f32 to vector<2x128xf32>
      %105 = arith.mulf %104, %101 : vector<2x128xf32>
      %106 = arith.mulf %105, %101 : vector<2x128xf32>
      %107 = arith.mulf %106, %101 : vector<2x128xf32>
      %108 = arith.addf %101, %107 : vector<2x128xf32>
      %cst_72 = arith.constant 0.797884583 : f32
      %109 = vector.broadcast %cst_72 : f32 to vector<2x128xf32>
      %110 = arith.mulf %109, %108 : vector<2x128xf32>
      %111 = math.tanh %110 : vector<2x128xf32>
      %cst_73 = arith.constant 1.000000e+00 : f32
      %112 = vector.broadcast %cst_73 : f32 to vector<2x128xf32>
      %113 = arith.addf %112, %111 : vector<2x128xf32>
      %114 = arith.mulf %103, %113 : vector<2x128xf32>
      %115 = arith.truncf %114 : vector<2x128xf32> to vector<2x128xbf16>
      %cst_74 = arith.constant dense<0.000000e+00> : vector<2x64xf32>
      %116 = tpu.matmul %115, %10, %cst_74 {dimension_numbers = #tpu.dot_dimension_numbers<[1], [0], [0], [1], [0, 0, 1, 1], [], []>} : vector<2x128xbf16>, vector<128x64xbf16>, vector<2x64xf32> -> vector<2x64xf32>
      %117 = vector.broadcast %19 : vector<1x64xf32> to vector<2x64xf32>
      %118 = arith.addf %116, %117 : vector<2x64xf32>
      %cst_75 = arith.constant 5.000000e-01 : f32
      %119 = vector.broadcast %cst_75 : f32 to vector<2x64xf32>
      %120 = arith.mulf %119, %118 : vector<2x64xf32>
      %cst_76 = arith.constant 4.471500e-02 : f32
      %121 = vector.broadcast %cst_76 : f32 to vector<2x64xf32>
      %122 = arith.mulf %121, %118 : vector<2x64xf32>
      %123 = arith.mulf %122, %118 : vector<2x64xf32>
      %124 = arith.mulf %123, %118 : vector<2x64xf32>
      %125 = arith.addf %118, %124 : vector<2x64xf32>
      %cst_77 = arith.constant 0.797884583 : f32
      %126 = vector.broadcast %cst_77 : f32 to vector<2x64xf32>
      %127 = arith.mulf %126, %125 : vector<2x64xf32>
      %128 = math.tanh %127 : vector<2x64xf32>
      %cst_78 = arith.constant 1.000000e+00 : f32
      %129 = vector.broadcast %cst_78 : f32 to vector<2x64xf32>
      %130 = arith.addf %129, %128 : vector<2x64xf32>
      %131 = arith.mulf %120, %130 : vector<2x64xf32>
      %132 = arith.truncf %131 : vector<2x64xf32> to vector<2x64xbf16>
      %cst_79 = arith.constant dense<0.000000e+00> : vector<2x32xf32>
      %133 = tpu.matmul %132, %13, %cst_79 {dimension_numbers = #tpu.dot_dimension_numbers<[1], [0], [0], [1], [0, 0, 1, 1], [], []>} : vector<2x64xbf16>, vector<64x32xbf16>, vector<2x32xf32> -> vector<2x32xf32>
      %134 = vector.broadcast %21 : vector<1x32xf32> to vector<2x32xf32>
      %135 = arith.addf %133, %134 : vector<2x32xf32>
      %136 = arith.sitofp %75 : i32 to f32
      %137 = arith.mulf %136, %3 : f32
      %138 = vector.broadcast %137 : f32 to vector<1x32xf32>
      %139 = arith.mulf %138, %23 : vector<1x32xf32>
      %140 = arith.addf %139, %25 : vector<1x32xf32>
      %141 = math.tanh %140 : vector<1x32xf32>
      %142 = vector.broadcast %3 : f32 to vector<2x32xf32>
      %143 = arith.mulf %142, %135 : vector<2x32xf32>
      %144 = vector.broadcast %141 : vector<1x32xf32> to vector<2x32xf32>
      %145 = arith.mulf %143, %144 : vector<2x32xf32>
      %146 = arith.addf %76, %145 : vector<2x32xf32>
      %c0_80 = arith.constant 0 : index
      %c0_81 = arith.constant 0 : index
      %147 = vector.load %arg18[%c0_80, %c0_81] : memref<2x32xf32, #tpu.memory_space<vmem>>, vector<2x32xf32>
      tpu.vector_store %arg18[%c0_80, %c0_81], %146 {strides = array<i32>} : memref<2x32xf32, #tpu.memory_space<vmem>>, vector<2x32xf32>,
    }
    %c0_46 = arith.constant 0 : index
    %c0_47 = arith.constant 0 : index
    %44 = vector.load %arg18[%c0_46, %c0_47] : memref<2x32xf32, #tpu.memory_space<vmem>>, vector<2x32xf32>
    %c0_48 = arith.constant 0 : index
    %c0_49 = arith.constant 0 : index
    %c0_50 = arith.constant 0 : index
    %45 = vector.load %arg15[%c0_48, %c0_49, %c0_50] : memref<1x1x32xf32, #tpu.memory_space<vmem>>, vector<1x1x32xf32>
    %46 = vector.shape_cast %45 : vector<1x1x32xf32> to vector<1x32xf32>
    %c0_51 = arith.constant 0 : index
    %c0_52 = arith.constant 0 : index
    %c0_53 = arith.constant 0 : index
    %47 = vector.load %arg16[%c0_51, %c0_52, %c0_53] : memref<1x1x32xf32, #tpu.memory_space<vmem>>, vector<1x1x32xf32>
    %48 = vector.shape_cast %47 : vector<1x1x32xf32> to vector<1x32xf32>
    %cst_54 = arith.constant dense<0.000000e+00> : vector<2xf32>
    %49 = vector.multi_reduction <add>, %44, %cst_54 [1] : vector<2x32xf32> to vector<2xf32>
    %50 = vector.shape_cast %49 : vector<2xf32> to vector<2x1xf32>
    %cst_55 = arith.constant 3.200000e+01 : f32
    %51 = vector.broadcast %cst_55 : f32 to vector<2x1xf32>
    %52 = arith.divf %50, %51 : vector<2x1xf32>
    %53 = vector.broadcast %52 : vector<2x1xf32> to vector<2x32xf32>
    %54 = arith.subf %44, %53 : vector<2x32xf32>
    %55 = arith.mulf %54, %54 : vector<2x32xf32>
    %cst_56 = arith.constant dense<0.000000e+00> : vector<2xf32>
    %56 = vector.multi_reduction <add>, %55, %cst_56 [1] : vector<2x32xf32> to vector<2xf32>
    %57 = vector.shape_cast %56 : vector<2xf32> to vector<2x1xf32>
    %cst_57 = arith.constant 3.200000e+01 : f32
    %58 = vector.broadcast %cst_57 : f32 to vector<2x1xf32>
    %59 = arith.divf %57, %58 : vector<2x1xf32>
    %60 = vector.broadcast %52 : vector<2x1xf32> to vector<2x32xf32>
    %61 = arith.subf %44, %60 : vector<2x32xf32>
    %cst_58 = arith.constant 9.99999974E-6 : f32
    %62 = vector.broadcast %cst_58 : f32 to vector<2x1xf32>
    %63 = arith.addf %59, %62 : vector<2x1xf32>
    %64 = math.rsqrt %63 : vector<2x1xf32>
    %65 = vector.broadcast %64 : vector<2x1xf32> to vector<2x32xf32>
    %66 = arith.mulf %61, %65 : vector<2x32xf32>
    %67 = vector.broadcast %46 : vector<1x32xf32> to vector<2x32xf32>
    %68 = arith.mulf %66, %67 : vector<2x32xf32>
    %69 = vector.broadcast %48 : vector<1x32xf32> to vector<2x32xf32>
    %70 = arith.addf %68, %69 : vector<2x32xf32>
    %c0_59 = arith.constant 0 : index
    %c0_60 = arith.constant 0 : index
    %c0_61 = arith.constant 0 : index
    %71 = vector.load %arg17[%c0_59, %c0_60, %c0_61] : memref<1x2x32xf32, #tpu.memory_space<vmem>>, vector<1x2x32xf32>
    %72 = vector.shape_cast %71 : vector<1x2x32xf32> to vector<2x32xf32>
    %73 = vector.shape_cast %70 : vector<2x32xf32> to vector<1x2x32xf32>
    tpu.vector_store %arg17[%c0_59, %c0_60, %c0_61], %73 {strides = array<i32>} : memref<1x2x32xf32, #tpu.memory_space<vmem>>, vector<1x2x32xf32>,
    return
  }
  func.func @transform_0(%arg0: i32, %arg1: memref<3xi32, #tpu.memory_space<smem>>) -> (i32, i32) {
    %c0_i32 = arith.constant 0 : i32
    %c0_i32_0 = arith.constant 0 : i32
    %c0_i32_1 = arith.constant 0 : i32
    return %c0_i32, %c0_i32_0 : i32, i32
  }
  func.func @transform_1(%arg0: i32, %arg1: memref<3xi32, #tpu.memory_space<smem>>) -> (i32, i32, i32) {
    %c0_i32 = arith.constant 0 : i32
    %c0_i32_0 = arith.constant 0 : i32
    %c0_i32_1 = arith.constant 0 : i32
    return %arg0, %c0_i32, %c0_i32_0 : i32, i32, i32
  }
  func.func @transform_2(%arg0: i32, %arg1: memref<3xi32, #tpu.memory_space<smem>>) -> (i32, i32, i32) {
    %c0_i32 = arith.constant 0 : i32
    %c0_i32_0 = arith.constant 0 : i32
    %c0_i32_1 = arith.constant 0 : i32
    return %arg0, %c0_i32, %c0_i32_0 : i32, i32, i32
  }
  func.func @transform_3(%arg0: i32, %arg1: memref<3xi32, #tpu.memory_space<smem>>) -> (i32, i32, i32) {
    %c0_i32 = arith.constant 0 : i32
    %c0_i32_0 = arith.constant 0 : i32
    %c0_i32_1 = arith.constant 0 : i32
    return %arg0, %c0_i32, %c0_i32_0 : i32, i32, i32
  }
  func.func @transform_4(%arg0: i32, %arg1: memref<3xi32, #tpu.memory_space<smem>>) -> (i32, i32, i32) {
    %c0_i32 = arith.constant 0 : i32
    %c0_i32_0 = arith.constant 0 : i32
    %c0_i32_1 = arith.constant 0 : i32
    return %arg0, %c0_i32, %c0_i32_0 : i32, i32, i32
  }
  func.func @transform_5(%arg0: i32, %arg1: memref<3xi32, #tpu.memory_space<smem>>) -> (i32, i32, i32) {
    %c0_i32 = arith.constant 0 : i32
    %c0_i32_0 = arith.constant 0 : i32
    %c0_i32_1 = arith.constant 0 : i32
    return %arg0, %c0_i32, %c0_i32_0 : i32, i32, i32
  }
  func.func @transform_6(%arg0: i32, %arg1: memref<3xi32, #tpu.memory_space<smem>>) -> (i32, i32, i32) {
    %c0_i32 = arith.constant 0 : i32
    %c0_i32_0 = arith.constant 0 : i32
    %c0_i32_1 = arith.constant 0 : i32
    return %arg0, %c0_i32, %c0_i32_0 : i32, i32, i32
  }
  func.func @transform_7(%arg0: i32, %arg1: memref<3xi32, #tpu.memory_space<smem>>) -> (i32, i32, i32) {
    %c0_i32 = arith.constant 0 : i32
    %c0_i32_0 = arith.constant 0 : i32
    %c0_i32_1 = arith.constant 0 : i32
    return %arg0, %c0_i32, %c0_i32_0 : i32, i32, i32
  }
  func.func @transform_8(%arg0: i32, %arg1: memref<3xi32, #tpu.memory_space<smem>>) -> (i32, i32, i32) {
    %c0_i32 = arith.constant 0 : i32
    %c0_i32_0 = arith.constant 0 : i32
    %c0_i32_1 = arith.constant 0 : i32
    return %arg0, %c0_i32, %c0_i32_0 : i32, i32, i32
  }
  func.func @transform_9(%arg0: i32, %arg1: memref<3xi32, #tpu.memory_space<smem>>) -> (i32, i32, i32) {
    %c0_i32 = arith.constant 0 : i32
    %c0_i32_0 = arith.constant 0 : i32
    %c0_i32_1 = arith.constant 0 : i32
    return %arg0, %c0_i32, %c0_i32_0 : i32, i32, i32
  }
  func.func @transform_10(%arg0: i32, %arg1: memref<3xi32, #tpu.memory_space<smem>>) -> (i32, i32, i32) {
    %c0_i32 = arith.constant 0 : i32
    %c0_i32_0 = arith.constant 0 : i32
    %c0_i32_1 = arith.constant 0 : i32
    return %arg0, %c0_i32, %c0_i32_0 : i32, i32, i32
  }
  func.func @transform_11(%arg0: i32, %arg1: memref<3xi32, #tpu.memory_space<smem>>) -> (i32, i32, i32) {
    %c0_i32 = arith.constant 0 : i32
    %c0_i32_0 = arith.constant 0 : i32
    %c0_i32_1 = arith.constant 0 : i32
    return %arg0, %c0_i32, %c0_i32_0 : i32, i32, i32
  }
  func.func @transform_12(%arg0: i32, %arg1: memref<3xi32, #tpu.memory_space<smem>>) -> (i32, i32, i32) {
    %c0_i32 = arith.constant 0 : i32
    %c0_i32_0 = arith.constant 0 : i32
    %c0_i32_1 = arith.constant 0 : i32
    return %arg0, %c0_i32, %c0_i32_0 : i32, i32, i32
  }
  func.func @transform_13(%arg0: i32, %arg1: memref<3xi32, #tpu.memory_space<smem>>) -> (i32, i32, i32) {
    %c0_i32 = arith.constant 0 : i32
    %c0_i32_0 = arith.constant 0 : i32
    %c0_i32_1 = arith.constant 0 : i32
    return %arg0, %c0_i32, %c0_i32_0 : i32, i32, i32
  }
  func.func @transform_14(%arg0: i32, %arg1: memref<3xi32, #tpu.memory_space<smem>>) -> (i32, i32, i32) {
    %c0_i32 = arith.constant 0 : i32
    %c0_i32_0 = arith.constant 0 : i32
    %c0_i32_1 = arith.constant 0 : i32
    return %arg0, %c0_i32, %c0_i32_0 : i32, i32, i32
  }
  func.func @transform_15(%arg0: i32, %arg1: memref<3xi32, #tpu.memory_space<smem>>) -> (i32, i32, i32) {
    %c0_i32 = arith.constant 0 : i32
    %c0_i32_0 = arith.constant 0 : i32
    %c0_i32_1 = arith.constant 0 : i32
    return %arg0, %c0_i32, %c0_i32_0 : i32, i32, i32
  }
}

module attributes {stable_mosaic.version = 11 : i64} {
  func.func @_norm2_router_kernel(%arg0: i32, %arg1: memref<16x32xf32, #tpu.memory_space<vmem>>, %arg2: memref<16x32xf32, #tpu.memory_space<vmem>>, %arg3: memref<1x32xf32, #tpu.memory_space<vmem>>, %arg4: memref<1x32xf32, #tpu.memory_space<vmem>>, %arg5: memref<32x128xf32, #tpu.memory_space<vmem>>, %arg6: memref<32x128xf32, #tpu.memory_space<vmem>>, %arg7: memref<1x128xf32, #tpu.memory_space<vmem>>, %arg8: memref<16x32xf32, #tpu.memory_space<vmem>>, %arg9: memref<16x128xf32, #tpu.memory_space<vmem>>) attributes {dimension_semantics = [#tpu.dimension_semantics<parallel>], iteration_bounds = array<i64: 1>, scalar_prefetch = 0 : i64, scratch_operands = 0 : i64, tpu.core_type = #tpu.core_type<tc>, window_params = [{transform_indices = @transform_0, window_bounds = array<i64: 16, 32>}, {transform_indices = @transform_1, window_bounds = array<i64: 16, 32>}, {pipeline_mode = #tpu.pipeline_mode<synchronous>, transform_indices = @transform_2, window_bounds = array<i64: 1, 32>}, {pipeline_mode = #tpu.pipeline_mode<synchronous>, transform_indices = @transform_3, window_bounds = array<i64: 1, 32>}, {pipeline_mode = #tpu.pipeline_mode<synchronous>, transform_indices = @transform_4, window_bounds = array<i64: 32, 128>}, {pipeline_mode = #tpu.pipeline_mode<synchronous>, transform_indices = @transform_5, window_bounds = array<i64: 32, 128>}, {pipeline_mode = #tpu.pipeline_mode<synchronous>, transform_indices = @transform_6, window_bounds = array<i64: 1, 128>}, {transform_indices = @transform_7, window_bounds = array<i64: 16, 32>}, {transform_indices = @transform_8, window_bounds = array<i64: 16, 128>}]} {
    %c0 = arith.constant 0 : index
    %c0_0 = arith.constant 0 : index
    %0 = vector.load %arg2[%c0, %c0_0] : memref<16x32xf32, #tpu.memory_space<vmem>>, vector<16x32xf32>
    %c0_1 = arith.constant 0 : index
    %c0_2 = arith.constant 0 : index
    %1 = vector.load %arg1[%c0_1, %c0_2] : memref<16x32xf32, #tpu.memory_space<vmem>>, vector<16x32xf32>
    %2 = arith.addf %1, %0 : vector<16x32xf32>
    %c0_3 = arith.constant 0 : index
    %c0_4 = arith.constant 0 : index
    %3 = vector.load %arg3[%c0_3, %c0_4] : memref<1x32xf32, #tpu.memory_space<vmem>>, vector<1x32xf32>
    %c0_5 = arith.constant 0 : index
    %c0_6 = arith.constant 0 : index
    %4 = vector.load %arg4[%c0_5, %c0_6] : memref<1x32xf32, #tpu.memory_space<vmem>>, vector<1x32xf32>
    %cst = arith.constant dense<0.000000e+00> : vector<16xf32>
    %5 = vector.multi_reduction <add>, %2, %cst [1] : vector<16x32xf32> to vector<16xf32>
    %6 = vector.shape_cast %5 : vector<16xf32> to vector<16x1xf32>
    %cst_7 = arith.constant 3.200000e+01 : f32
    %7 = vector.broadcast %cst_7 : f32 to vector<16x1xf32>
    %8 = arith.divf %6, %7 : vector<16x1xf32>
    %9 = vector.broadcast %8 : vector<16x1xf32> to vector<16x32xf32>
    %10 = arith.subf %2, %9 : vector<16x32xf32>
    %11 = arith.mulf %10, %10 : vector<16x32xf32>
    %cst_8 = arith.constant dense<0.000000e+00> : vector<16xf32>
    %12 = vector.multi_reduction <add>, %11, %cst_8 [1] : vector<16x32xf32> to vector<16xf32>
    %13 = vector.shape_cast %12 : vector<16xf32> to vector<16x1xf32>
    %cst_9 = arith.constant 3.200000e+01 : f32
    %14 = vector.broadcast %cst_9 : f32 to vector<16x1xf32>
    %15 = arith.divf %13, %14 : vector<16x1xf32>
    %16 = vector.broadcast %8 : vector<16x1xf32> to vector<16x32xf32>
    %17 = arith.subf %2, %16 : vector<16x32xf32>
    %cst_10 = arith.constant 9.99999974E-6 : f32
    %18 = vector.broadcast %cst_10 : f32 to vector<16x1xf32>
    %19 = arith.addf %15, %18 : vector<16x1xf32>
    %20 = math.rsqrt %19 : vector<16x1xf32>
    %21 = vector.broadcast %20 : vector<16x1xf32> to vector<16x32xf32>
    %22 = arith.mulf %17, %21 : vector<16x32xf32>
    %23 = vector.broadcast %3 : vector<1x32xf32> to vector<16x32xf32>
    %24 = arith.mulf %22, %23 : vector<16x32xf32>
    %25 = vector.broadcast %4 : vector<1x32xf32> to vector<16x32xf32>
    %26 = arith.addf %24, %25 : vector<16x32xf32>
    %c0_11 = arith.constant 0 : index
    %c0_12 = arith.constant 0 : index
    %27 = vector.load %arg8[%c0_11, %c0_12] : memref<16x32xf32, #tpu.memory_space<vmem>>, vector<16x32xf32>
    tpu.vector_store %arg8[%c0_11, %c0_12], %26 {strides = array<i32>} : memref<16x32xf32, #tpu.memory_space<vmem>>, vector<16x32xf32>,
    %28 = arith.truncf %26 : vector<16x32xf32> to vector<16x32xbf16>
    %c0_13 = arith.constant 0 : index
    %c0_14 = arith.constant 0 : index
    %29 = vector.load %arg5[%c0_13, %c0_14] : memref<32x128xf32, #tpu.memory_space<vmem>>, vector<32x128xf32>
    %30 = arith.truncf %29 : vector<32x128xf32> to vector<32x128xbf16>
    %cst_15 = arith.constant dense<0.000000e+00> : vector<16x128xf32>
    %31 = tpu.matmul %28, %30, %cst_15 {dimension_numbers = #tpu.dot_dimension_numbers<[1], [0], [0], [1], [0, 0, 1, 1], [], []>} : vector<16x32xbf16>, vector<32x128xbf16>, vector<16x128xf32> -> vector<16x128xf32>
    %32 = arith.truncf %0 : vector<16x32xf32> to vector<16x32xbf16>
    %c0_16 = arith.constant 0 : index
    %c0_17 = arith.constant 0 : index
    %33 = vector.load %arg6[%c0_16, %c0_17] : memref<32x128xf32, #tpu.memory_space<vmem>>, vector<32x128xf32>
    %34 = arith.truncf %33 : vector<32x128xf32> to vector<32x128xbf16>
    %cst_18 = arith.constant dense<0.000000e+00> : vector<16x128xf32>
    %35 = tpu.matmul %32, %34, %cst_18 {dimension_numbers = #tpu.dot_dimension_numbers<[1], [0], [0], [1], [0, 0, 1, 1], [], []>} : vector<16x32xbf16>, vector<32x128xbf16>, vector<16x128xf32> -> vector<16x128xf32>
    %36 = arith.addf %31, %35 : vector<16x128xf32>
    %c0_19 = arith.constant 0 : index
    %c0_20 = arith.constant 0 : index
    %37 = vector.load %arg7[%c0_19, %c0_20] : memref<1x128xf32, #tpu.memory_space<vmem>>, vector<1x128xf32>
    %38 = vector.broadcast %37 : vector<1x128xf32> to vector<16x128xf32>
    %39 = arith.addf %36, %38 : vector<16x128xf32>
    %cst_21 = arith.constant 5.000000e-01 : f32
    %40 = vector.broadcast %cst_21 : f32 to vector<16x128xf32>
    %41 = arith.mulf %40, %39 : vector<16x128xf32>
    %cst_22 = arith.constant 4.471500e-02 : f32
    %42 = vector.broadcast %cst_22 : f32 to vector<16x128xf32>
    %43 = arith.mulf %42, %39 : vector<16x128xf32>
    %44 = arith.mulf %43, %39 : vector<16x128xf32>
    %45 = arith.mulf %44, %39 : vector<16x128xf32>
    %46 = arith.addf %39, %45 : vector<16x128xf32>
    %cst_23 = arith.constant 0.797884583 : f32
    %47 = vector.broadcast %cst_23 : f32 to vector<16x128xf32>
    %48 = arith.mulf %47, %46 : vector<16x128xf32>
    %49 = math.tanh %48 : vector<16x128xf32>
    %cst_24 = arith.constant 1.000000e+00 : f32
    %50 = vector.broadcast %cst_24 : f32 to vector<16x128xf32>
    %51 = arith.addf %50, %49 : vector<16x128xf32>
    %52 = arith.mulf %41, %51 : vector<16x128xf32>
    %c0_25 = arith.constant 0 : index
    %c0_26 = arith.constant 0 : index
    %53 = vector.load %arg9[%c0_25, %c0_26] : memref<16x128xf32, #tpu.memory_space<vmem>>, vector<16x128xf32>
    tpu.vector_store %arg9[%c0_25, %c0_26], %52 {strides = array<i32>} : memref<16x128xf32, #tpu.memory_space<vmem>>, vector<16x128xf32>,
    return
  }
  func.func @transform_0(%arg0: i32) -> (i32, i32) {
    %c0_i32 = arith.constant 0 : i32
    %c0_i32_0 = arith.constant 0 : i32
    return %arg0, %c0_i32 : i32, i32
  }
  func.func @transform_1(%arg0: i32) -> (i32, i32) {
    %c0_i32 = arith.constant 0 : i32
    %c0_i32_0 = arith.constant 0 : i32
    return %arg0, %c0_i32 : i32, i32
  }
  func.func @transform_2(%arg0: i32) -> (i32, i32) {
    %c0_i32 = arith.constant 0 : i32
    %c0_i32_0 = arith.constant 0 : i32
    %c0_i32_1 = arith.constant 0 : i32
    return %c0_i32, %c0_i32_0 : i32, i32
  }
  func.func @transform_3(%arg0: i32) -> (i32, i32) {
    %c0_i32 = arith.constant 0 : i32
    %c0_i32_0 = arith.constant 0 : i32
    %c0_i32_1 = arith.constant 0 : i32
    return %c0_i32, %c0_i32_0 : i32, i32
  }
  func.func @transform_4(%arg0: i32) -> (i32, i32) {
    %c0_i32 = arith.constant 0 : i32
    %c0_i32_0 = arith.constant 0 : i32
    %c0_i32_1 = arith.constant 0 : i32
    return %c0_i32, %c0_i32_0 : i32, i32
  }
  func.func @transform_5(%arg0: i32) -> (i32, i32) {
    %c0_i32 = arith.constant 0 : i32
    %c0_i32_0 = arith.constant 0 : i32
    %c0_i32_1 = arith.constant 0 : i32
    return %c0_i32, %c0_i32_0 : i32, i32
  }
  func.func @transform_6(%arg0: i32) -> (i32, i32) {
    %c0_i32 = arith.constant 0 : i32
    %c0_i32_0 = arith.constant 0 : i32
    %c0_i32_1 = arith.constant 0 : i32
    return %c0_i32, %c0_i32_0 : i32, i32
  }
  func.func @transform_7(%arg0: i32) -> (i32, i32) {
    %c0_i32 = arith.constant 0 : i32
    %c0_i32_0 = arith.constant 0 : i32
    return %arg0, %c0_i32 : i32, i32
  }
  func.func @transform_8(%arg0: i32) -> (i32, i32) {
    %c0_i32 = arith.constant 0 : i32
    %c0_i32_0 = arith.constant 0 : i32
    return %arg0, %c0_i32 : i32, i32
  }
}

module attributes {stable_mosaic.version = 11 : i64} {
  func.func @_moe_kernel(%arg0: i32, %arg1: i32, %arg2: memref<16x32xf32, #tpu.memory_space<vmem>>, %arg3: memref<16x4xf32, #tpu.memory_space<vmem>>, %arg4: memref<1x32x512xf32, #tpu.memory_space<vmem>>, %arg5: memref<1x1x512xf32, #tpu.memory_space<vmem>>, %arg6: memref<1x1x512xf32, #tpu.memory_space<vmem>>, %arg7: memref<1x1x512xf32, #tpu.memory_space<vmem>>, %arg8: memref<1x512x32xf32, #tpu.memory_space<vmem>>, %arg9: memref<1x1x32xf32, #tpu.memory_space<vmem>>, %arg10: memref<1x32xf32, #tpu.memory_space<vmem>>, %arg11: memref<1x32xf32, #tpu.memory_space<vmem>>, %arg12: memref<16x32xf32, #tpu.memory_space<vmem>>, %arg13: memref<16x32xf32, #tpu.memory_space<vmem>>) attributes {dimension_semantics = [#tpu.dimension_semantics<parallel>, #tpu.dimension_semantics<arbitrary>], iteration_bounds = array<i64: 1, 4>, scalar_prefetch = 0 : i64, scratch_operands = 1 : i64, tpu.core_type = #tpu.core_type<tc>, window_params = [{transform_indices = @transform_0, window_bounds = array<i64: 16, 32>}, {transform_indices = @transform_1, window_bounds = array<i64: 16, 4>}, {transform_indices = @transform_2, window_bounds = array<i64: 1, 32, 512>}, {transform_indices = @transform_3, window_bounds = array<i64: 1, 1, 512>}, {transform_indices = @transform_4, window_bounds = array<i64: 1, 1, 512>}, {transform_indices = @transform_5, window_bounds = array<i64: 1, 1, 512>}, {transform_indices = @transform_6, window_bounds = array<i64: 1, 512, 32>}, {transform_indices = @transform_7, window_bounds = array<i64: 1, 1, 32>}, {pipeline_mode = #tpu.pipeline_mode<synchronous>, transform_indices = @transform_8, window_bounds = array<i64: 1, 32>}, {pipeline_mode = #tpu.pipeline_mode<synchronous>, transform_indices = @transform_9, window_bounds = array<i64: 1, 32>}, {transform_indices = @transform_10, window_bounds = array<i64: 16, 32>}]} {
    %c0_i32 = arith.constant 0 : i32
    %0 = arith.cmpi eq, %arg1, %c0_i32 : i32
    %1 = arith.extui %0 : i1 to i32
    %c0_i32_0 = arith.constant 0 : i32
    %2 = arith.cmpi ne, %1, %c0_i32_0 : i32
    scf.if %2 {
      %cst_37 = arith.constant 0.000000e+00 : f32
      %89 = vector.broadcast %cst_37 : f32 to vector<16x32xf32>
      %c0_38 = arith.constant 0 : index
      %c0_39 = arith.constant 0 : index
      %90 = vector.load %arg13[%c0_38, %c0_39] : memref<16x32xf32, #tpu.memory_space<vmem>>, vector<16x32xf32>
      tpu.vector_store %arg13[%c0_38, %c0_39], %89 {strides = array<i32>} : memref<16x32xf32, #tpu.memory_space<vmem>>, vector<16x32xf32>,
    } else {
    }
    %c1_i32 = arith.constant 1 : i32
    %3 = arith.addi %arg1, %c1_i32 : i32
    %c128_i32 = arith.constant 128 : i32
    %4 = arith.muli %3, %c128_i32 : i32
    %5 = arith.sitofp %4 : i32 to f32
    %6 = tpu.iota {dimensions = array<i32: 1>} : vector<1x512xi32>
    %7 = vector.broadcast %4 : i32 to vector<1x512xi32>
    %8 = arith.cmpi slt, %6, %7 : vector<1x512xi32>
    %9 = arith.extui %8 : vector<1x512xi1> to vector<1x512xi32>
    %10 = arith.sitofp %9 : vector<1x512xi32> to vector<1x512xf32>
    %c0 = arith.constant 0 : index
    %c0_1 = arith.constant 0 : index
    %11 = vector.load %arg2[%c0, %c0_1] : memref<16x32xf32, #tpu.memory_space<vmem>>, vector<16x32xf32>
    %12 = arith.truncf %11 : vector<16x32xf32> to vector<16x32xbf16>
    %c0_2 = arith.constant 0 : index
    %c0_3 = arith.constant 0 : index
    %c0_4 = arith.constant 0 : index
    %13 = vector.load %arg4[%c0_2, %c0_3, %c0_4] : memref<1x32x512xf32, #tpu.memory_space<vmem>>, vector<1x32x512xf32>
    %14 = vector.shape_cast %13 : vector<1x32x512xf32> to vector<32x512xf32>
    %15 = arith.truncf %14 : vector<32x512xf32> to vector<32x512xbf16>
    %cst = arith.constant dense<0.000000e+00> : vector<16x512xf32>
    %16 = tpu.matmul %12, %15, %cst {dimension_numbers = #tpu.dot_dimension_numbers<[1], [0], [0], [1], [0, 0, 1, 1], [], []>} : vector<16x32xbf16>, vector<32x512xbf16>, vector<16x512xf32> -> vector<16x512xf32>
    %c0_5 = arith.constant 0 : index
    %c0_6 = arith.constant 0 : index
    %c0_7 = arith.constant 0 : index
    %17 = vector.load %arg5[%c0_5, %c0_6, %c0_7] : memref<1x1x512xf32, #tpu.memory_space<vmem>>, vector<1x1x512xf32>
    %18 = vector.shape_cast %17 : vector<1x1x512xf32> to vector<1x512xf32>
    %19 = vector.broadcast %18 : vector<1x512xf32> to vector<16x512xf32>
    %20 = arith.addf %16, %19 : vector<16x512xf32>
    %21 = vector.broadcast %10 : vector<1x512xf32> to vector<16x512xf32>
    %22 = arith.mulf %20, %21 : vector<16x512xf32>
    %cst_8 = arith.constant dense<0.000000e+00> : vector<16xf32>
    %23 = vector.multi_reduction <add>, %22, %cst_8 [1] : vector<16x512xf32> to vector<16xf32>
    %24 = vector.shape_cast %23 : vector<16xf32> to vector<16x1xf32>
    %25 = vector.broadcast %5 : f32 to vector<16x1xf32>
    %26 = arith.divf %24, %25 : vector<16x1xf32>
    %27 = vector.broadcast %26 : vector<16x1xf32> to vector<16x512xf32>
    %28 = arith.subf %20, %27 : vector<16x512xf32>
    %29 = vector.broadcast %10 : vector<1x512xf32> to vector<16x512xf32>
    %30 = arith.mulf %28, %29 : vector<16x512xf32>
    %31 = arith.mulf %30, %30 : vector<16x512xf32>
    %cst_9 = arith.constant dense<0.000000e+00> : vector<16xf32>
    %32 = vector.multi_reduction <add>, %31, %cst_9 [1] : vector<16x512xf32> to vector<16xf32>
    %33 = vector.shape_cast %32 : vector<16xf32> to vector<16x1xf32>
    %34 = vector.broadcast %5 : f32 to vector<16x1xf32>
    %35 = arith.divf %33, %34 : vector<16x1xf32>
    %cst_10 = arith.constant 9.99999974E-6 : f32
    %36 = vector.broadcast %cst_10 : f32 to vector<16x1xf32>
    %37 = arith.addf %35, %36 : vector<16x1xf32>
    %38 = math.rsqrt %37 : vector<16x1xf32>
    %39 = vector.broadcast %38 : vector<16x1xf32> to vector<16x512xf32>
    %40 = arith.mulf %30, %39 : vector<16x512xf32>
    %c0_11 = arith.constant 0 : index
    %c0_12 = arith.constant 0 : index
    %c0_13 = arith.constant 0 : index
    %41 = vector.load %arg6[%c0_11, %c0_12, %c0_13] : memref<1x1x512xf32, #tpu.memory_space<vmem>>, vector<1x1x512xf32>
    %42 = vector.shape_cast %41 : vector<1x1x512xf32> to vector<1x512xf32>
    %43 = vector.broadcast %42 : vector<1x512xf32> to vector<16x512xf32>
    %44 = arith.mulf %40, %43 : vector<16x512xf32>
    %c0_14 = arith.constant 0 : index
    %c0_15 = arith.constant 0 : index
    %c0_16 = arith.constant 0 : index
    %45 = vector.load %arg7[%c0_14, %c0_15, %c0_16] : memref<1x1x512xf32, #tpu.memory_space<vmem>>, vector<1x1x512xf32>
    %46 = vector.shape_cast %45 : vector<1x1x512xf32> to vector<1x512xf32>
    %47 = vector.broadcast %46 : vector<1x512xf32> to vector<16x512xf32>
    %48 = arith.addf %44, %47 : vector<16x512xf32>
    %cst_17 = arith.constant 5.000000e-01 : f32
    %49 = vector.broadcast %cst_17 : f32 to vector<16x512xf32>
    %50 = arith.mulf %49, %48 : vector<16x512xf32>
    %cst_18 = arith.constant 4.471500e-02 : f32
    %51 = vector.broadcast %cst_18 : f32 to vector<16x512xf32>
    %52 = arith.mulf %51, %48 : vector<16x512xf32>
    %53 = arith.mulf %52, %48 : vector<16x512xf32>
    %54 = arith.mulf %53, %48 : vector<16x512xf32>
    %55 = arith.addf %48, %54 : vector<16x512xf32>
    %cst_19 = arith.constant 0.797884583 : f32
    %56 = vector.broadcast %cst_19 : f32 to vector<16x512xf32>
    %57 = arith.mulf %56, %55 : vector<16x512xf32>
    %58 = math.tanh %57 : vector<16x512xf32>
    %cst_20 = arith.constant 1.000000e+00 : f32
    %59 = vector.broadcast %cst_20 : f32 to vector<16x512xf32>
    %60 = arith.addf %59, %58 : vector<16x512xf32>
    %61 = arith.mulf %50, %60 : vector<16x512xf32>
    %62 = arith.truncf %61 : vector<16x512xf32> to vector<16x512xbf16>
    %c0_21 = arith.constant 0 : index
    %c0_22 = arith.constant 0 : index
    %c0_23 = arith.constant 0 : index
    %63 = vector.load %arg8[%c0_21, %c0_22, %c0_23] : memref<1x512x32xf32, #tpu.memory_space<vmem>>, vector<1x512x32xf32>
    %64 = vector.shape_cast %63 : vector<1x512x32xf32> to vector<512x32xf32>
    %65 = arith.truncf %64 : vector<512x32xf32> to vector<512x32xbf16>
    %cst_24 = arith.constant dense<0.000000e+00> : vector<16x32xf32>
    %66 = tpu.matmul %62, %65, %cst_24 {dimension_numbers = #tpu.dot_dimension_numbers<[1], [0], [0], [1], [0, 0, 1, 1], [], []>} : vector<16x512xbf16>, vector<512x32xbf16>, vector<16x32xf32> -> vector<16x32xf32>
    %c0_25 = arith.constant 0 : index
    %c0_26 = arith.constant 0 : index
    %c0_27 = arith.constant 0 : index
    %67 = vector.load %arg9[%c0_25, %c0_26, %c0_27] : memref<1x1x32xf32, #tpu.memory_space<vmem>>, vector<1x1x32xf32>
    %68 = vector.shape_cast %67 : vector<1x1x32xf32> to vector<1x32xf32>
    %69 = vector.broadcast %68 : vector<1x32xf32> to vector<16x32xf32>
    %70 = arith.addf %66, %69 : vector<16x32xf32>
    %71 = tpu.iota {dimensions = array<i32: 1>} : vector<1x4xi32>
    %72 = vector.broadcast %arg1 : i32 to vector<1x4xi32>
    %73 = arith.cmpi eq, %71, %72 : vector<1x4xi32>
    %c0_28 = arith.constant 0 : index
    %c0_29 = arith.constant 0 : index
    %74 = vector.load %arg3[%c0_28, %c0_29] : memref<16x4xf32, #tpu.memory_space<vmem>>, vector<16x4xf32>
    %cst_30 = arith.constant 0.000000e+00 : f32
    %75 = vector.shape_cast %73 : vector<1x4xi1> to vector<1x4xi1>
    %76 = vector.broadcast %75 : vector<1x4xi1> to vector<16x4xi1>
    %77 = vector.broadcast %cst_30 : f32 to vector<16x4xf32>
    %78 = arith.select %76, %74, %77 : vector<16x4xi1>, vector<16x4xf32>
    %cst_31 = arith.constant dense<0.000000e+00> : vector<16xf32>
    %79 = vector.multi_reduction <add>, %78, %cst_31 [1] : vector<16x4xf32> to vector<16xf32>
    %80 = vector.shape_cast %79 : vector<16xf32> to vector<16x1xf32>
    %c0_32 = arith.constant 0 : index
    %c0_33 = arith.constant 0 : index
    %81 = vector.load %arg13[%c0_32, %c0_33] : memref<16x32xf32, #tpu.memory_space<vmem>>, vector<16x32xf32>
    %82 = vector.broadcast %80 : vector<16x1xf32> to vector<16x32xf32>
    %83 = arith.mulf %82, %70 : vector<16x32xf32>
    %84 = arith.addf %81, %83 : vector<16x32xf32>
    %c0_34 = arith.constant 0 : index
    %c0_35 = arith.constant 0 : index
    %85 = vector.load %arg13[%c0_34, %c0_35] : memref<16x32xf32, #tpu.memory_space<vmem>>, vector<16x32xf32>
    tpu.vector_store %arg13[%c0_34, %c0_35], %84 {strides = array<i32>} : memref<16x32xf32, #tpu.memory_space<vmem>>, vector<16x32xf32>,
    %c3_i32 = arith.constant 3 : i32
    %86 = arith.cmpi eq, %arg1, %c3_i32 : i32
    %87 = arith.extui %86 : i1 to i32
    %c0_i32_36 = arith.constant 0 : i32
    %88 = arith.cmpi ne, %87, %c0_i32_36 : i32
    scf.if %88 {
      %c0_37 = arith.constant 0 : index
      %c0_38 = arith.constant 0 : index
      %89 = vector.load %arg2[%c0_37, %c0_38] : memref<16x32xf32, #tpu.memory_space<vmem>>, vector<16x32xf32>
      %c0_39 = arith.constant 0 : index
      %c0_40 = arith.constant 0 : index
      %90 = vector.load %arg13[%c0_39, %c0_40] : memref<16x32xf32, #tpu.memory_space<vmem>>, vector<16x32xf32>
      %91 = arith.addf %89, %90 : vector<16x32xf32>
      %c0_41 = arith.constant 0 : index
      %c0_42 = arith.constant 0 : index
      %92 = vector.load %arg10[%c0_41, %c0_42] : memref<1x32xf32, #tpu.memory_space<vmem>>, vector<1x32xf32>
      %c0_43 = arith.constant 0 : index
      %c0_44 = arith.constant 0 : index
      %93 = vector.load %arg11[%c0_43, %c0_44] : memref<1x32xf32, #tpu.memory_space<vmem>>, vector<1x32xf32>
      %cst_45 = arith.constant dense<0.000000e+00> : vector<16xf32>
      %94 = vector.multi_reduction <add>, %91, %cst_45 [1] : vector<16x32xf32> to vector<16xf32>
      %95 = vector.shape_cast %94 : vector<16xf32> to vector<16x1xf32>
      %cst_46 = arith.constant 3.200000e+01 : f32
      %96 = vector.broadcast %cst_46 : f32 to vector<16x1xf32>
      %97 = arith.divf %95, %96 : vector<16x1xf32>
      %98 = vector.broadcast %97 : vector<16x1xf32> to vector<16x32xf32>
      %99 = arith.subf %91, %98 : vector<16x32xf32>
      %100 = arith.mulf %99, %99 : vector<16x32xf32>
      %cst_47 = arith.constant dense<0.000000e+00> : vector<16xf32>
      %101 = vector.multi_reduction <add>, %100, %cst_47 [1] : vector<16x32xf32> to vector<16xf32>
      %102 = vector.shape_cast %101 : vector<16xf32> to vector<16x1xf32>
      %cst_48 = arith.constant 3.200000e+01 : f32
      %103 = vector.broadcast %cst_48 : f32 to vector<16x1xf32>
      %104 = arith.divf %102, %103 : vector<16x1xf32>
      %105 = vector.broadcast %97 : vector<16x1xf32> to vector<16x32xf32>
      %106 = arith.subf %91, %105 : vector<16x32xf32>
      %cst_49 = arith.constant 9.99999974E-6 : f32
      %107 = vector.broadcast %cst_49 : f32 to vector<16x1xf32>
      %108 = arith.addf %104, %107 : vector<16x1xf32>
      %109 = math.rsqrt %108 : vector<16x1xf32>
      %110 = vector.broadcast %109 : vector<16x1xf32> to vector<16x32xf32>
      %111 = arith.mulf %106, %110 : vector<16x32xf32>
      %112 = vector.broadcast %92 : vector<1x32xf32> to vector<16x32xf32>
      %113 = arith.mulf %111, %112 : vector<16x32xf32>
      %114 = vector.broadcast %93 : vector<1x32xf32> to vector<16x32xf32>
      %115 = arith.addf %113, %114 : vector<16x32xf32>
      %c0_50 = arith.constant 0 : index
      %c0_51 = arith.constant 0 : index
      %116 = vector.load %arg12[%c0_50, %c0_51] : memref<16x32xf32, #tpu.memory_space<vmem>>, vector<16x32xf32>
      tpu.vector_store %arg12[%c0_50, %c0_51], %115 {strides = array<i32>} : memref<16x32xf32, #tpu.memory_space<vmem>>, vector<16x32xf32>,
    } else {
    }
    return
  }
  func.func @transform_0(%arg0: i32, %arg1: i32) -> (i32, i32) {
    %c0_i32 = arith.constant 0 : i32
    %c0_i32_0 = arith.constant 0 : i32
    return %arg0, %c0_i32 : i32, i32
  }
  func.func @transform_1(%arg0: i32, %arg1: i32) -> (i32, i32) {
    %c0_i32 = arith.constant 0 : i32
    %c0_i32_0 = arith.constant 0 : i32
    return %arg0, %c0_i32 : i32, i32
  }
  func.func @transform_2(%arg0: i32, %arg1: i32) -> (i32, i32, i32) {
    %c0_i32 = arith.constant 0 : i32
    %c0_i32_0 = arith.constant 0 : i32
    %c0_i32_1 = arith.constant 0 : i32
    return %arg1, %c0_i32, %c0_i32_0 : i32, i32, i32
  }
  func.func @transform_3(%arg0: i32, %arg1: i32) -> (i32, i32, i32) {
    %c0_i32 = arith.constant 0 : i32
    %c0_i32_0 = arith.constant 0 : i32
    %c0_i32_1 = arith.constant 0 : i32
    return %arg1, %c0_i32, %c0_i32_0 : i32, i32, i32
  }
  func.func @transform_4(%arg0: i32, %arg1: i32) -> (i32, i32, i32) {
    %c0_i32 = arith.constant 0 : i32
    %c0_i32_0 = arith.constant 0 : i32
    %c0_i32_1 = arith.constant 0 : i32
    return %arg1, %c0_i32, %c0_i32_0 : i32, i32, i32
  }
  func.func @transform_5(%arg0: i32, %arg1: i32) -> (i32, i32, i32) {
    %c0_i32 = arith.constant 0 : i32
    %c0_i32_0 = arith.constant 0 : i32
    %c0_i32_1 = arith.constant 0 : i32
    return %arg1, %c0_i32, %c0_i32_0 : i32, i32, i32
  }
  func.func @transform_6(%arg0: i32, %arg1: i32) -> (i32, i32, i32) {
    %c0_i32 = arith.constant 0 : i32
    %c0_i32_0 = arith.constant 0 : i32
    %c0_i32_1 = arith.constant 0 : i32
    return %arg1, %c0_i32, %c0_i32_0 : i32, i32, i32
  }
  func.func @transform_7(%arg0: i32, %arg1: i32) -> (i32, i32, i32) {
    %c0_i32 = arith.constant 0 : i32
    %c0_i32_0 = arith.constant 0 : i32
    %c0_i32_1 = arith.constant 0 : i32
    return %arg1, %c0_i32, %c0_i32_0 : i32, i32, i32
  }
  func.func @transform_8(%arg0: i32, %arg1: i32) -> (i32, i32) {
    %c0_i32 = arith.constant 0 : i32
    %c0_i32_0 = arith.constant 0 : i32
    %c0_i32_1 = arith.constant 0 : i32
    return %c0_i32, %c0_i32_0 : i32, i32
  }
  func.func @transform_9(%arg0: i32, %arg1: i32) -> (i32, i32) {
    %c0_i32 = arith.constant 0 : i32
    %c0_i32_0 = arith.constant 0 : i32
    %c0_i32_1 = arith.constant 0 : i32
    return %c0_i32, %c0_i32_0 : i32, i32
  }
  func.func @transform_10(%arg0: i32, %arg1: i32) -> (i32, i32) {
    %c0_i32 = arith.constant 0 : i32
    %c0_i32_0 = arith.constant 0 : i32
    return %arg0, %c0_i32 : i32, i32
  }
}

</mosaic_0001>

<bundles_post_ra>
// kernel: tpu_custom_call.1
= control target key start
LH: loop header
LB: loop body
LE: loop exit
PB: predicated region body
PF: predicated region fallthrough
CT: control target
= control target key end

     0   :  { %6 = vsyncpa [#allocation3], 0  ;;  %s103_s0 = inlined_call_operand.hbm [shape: f32[8,128], index: 0, kind: input, shape index: {}]   ;;  %s104_s1 = inlined_call_operand.hbm [shape: f32[8,128], index: 1, kind: output, shape index: {}]  }
   0x1   :  { %7 = vsyncpa [#allocation4], 0  ;;  %s85_s6 = smov [#allocation2]  }
   0x2   :  { %s14_s7 = sshll.u32 %s85_s6, 4  ;;  %s15_s7 = int_to_ptr.vmem [resolvable:$true] %s14_s7 }
   0x3   :  { %s49_s8 = scalar_lea.vmem %s15_s7, 128  ;;  %p54_p1 = scmp.lt.s32.totalorder %s15_s7, %s15_s7 }
   0x4   :  { %p50_p0 = scmp.ne.s32.totalorder %s15_s7, %s49_s8  ;;  %p55_p2 = scmp.lt.s32.totalorder %s49_s8, %s49_s8 }
   0x6   :  { %p56_p3 = por %p55_p2, %p54_p1 }
   0x8   :  { %p57_p4 = pnand %p56_p3, %p50_p0 }
   0xa   :  { %60 = shalt.err (!%p57_p4)
}
   0xb   :  { %17 = dma.hbm_to_vmem [thread:$0]  %s103_s0, 128, %s15_s7, [#allocation3]  }
   0xc   :  { %81 = dma.done.wait [#allocation3], 128  }
   0xd   :  { %82 = vsyncadd [#allocation3], 4294967168  ;;  %s86_s11 = smov [#allocation5]   ;;  %v21_v0 = vld [vmem:[#allocation2] sm:$0xff] }
   0xe   :  { %s30_s12 = sshll.u32 %s86_s11, 4  ;;  %v22_v1 = vadd.f32 1.0, %v21_v0  ;;  %s31_s12 = int_to_ptr.vmem [resolvable:$true] %s30_s12 }
   0xf   :  { %s61_s13 = scalar_lea.vmem %s31_s12, 128  ;;  %p66_p6 = scmp.lt.s32.totalorder %s31_s12, %s31_s12 }
  0x10   :  { %23 = vst [vmem:[#allocation5] sm:$0xff] %v22_v1  ;;  %p62_p5 = scmp.ne.s32.totalorder %s31_s12, %s61_s13  ;;  %p67_p7 = scmp.lt.s32.totalorder %s61_s13, %s61_s13 }
  0x12   :  { %p68_p8 = por %p67_p7, %p66_p6 }
  0x14   :  { %p69_p9 = pnand %p68_p8, %p62_p5 }
  0x16   :  { %72 = shalt.err (!%p69_p9)
}
  0x17   :  { %33 = dma.vmem_to_hbm [thread:$0]  %s31_s12, 128, %s104_s1, [#allocation4]  }
  0x18   :  { %83 = dma.done.wait [#allocation4], 128  }
  0x19   :  { %84 = vsyncadd [#allocation4], 4294967168 }
  0x1a   :  { %37 = vsyncpa [#allocation3], 1 }
  0x1b   :  { %38 = vsyncpa [#allocation4], 1 }

// kernel: fwd.4
= control target key start
LH: loop header
LB: loop body
LE: loop exit
PB: predicated region body
PF: predicated region fallthrough
CT: control target
= control target key end

     0   :  { %s1306_s13 = smov 0   ;;  %s1457_s0 = inlined_call_operand.vmem [shape: f32[2,8,32], index: 0, kind: input, shape index: {}]   ;;  %s1458_s1 = inlined_call_operand.vmem [shape: f32[1,8,32], index: 1, kind: input, shape index: {}]   ;;  %s1459_s2 = inlined_call_operand.vmem [shape: f32[1,32], index: 2, kind: input, shape index: {}]   ;;  %s1460_s3 = inlined_call_operand.vmem [shape: f32[32,96], index: 3, kind: input, shape index: {}]   ;;  %s1461_s4 = inlined_call_operand.vmem [shape: f32[1,96], index: 4, kind: input, shape index: {}]   ;;  %s1462_s5 = inlined_call_operand.vmem [shape: f32[32,32], index: 5, kind: input, shape index: {}]   ;;  %s1463_s6 = inlined_call_operand.vmem [shape: f32[1,32], index: 6, kind: input, shape index: {}]   ;;  %s1464_s7 = inlined_call_operand.vmem [shape: f32[1,32], index: 7, kind: input, shape index: {}]   ;;  %s1465_s8 = inlined_call_operand.vmem [shape: f32[1,32], index: 8, kind: input, shape index: {}]   ;;  %s1466_s9 = inlined_call_operand.vmem [shape: f32[2,8,32], index: 9, kind: output, shape index: {0}]   ;;  %s1467_s10 = inlined_call_operand.vmem [shape: f32[2,1,32], index: 10, kind: output, shape index: {1}]  }
   0x1 LB: > { %s1075_s14 = sadd.s32 4294967295, %s1233_s13   ;;  %p1079_p0 = scmp.ge.s32.totalorder %s1233_s13, 1  ;;  %s1233_s13 = sphi %s1306_s13, %s21_s13  }
   0x2   : > { %p314_p1 = scmp.lt.s32.totalorder %s1233_s13, 3 }
   0x4   : > { %p315_p2 = pnand %p1079_p0, %p314_p1 }
   0x5   : > { %p353_p3 = scmp.lt.s32.totalorder (!%p315_p2), %s1075_s14, 1  ;;  %s1237_s15 = smov (!%p315_p2), 120  }
   0x6   : > { %318 = sbr.rel (%p315_p2) target bundleno = 1582 (0x62e), region = 56  ;;  %s1238_s16 = smov (!%p315_p2), 96  }
   0x7   : > { %s1239_s17 = smov (!%p315_p2), 80   ;;  %s1240_s18 = smov (!%p315_p2), 88  }
   0x8   : > { %s1241_s19 = smov (!%p315_p2), 72   ;;  %s1242_s20 = smov (!%p315_p2), 112  }
   0x9   : > { %s1243_s21 = smov (!%p315_p2), 104   ;;  %s1244_s22 = smov (!%p315_p2), 56  }
   0xa   : > { %s1245_s24 = smov (!%p315_p2), 64   ;;  %s1246_s25 = smov (!%p315_p2), 40  }
   0xb   : > { %v379_v0 = vld [vmem:[%s1460_s3 + $0x10] sm:$0xff]  ;;  %v380_v1 = vld [vmem:[%s1460_s3 + $0x18] sm:$0xff]  ;;  %v377_v2 = vld [vmem:[%s1460_s3] sm:$0xff]  ;;  %v1235_v3 = vmov 0.0   ;;  %vm1236_vm0 = vmmov 0   ;;  %s1469_s14 = smov (!%p353_p3, %s1075_s14), 1 }
   0xc   : > { %1121 = vmatprep.subr.bf16.mxu0 %v1235_v3  ;;  %v382_v4 = vpack.c.bf16 %v380_v1, %v379_v0  ;;  %v378_v5 = vld [vmem:[%s1460_s3 + $0x8] sm:$0xff]  ;;  %1125 = vmatprep.mubr.msk.bf16.mxu0 %vm1236_vm0, %v1235_v3  ;;  %s1080_s23 = sshll.u32 %s1469_s14, 3  ;;  %v366_v7 = vld [vmem:[%s1458_s1] sm:$0xff]  ;;  %vm390_vm1 = vcmask 261120   ;;  %vm438_vm2 = vcmask 64512   ;;  %s1247_s26 = smov 48  }
   0xd   : > { %1129 = vmatprep.subr.bf16.mxu1 %v1235_v3  ;;  %1131 = vmatprep.mubr.msk.bf16.mxu1 %vm1236_vm0, %v1235_v3  ;;  %v381_v6 = vpack.c.bf16 %v378_v5, %v377_v2  ;;  %s356_s28 = scalar_lea.vmem %s1457_s0, %s1080_s23  ;;  %v1082_v9 = vld [vmem:[%s1459_s2] ss:$0 sm:$0xff]  ;;  %vm501_vm3 = vcmask 1043456   ;;  %s1248_s27 = smov 8   ;;  %vm893_vm4 = vcmask 130048   ;;  %vm895_vm5 = vcmask 195584  }
   0xe   : > { %1122 = vmatpush3.bf16.msra.mxu0 %v382_v4  ;;  %v1344_v8 = vld [vmem:[%s356_s28] sm:$0xff]  ;;  %s360_s29 = scalar_lea.vmem %s1466_s9, %s1080_s23  ;;  %s363_s12 = scalar_lea.vmem %s1467_s10, %s1469_s14  ;;  %vm995_vm6 = vcmask 253952  }
   0xf   : > { %1123 = vmatprep.subr.bf16.mxu0 %v1235_v3  ;;  %v367_v10 = vadd.f32 %v366_v7, %v1344_v8  ;;  %v1083_v13 = vld [vmem:[%s1461_s4] ss:$0 sm:$0xff] }
  0x11   : > { %v375_v11 = vadd.f32 %v1082_v9, %v367_v10 }
  0x12   : > { %1124 = vmatpush3.bf16.msra.mxu0 %v381_v6 }
  0x13   : > { %1135 = vmatprep.subr.bf16.mxu0 %v1235_v3  ;;  %v376_v12 = vpack.c.bf16 %v375_v11, %v375_v11 }
  0x15   : > { %1126 = vmatmul.mubr.msk.bf16.vlgmr.msra.gmra.mxu0 %vm390_vm1, %v376_v12 }
  0x16   : > { %1137 = vmatprep.mubr.msk.bf16.mxu0 %vm1236_vm0, %v1235_v3 }
  0xd5   : > { %v428_v14 = vpop.f32.mrf.mxu0 }
  0xd6   : > { %v429_v15 = vadd.f32 %v1083_v13, %v428_v14 }
  0xd7   : > { %v1127_v16 = vpop.f32.mrf.mxu0 }
  0xd8   : > { %v1357_v17 = vpack.c.bf16 %v429_v15, %v429_v15 }
  0xd9   : > { %v431_v18 = vpop.f32.mrf.mxu0 }
  0xda   : > { %547 = vrot.lane.b32.xlu1 %v1357_v17, %s1237_s15  ;;  %436 = vrot.lane.b32.xlu0 %v1357_v17, %s1238_s16 }
  0xdb   : > { %v1128_v19 = vpop.f32.mrf.mxu0 }
  0xde   : > { %660 = vrot.lane.b32.xlu1 %v1357_v17, %s1239_s17  ;;  %549 = vrot.lane.b32.xlu0 %v1357_v17, %s1240_s18  ;;  %s1249_s18 = smov 16  }
  0xe2   : > { %771 = vrot.lane.b32.xlu1 %v1357_v17, %s1241_s19  ;;  %658 = vrot.lane.b32.xlu0 %v1357_v17, %s1242_s20  ;;  %s1250_s19 = smov 24  }
  0xe6   : > { %769 = vrot.lane.b32.xlu0 %v1357_v17, %s1243_s21 }
 0x14c   : > { %v437_v20 = vpop.permute.xlu0 %436  ;;  %v548_v23 = vpop.permute.xlu1 %547 }
 0x14d   : > { %v443_v21 = vsel %vm438_vm2, %v437_v20, 0 }
 0x14e   : > { %1130 = vmatpush3.bf16.xpose.msra.mxu1 %v443_v21 }
 0x14f   : > { %1141 = vmatprep.subr.bf16.mxu1 %v1235_v3 }
 0x150   : > { %v550_v22 = vpop.permute.xlu0 %549  ;;  %v661_v25 = vpop.permute.xlu1 %660 }
 0x151   : > { %v555_v24 = vsel %vm438_vm2, %v550_v22, 0  ;;  %v666_v26 = vsel %vm438_vm2, %v661_v25, 0 }
 0x154   : > { %v772_v27 = vpop.permute.xlu1 %771  ;;  %v659_v28 = vpop.permute.xlu0 %658 }
 0x155   : > { %1132 = vmatmul.mubr.msk.bf16.vlgmr.msra.gmra.mxu1 %vm438_vm2, %v1357_v17  ;;  %v777_v29 = vsel %vm438_vm2, %v772_v27, 0 }
 0x156   : > { %1142 = vmatpush3.bf16.xpose.msra.mxu1 %v555_v24  ;;  %1143 = vmatprep.mubr.msk.bf16.mxu1 %vm1236_vm0, %v1235_v3 }
 0x157   : > { %1153 = vmatprep.subr.bf16.mxu1 %v1235_v3 }
 0x158   : > { %v770_v30 = vpop.permute.xlu0 %769 }
 0x15d   : > { %1144 = vmatmul.mubr.msk.bf16.vlgmr.msra.gmra.mxu1 %vm438_vm2, %v548_v23 }
 0x15e   : > { %1154 = vmatpush3.bf16.xpose.msra.mxu1 %v666_v26  ;;  %1155 = vmatprep.mubr.msk.bf16.mxu1 %vm1236_vm0, %v1235_v3 }
 0x15f   : > { %1165 = vmatprep.subr.bf16.mxu1 %v1235_v3 }
 0x165   : > { %1156 = vmatmul.mubr.msk.bf16.vlgmr.msra.gmra.mxu1 %vm438_vm2, %v659_v28 }
 0x166   : > { %1166 = vmatpush3.bf16.xpose.msra.mxu1 %v777_v29  ;;  %1167 = vmatprep.mubr.msk.bf16.mxu1 %vm1236_vm0, %v1235_v3 }
 0x167   : > { %1177 = vmatprep.subr.bf16.mxu1 %v1235_v3 }
 0x16d   : > { %1168 = vmatmul.mubr.msk.bf16.vlgmr.msra.gmra.mxu1 %vm438_vm2, %v770_v30 }
 0x16e   : > { %1181 = vmatprep.mubr.msk.bf16.mxu1 %vm1236_vm0, %v1235_v3 }
 0x215   : > { %v479_v31 = vpop.f32.mrf.mxu1 }
 0x216   : > { %v485_v32 = vmul.f32 0.35355338, %v479_v31 }
 0x217   : > { %v1133_v33 = vpop.f32.mrf.mxu1 }
 0x218   : > { %v486_v34 = vsel %vm438_vm2, %v485_v32, -inf }
 0x219   : > { %487 = vmax.xlane.f32.xlu1 %v486_v34  ;;  %v482_v35 = vpop.f32.mrf.mxu1 }
 0x21b   : > { %v1134_v36 = vpop.f32.mrf.mxu1 }
 0x21d   : > { %v591_v37 = vpop.f32.mrf.mxu1 }
 0x21e   : > { %v597_v38 = vmul.f32 0.35355338, %v591_v37  ;;  %v900_v37 = vld [vmem:[%s1462_s5 + $0x10] sm:$0xff] }
 0x21f   : > { %v1145_v39 = vpop.f32.mrf.mxu1 }
 0x220   : > { %v598_v40 = vsel %vm438_vm2, %v597_v38, -inf }
 0x221   : > { %599 = vmax.xlane.f32.xlu0 %v598_v40  ;;  %v594_v41 = vpop.f32.mrf.mxu1 }
 0x222   : > { %v898_v41 = vld [vmem:[%s1462_s5] sm:$0xff] }
 0x223   : > { %v1146_v42 = vpop.f32.mrf.mxu1 }
 0x224   : > { %v899_v42 = vld [vmem:[%s1462_s5 + $0x8] sm:$0xff] }
 0x225   : > { %v702_v43 = vpop.f32.mrf.mxu1 }
 0x226   : > { %v708_v44 = vmul.f32 0.35355338, %v702_v43 }
 0x227   : > { %v1157_v45 = vpop.f32.mrf.mxu1 }
 0x228   : > { %v709_v46 = vsel %vm438_vm2, %v708_v44, -inf  ;;  %v902_v45 = vpack.c.bf16 %v899_v42, %v898_v41 }
 0x229   : > { %710 = vmax.xlane.f32.xlu0 %v709_v46  ;;  %v705_v47 = vpop.f32.mrf.mxu1 }
 0x22a   : > { %608 = vrot.lane.b32.xlu1 %v1357_v17, %s1244_s22 }
 0x22b   : > { %v1158_v48 = vpop.f32.mrf.mxu1 }
 0x22d   : > { %v813_v49 = vpop.f32.mrf.mxu1 }
 0x22e   : > { %v819_v53 = vmul.f32 0.35355338, %v813_v49 }
 0x22f   : > { %v1169_v50 = vpop.f32.mrf.mxu1 }
 0x230   : > { %v820_v54 = vsel %vm438_vm2, %v819_v53, -inf }
 0x231   : > { %v816_v51 = vpop.f32.mrf.mxu1 }
 0x233   : > { %v1170_v52 = vpop.f32.mrf.mxu1 }
 0x23f   : > { %496 = vrot.lane.b32.xlu0 %v1357_v17, %s1245_s24 }
 0x243   : > { %830 = vrot.lane.b32.xlu0 %v1357_v17, %s1246_s25 }
 0x24e   : > { %821 = vmax.xlane.f32.xlu1 %v820_v54 }
 0x25f   : > { %719 = vrot.lane.b32.xlu1 %v1357_v17, %s1247_s26 }
 0x2a2   : > { %v488_v55 = vpop.xlane.xlu1 %487 }
 0x2a3   : > { %v489_v56 = vsub.f32 %v485_v32, %v488_v55 }
 0x2a5   : > { %v490_v57 = vmul.f32 1.442695, %v489_v56 }
 0x2a6   : > { %v609_v4 = vpop.permute.xlu1 %608 }
 0x2a7   : > { %1209 = vpow2.f32 %v490_v57  ;;  %v614_v6 = vsel %vm501_vm3, %v609_v4, 0 }
 0x2aa   : > { %v600_v58 = vpop.xlane.xlu0 %599 }
 0x2ab   : > { %v601_v59 = vsub.f32 %v597_v38, %v600_v58  ;;  %v901_v38 = vld [vmem:[%s1462_s5 + $0x18] sm:$0xff] }
 0x2ac   : > { %v903_v39 = vpack.c.bf16 %v901_v38, %v900_v37 }
 0x2ad   : > { %v602_v60 = vmul.f32 1.442695, %v601_v59 }
 0x2ae   : > { %1178 = vmatpush3.bf16.msra.mxu1 %v903_v39 }
 0x2af   : > { %1211 = vpow2.f32 %v602_v60  ;;  %1179 = vmatprep.subr.bf16.mxu1 %v1235_v3 }
 0x2b2   : > { %v711_v61 = vpop.xlane.xlu0 %710  ;;  %1180 = vmatpush3.bf16.msra.mxu1 %v902_v45 }
 0x2b3   : > { %v712_v62 = vsub.f32 %v708_v44, %v711_v61 }
 0x2b4   : > { %v1210_v0 = vpop.eup %1209 }
 0x2b5   : > { %v713_v63 = vmul.f32 1.442695, %v712_v62  ;;  %v495_v5 = vpack.c.bf16 %v1210_v0, %v1210_v0  ;;  %v492_v10 = vsel %vm438_vm2, %v1210_v0, 0.0 }
 0x2b6   : > { %v497_v1 = vpop.permute.xlu0 %496 }
 0x2b7   : > { %1213 = vpow2.f32 %v713_v63  ;;  %v503_v2 = vsel %vm501_vm3, %v497_v1, 0  ;;  %v1093_v1 = vld [vmem:[%s1463_s6] ss:$0 sm:$0xff] }
 0x2b8   : > { %1136 = vmatpush3.bf16.msra.mxu0 %v503_v2 }
 0x2b9   : > { %1147 = vmatprep.subr.bf16.mxu0 %v1235_v3 }
 0x2ba   : > { %v831_v19 = vpop.permute.xlu0 %830 }
 0x2bb   : > { %1138 = vmatmul.mubr.msk.bf16.vlgmr.msra.gmra.mxu0 %vm438_vm2, %v495_v5  ;;  %v836_v21 = vsel %vm501_vm3, %v831_v19, 0 }
 0x2bc   : > { %v1212_v7 = vpop.eup %1211  ;;  %1148 = vmatpush3.bf16.msra.mxu0 %v614_v6  ;;  %1149 = vmatprep.mubr.msk.bf16.mxu0 %vm1236_vm0, %v1235_v3 }
 0x2bd   : > { %v604_v9 = vsel %vm438_vm2, %v1212_v7, 0.0  ;;  %1159 = vmatprep.subr.bf16.mxu0 %v1235_v3  ;;  %v607_v11 = vpack.c.bf16 %v1212_v7, %v1212_v7 }
 0x2be   : > { %605 = vadd.xlane.f32.xlu1 %v604_v9 }
 0x2c2   : > { %493 = vadd.xlane.f32.xlu1 %v492_v10 }
 0x2c3   : > { %1150 = vmatmul.mubr.msk.bf16.vlgmr.msra.gmra.mxu0 %vm438_vm2, %v607_v11 }
 0x2c4   : > { %v1214_v12 = vpop.eup %1213  ;;  %1161 = vmatprep.mubr.msk.bf16.mxu0 %vm1236_vm0, %v1235_v3 }
 0x2c5   : > { %v715_v13 = vsel %vm438_vm2, %v1214_v12, 0.0  ;;  %v718_v20 = vpack.c.bf16 %v1214_v12, %v1214_v12 }
 0x2c6   : > { %716 = vadd.xlane.f32.xlu0 %v715_v13 }
 0x2d7   : > { %v822_v14 = vpop.xlane.xlu1 %821 }
 0x2d8   : > { %v823_v15 = vsub.f32 %v819_v53, %v822_v14 }
 0x2da   : > { %v824_v16 = vmul.f32 1.442695, %v823_v15 }
 0x2db   : > { %v720_v17 = vpop.permute.xlu1 %719 }
 0x2dc   : > { %1215 = vpow2.f32 %v824_v16  ;;  %v725_v18 = vsel %vm501_vm3, %v720_v17, 0 }
 0x2dd   : > { %1160 = vmatpush3.bf16.msra.mxu0 %v725_v18 }
 0x2de   : > { %1171 = vmatprep.subr.bf16.mxu0 %v1235_v3 }
 0x2e0   : > { %1162 = vmatmul.mubr.msk.bf16.vlgmr.msra.gmra.mxu0 %vm438_vm2, %v718_v20 }
 0x2e1   : > { %1172 = vmatpush3.bf16.msra.mxu0 %v836_v21  ;;  %1173 = vmatprep.mubr.msk.bf16.mxu0 %vm1236_vm0, %v1235_v3  ;;  %v1096_v21 = vld [vmem:[%s1465_s8] ss:$0 sm:$0xff] }
 0x2e9   : > { %v1216_v22 = vpop.eup %1215 }
 0x2ea   : > { %v826_v23 = vsel %vm438_vm2, %v1216_v22, 0.0  ;;  %v829_v24 = vpack.c.bf16 %v1216_v22, %v1216_v22 }
 0x2eb   : > { %827 = vadd.xlane.f32.xlu0 %v826_v23 }
 0x2ec   : > { %1174 = vmatmul.mubr.msk.bf16.vlgmr.msra.gmra.mxu0 %vm438_vm2, %v829_v24 }
 0x347   : > { %v606_v25 = vpop.xlane.xlu1 %605 }
 0x348   : > { %1217 = vrcp.f32 %v606_v25 }
 0x34b   : > { %v494_v55 = vpop.xlane.xlu1 %493 }
 0x34f   : > { %v717_v36 = vpop.xlane.xlu0 %716 }
 0x350   : > { %1219 = vrcp.f32 %v717_v36 }
 0x355   : > { %v1218_v30 = vpop.eup %1217 }
 0x35d   : > { %v1220_v43 = vpop.eup %1219 }
 0x374   : > { %v828_v40 = vpop.xlane.xlu0 %827 }
 0x375   : > { %1221 = vrcp.f32 %v828_v40 }
 0x376   : > { %1223 = vrcp.f32 %v494_v55 }
 0x37b   : > { %v539_v26 = vpop.f32.mrf.mxu0 }
 0x37d   : > { %v1139_v27 = vpop.f32.mrf.mxu0 }
 0x37f   : > { %v542_v28 = vpop.f32.mrf.mxu0 }
 0x381   : > { %v1140_v29 = vpop.f32.mrf.mxu0 }
 0x382   : > { %v1222_v49 = vpop.eup %1221 }
 0x383   : > { %v650_v31 = vpop.f32.mrf.mxu0  ;;  %v1224_v56 = vpop.eup %1223 }
 0x384   : > { %v657_v32 = vmul.f32 %v1218_v30, %v650_v31  ;;  %v546_v59 = vmul.f32 %v1224_v56, %v539_v26 }
 0x385   : > { %v1151_v33 = vpop.f32.mrf.mxu0 }
 0x386   : > { %881 = vrot.lane.b32.xlu0 %v657_v32, %s1248_s27 }
 0x387   : > { %v653_v34 = vpop.f32.mrf.mxu0 }
 0x389   : > { %v1152_v35 = vpop.f32.mrf.mxu0 }
 0x3a0   : > { %v761_v44 = vpop.f32.mrf.mxu0 }
 0x3a1   : > { %v768_v46 = vmul.f32 %v1220_v43, %v761_v44 }
 0x3a2   : > { %v1163_v47 = vpop.f32.mrf.mxu0 }
 0x3a3   : > { %885 = vrot.lane.b32.xlu1 %v768_v46, %s1249_s18 }
 0x3a4   : > { %v764_v48 = vpop.f32.mrf.mxu0 }
 0x3a6   : > { %v1164_v3 = vpop.f32.mrf.mxu0 }
 0x3ac   : > { %v872_v50 = vpop.f32.mrf.mxu0 }
 0x3ad   : > { %v879_v51 = vmul.f32 %v1222_v49, %v872_v50 }
 0x3ae   : > { %v1175_v52 = vpop.f32.mrf.mxu0 }
 0x3af   : > { %889 = vrot.lane.b32.xlu1 %v879_v51, %s1250_s19 }
 0x3b0   : > { %v875_v53 = vpop.f32.mrf.mxu0 }
 0x3b2   : > { %v1176_v54 = vpop.f32.mrf.mxu0 }
 0x3f8   : > { %v882_v57 = vpop.permute.xlu0 %881 }
 0x3f9   : > { %v892_v60 = vsel %vm438_vm2, %v546_v59, %v882_v57 }
 0x415   : > { %v886_v58 = vpop.permute.xlu1 %885 }
 0x416   : > { %v894_v61 = vsel %vm893_vm4, %v892_v60, %v886_v58 }
 0x421   : > { %v890_v62 = vpop.permute.xlu1 %889 }
 0x422   : > { %v896_v63 = vsel %vm895_vm5, %v894_v61, %v890_v62 }
 0x423   : > { %v897_v0 = vpack.c.bf16 %v896_v63, %v896_v63 }
 0x425   : > { %1182 = vmatmul.mubr.msk.bf16.vlgmr.msra.gmra.mxu1 %vm390_vm1, %v897_v0 }
 0x4e5   : > { %v948_v2 = vpop.f32.mrf.mxu1 }
 0x4e6   : > { %v949_v4 = vadd.f32 %v1093_v1, %v948_v2 }
 0x4e7   : > { %v1183_v5 = vpop.f32.mrf.mxu1 }
 0x4e8   : > { %v954_v6 = vadd.f32 %v949_v4, %v1344_v8  ;;  %v1095_v8 = vld [vmem:[%s1464_s7] ss:$0 sm:$0xff] }
 0x4e9   : > { %v951_v7 = vpop.f32.mrf.mxu1 }
 0x4ea   : > { %v957_v9 = vsel %vm390_vm1, %v954_v6, 0.0 }
 0x4eb   : > { %958 = vadd.xlane.f32.xlu0 %v957_v9  ;;  %v1184_v10 = vpop.f32.mrf.mxu1 }
 0x574   : > { %v959_v11 = vpop.xlane.xlu0 %958 }
 0x575   : > { %v961_v12 = vmul.f32 0.03125, %v959_v11 }
 0x577   : > { %v962_v13 = vsub.f32 %v954_v6, %v961_v12 }
 0x579   : > { %v963_v14 = vmul.f32 %v962_v13, %v962_v13 }
 0x57b   : > { %v964_v15 = vsel %vm390_vm1, %v963_v14, 0.0 }
 0x57c   : > { %965 = vadd.xlane.f32.xlu1 %v964_v15 }
 0x605   : > { %v966_v16 = vpop.xlane.xlu1 %965 }
 0x606   : > { %v967_v17 = vmul.f32 0.03125, %v966_v16 }
 0x608   : > { %v968_v18 = vadd.f32 1e-05, %v967_v17 }
 0x60a   : > { %1225 = vrsqrt.f32 %v968_v18 }
 0x617   : > { %v1226_v19 = vpop.eup %1225 }
 0x618   : > { %v970_v20 = vmul.f32 %v1226_v19, %v962_v13 }
 0x61a   : > { %v977_v22 = vmul.f32 %v1095_v8, %v970_v20 }
 0x61c   : > { %v984_v23 = vadd.f32 %v1096_v21, %v977_v22 }
 0x61e   : > { %985 = vst.msk [vmem:[%s360_s29] sm:$0xff] %vm390_vm1, %v984_v23  ;;  %v986_v24 = vsel %vm390_vm1, %v984_v23, 0.0 }
 0x61f   : > { %v987_v25 = vrot.slane %v986_v24, 4 }
 0x621   : > { %v988_v26 = vadd.f32 %v987_v25, %v986_v24 }
 0x623   : > { %v989_v27 = vrot.slane %v988_v26, 2 }
 0x625   : > { %v990_v28 = vadd.f32 %v989_v27, %v988_v26 }
 0x627   : > { %v991_v29 = vrot.slane %v990_v28, 1 }
 0x629   : > { %v992_v30 = vadd.f32 %v991_v29, %v990_v28 }
 0x62b   : > { %v994_v31 = vmul.f32 0.125, %v992_v30 }
 0x62d   : > { %996 = vst.msk [vmem:[%s363_s12] sm:$0x1] %vm995_vm6, %v994_v31 }
 0x62e PF: > { %s21_s13 = sadd.s32 1, %s1233_s13  }
 0x62f   : > { %p18_p4 = scmp.ge.s32.totalorder %s21_s13, 4  }
 0x631   :  { %20 = sbr.rel (!%p18_p4) target bundleno = 1 (0x1), region = 98 }

// kernel: fwd.6
= control target key start
LH: loop header
LB: loop body
LE: loop exit
PB: predicated region body
PF: predicated region fallthrough
CT: control target
= control target key end

     0   :  { %vm37_vm0 = vcmask 261120   ;;  %v259_v19 = vmov 0.0   ;;  %vm260_vm1 = vmmov 0   ;;  %s371_s0 = inlined_call_operand.vmem [shape: f32[16,32], index: 0, kind: input, shape index: {}]   ;;  %s372_s1 = inlined_call_operand.vmem [shape: f32[16,32], index: 1, kind: input, shape index: {}]   ;;  %s373_s5 = inlined_call_operand.vmem [shape: f32[32,128], index: 5, kind: input, shape index: {}]   ;;  %s374_s4 = inlined_call_operand.vmem [shape: f32[32,128], index: 4, kind: input, shape index: {}]   ;;  %s375_s2 = inlined_call_operand.vmem [shape: f32[1,32], index: 2, kind: input, shape index: {}]   ;;  %s376_s3 = inlined_call_operand.vmem [shape: f32[1,32], index: 3, kind: input, shape index: {}]   ;;  %s377_s7 = inlined_call_operand.vmem [shape: f32[16,32], index: 7, kind: output, shape index: {0}]   ;;  %s378_s6 = inlined_call_operand.vmem [shape: f32[1,128], index: 6, kind: input, shape index: {}]   ;;  %s379_s8 = inlined_call_operand.vmem [shape: f32[16,128], index: 8, kind: output, shape index: {1}]  }
   0x1   :  { %v29_v0 = vld [vmem:[%s372_s1] sm:$0xff]  ;;  %v30_v2 = vld [vmem:[%s372_s1 + $0x8] sm:$0xff]  ;;  %233 = vmatprep.subr.bf16.mxu0 %v259_v19  ;;  %v93_v20 = vld [vmem:[%s373_s5 + $0x10] sm:$0xff]  ;;  %241 = vmatprep.subr.bf16.mxu1 %v259_v19 }
   0x2   :  { %v31_v1 = vld [vmem:[%s371_s0] sm:$0xff]  ;;  %v32_v4 = vld [vmem:[%s371_s0 + $0x8] sm:$0xff]  ;;  %v90_v5 = vpack.c.bf16 %v30_v2, %v29_v0  ;;  %v94_v21 = vld [vmem:[%s373_s5 + $0x18] sm:$0xff]  ;;  %237 = vmatprep.mubr.msk.bf16.mxu0 %vm260_vm1, %v259_v19  ;;  %245 = vmatprep.mubr.msk.bf16.mxu1 %vm260_vm1, %v259_v19 }
   0x3   :  { %v33_v3 = vadd.f32 %v31_v1, %v29_v0  ;;  %v34_v6 = vadd.f32 %v32_v4, %v30_v2  ;;  %v91_v22 = vld [vmem:[%s373_s5] sm:$0xff]  ;;  %v96_v23 = vpack.c.bf16 %v94_v21, %v93_v20  ;;  %v92_v24 = vld [vmem:[%s373_s5 + $0x8] sm:$0xff]  ;;  %v86_v25 = vld [vmem:[%s374_s4 + $0x10] sm:$0xff] }
   0x4   :  { %v87_v26 = vld [vmem:[%s374_s4 + $0x18] sm:$0xff]  ;;  %v84_v28 = vld [vmem:[%s374_s4] sm:$0xff]  ;;  %v85_v29 = vld [vmem:[%s374_s4 + $0x8] sm:$0xff]  ;;  %v95_v30 = vpack.c.bf16 %v92_v24, %v91_v22 }
   0x5   :  { %v38_v7 = vsel %vm37_vm0, %v33_v3, 0.0  ;;  %v41_v8 = vsel %vm37_vm0, %v34_v6, 0.0  ;;  %v89_v27 = vpack.c.bf16 %v87_v26, %v86_v25  ;;  %234 = vmatpush3.bf16.msra.mxu0 %v96_v23  ;;  %v88_v31 = vpack.c.bf16 %v85_v29, %v84_v28  ;;  %v222_v39 = vld [vmem:[%s375_s2] ss:$0 sm:$0xff] }
   0x6   :  { %39 = vadd.xlane.f32.xlu0 %v38_v7  ;;  %235 = vmatprep.subr.bf16.mxu0 %v259_v19  ;;  %v223_v41 = vld [vmem:[%s376_s3] ss:$0 sm:$0xff] }
   0x7   :  { %242 = vmatpush3.bf16.msra.mxu1 %v89_v27  ;;  %v226_v54 = vld [vmem:[%s378_s6] ss:$0 sm:$0xff] }
   0x8   :  { %243 = vmatprep.subr.bf16.mxu1 %v259_v19 }
   0x9   :  { %236 = vmatpush3.bf16.msra.mxu0 %v95_v30 }
   0xa   :  { %42 = vadd.xlane.f32.xlu0 %v41_v8 }
   0xb   :  { %244 = vmatpush3.bf16.msra.mxu1 %v88_v31 }
   0xc   :  { %238 = vmatmul.mubr.msk.bf16.vlgmr.msra.gmra.mxu0 %vm37_vm0, %v90_v5 }
  0x8f   :  { %v40_v9 = vpop.xlane.xlu0 %39 }
  0x90   :  { %v45_v10 = vmul.f32 0.03125, %v40_v9 }
  0x92   :  { %v47_v11 = vsub.f32 %v33_v3, %v45_v10 }
  0x93   :  { %v43_v12 = vpop.xlane.xlu0 %42 }
  0x94   :  { %v46_v13 = vmul.f32 0.03125, %v43_v12  ;;  %v49_v14 = vmul.f32 %v47_v11, %v47_v11 }
  0x96   :  { %v48_v15 = vsub.f32 %v34_v6, %v46_v13  ;;  %v51_v16 = vsel %vm37_vm0, %v49_v14, 0.0 }
  0x97   :  { %52 = vadd.xlane.f32.xlu1 %v51_v16 }
  0x98   :  { %v50_v17 = vmul.f32 %v48_v15, %v48_v15 }
  0x9a   :  { %v54_v18 = vsel %vm37_vm0, %v50_v17, 0.0 }
  0x9b   :  { %55 = vadd.xlane.f32.xlu1 %v54_v18 }
  0xcc   :  { %v134_v49 = vpop.f32.mrf.mxu0 }
  0xce   :  { %v239_v50 = vpop.f32.mrf.mxu0 }
  0xd0   :  { %v137_v51 = vpop.f32.mrf.mxu0 }
  0xd2   :  { %v240_v52 = vpop.f32.mrf.mxu0 }
 0x120   :  { %v53_v32 = vpop.xlane.xlu1 %52 }
 0x121   :  { %v57_v33 = vmul.f32 0.03125, %v53_v32 }
 0x123   :  { %v59_v34 = vadd.f32 1e-05, %v57_v33 }
 0x124   :  { %v56_v35 = vpop.xlane.xlu1 %55 }
 0x125   :  { %251 = vrsqrt.f32 %v59_v34  ;;  %v58_v36 = vmul.f32 0.03125, %v56_v35 }
 0x127   :  { %v60_v37 = vadd.f32 1e-05, %v58_v36 }
 0x129   :  { %253 = vrsqrt.f32 %v60_v37 }
 0x132   :  { %v252_v38 = vpop.eup %251 }
 0x133   :  { %v63_v40 = vmul.f32 %v252_v38, %v47_v11 }
 0x135   :  { %v71_v42 = vmul.f32 %v222_v39, %v63_v40 }
 0x136   :  { %v254_v43 = vpop.eup %253 }
 0x137   :  { %v64_v44 = vmul.f32 %v254_v43, %v48_v15  ;;  %v79_v45 = vadd.f32 %v223_v41, %v71_v42 }
 0x139   :  { %v72_v46 = vmul.f32 %v222_v39, %v64_v44  ;;  %81 = vst.msk [vmem:[%s377_s7] sm:$0xff] %vm37_vm0, %v79_v45 }
 0x13b   :  { %v80_v47 = vadd.f32 %v223_v41, %v72_v46 }
 0x13d   :  { %82 = vst.msk [vmem:[%s377_s7 + $0x8] sm:$0xff] %vm37_vm0, %v80_v47  ;;  %v83_v48 = vpack.c.bf16 %v80_v47, %v79_v45 }
 0x13f   :  { %246 = vmatmul.mubr.msk.bf16.vlgmr.msra.gmra.mxu1 %vm37_vm0, %v83_v48 }
 0x1ff   :  { %v178_v53 = vpop.f32.mrf.mxu1 }
 0x200   :  { %v179_v55 = vadd.f32 %v178_v53, %v134_v49 }
 0x201   :  { %v247_v56 = vpop.f32.mrf.mxu1 }
 0x202   :  { %v192_v57 = vadd.f32 %v226_v54, %v179_v55 }
 0x203   :  { %v181_v58 = vpop.f32.mrf.mxu1 }
 0x204   :  { %v196_v59 = vmul.f32 0.044715, %v192_v57  ;;  %v182_v60 = vadd.f32 %v181_v58, %v137_v51  ;;  %v194_v9 = vmul.f32 0.5, %v192_v57 }
 0x205   :  { %v248_v61 = vpop.f32.mrf.mxu1 }
 0x206   :  { %v198_v62 = vmul.f32 %v196_v59, %v192_v57  ;;  %v193_v63 = vadd.f32 %v226_v54, %v182_v60 }
 0x208   :  { %v200_v0 = vmul.f32 %v198_v62, %v192_v57  ;;  %v197_v1 = vmul.f32 0.044715, %v193_v63  ;;  %v195_v13 = vmul.f32 0.5, %v193_v63 }
 0x20a   :  { %v202_v2 = vadd.f32 %v200_v0, %v192_v57  ;;  %v199_v3 = vmul.f32 %v197_v1, %v193_v63 }
 0x20c   :  { %v204_v4 = vmul.f32 0.7978846, %v202_v2  ;;  %v201_v5 = vmul.f32 %v199_v3, %v193_v63 }
 0x20e   :  { %255 = vtanh.f32 %v204_v4  ;;  %v203_v6 = vadd.f32 %v201_v5, %v193_v63 }
 0x210   :  { %v205_v7 = vmul.f32 0.7978846, %v203_v6 }
 0x212   :  { %257 = vtanh.f32 %v205_v7 }
 0x21b   :  { %v256_v8 = vpop.eup %255 }
 0x21c   :  { %v208_v10 = vadd.f32 1.0, %v256_v8 }
 0x21e   :  { %v210_v11 = vmul.f32 %v208_v10, %v194_v9 }
 0x21f   :  { %v258_v12 = vpop.eup %257 }
 0x220   :  { %212 = vst [vmem:[%s379_s8] sm:$0xff] %v210_v11  ;;  %v209_v14 = vadd.f32 1.0, %v258_v12 }
 0x222   :  { %v211_v15 = vmul.f32 %v209_v14, %v195_v13 }
 0x224   :  { %213 = vst [vmem:[%s379_s8 + $0x8] sm:$0xff] %v211_v15 }

// kernel: fwd.5
= control target key start
LH: loop header
LB: loop body
LE: loop exit
PB: predicated region body
PF: predicated region fallthrough
CT: control target
= control target key end

     0   :  { %s1814_s0 = inlined_call_operand.vmem [shape: s32[3], index: 0, kind: input, shape index: {}]   ;;  %s1815_s1 = inlined_call_operand.vmem [shape: f32[2,32], index: 1, kind: input, shape index: {}]   ;;  %s1816_s2 = inlined_call_operand.vmem [shape: f32[3,2,32], index: 2, kind: input, shape index: {}]   ;;  %s1817_s3 = inlined_call_operand.vmem [shape: f32[3,32,128], index: 3, kind: input, shape index: {}]   ;;  %s1818_s4 = inlined_call_operand.vmem [shape: f32[3,32,128], index: 4, kind: input, shape index: {}]   ;;  %s1819_s5 = inlined_call_operand.vmem [shape: f32[3,1,128], index: 5, kind: input, shape index: {}]   ;;  %s1820_s6 = inlined_call_operand.vmem [shape: f32[3,1,128], index: 6, kind: input, shape index: {}]   ;;  %s1821_s7 = inlined_call_operand.vmem [shape: f32[3,1,128], index: 7, kind: input, shape index: {}]   ;;  %s1822_s8 = inlined_call_operand.vmem [shape: f32[3,128,64], index: 8, kind: input, shape index: {}]   ;;  %s1823_s9 = inlined_call_operand.vmem [shape: f32[3,1,64], index: 9, kind: input, shape index: {}]   ;;  %s1824_s10 = inlined_call_operand.vmem [shape: f32[3,64,32], index: 10, kind: input, shape index: {}]   ;;  %s1825_s11 = inlined_call_operand.vmem [shape: f32[3,1,32], index: 11, kind: input, shape index: {}]   ;;  %s1826_s12 = inlined_call_operand.vmem [shape: f32[3,1,32], index: 12, kind: input, shape index: {}]   ;;  %s1827_s13 = inlined_call_operand.vmem [shape: f32[3,1,32], index: 13, kind: input, shape index: {}]   ;;  %s1828_s14 = inlined_call_operand.vmem [shape: f32[3,1,32], index: 14, kind: input, shape index: {}]   ;;  %s1829_s15 = inlined_call_operand.vmem [shape: f32[3,1,32], index: 15, kind: input, shape index: {}]   ;;  %s1830_s16 = inlined_call_operand.vmem [shape: f32[3,2,32], index: 16, kind: output, shape index: {}]  }
   0x1   :  { %1832 = sst [smem:[#allocation7_spill]] %s1814_s0 }
   0x2   :  { %1833 = sst [smem:[#allocation8_spill]] %s1819_s5 }
   0x3   :  { %s1834_s23 = sld [smem:[#allocation7_spill]] }
   0x9   :  { %s21_s5 = sshll.u32 %s1834_s23, 4  ;;  %s22_s5 = int_to_ptr.vmem [resolvable:$true] %s21_s5 }
   0xa   :  { %s1386_s24 = scalar_lea.vmem %s22_s5, 16  ;;  %p1391_p1 = scmp.lt.s32.totalorder %s22_s5, %s22_s5 }
   0xb   :  { %p1387_p0 = scmp.ne.s32.totalorder %s22_s5, %s1386_s24  ;;  %p1392_p2 = scmp.lt.s32.totalorder %s1386_s24, %s1386_s24 }
   0xd   :  { %p1393_p3 = por %p1392_p2, %p1391_p1 }
   0xf   :  { %p1394_p4 = pnand %p1393_p3, %p1387_p0 }
  0x11   :  { %1397 = shalt.err (!%p1394_p4)  }
  0x12   :  { %s1416_s25 = smov [#allocation4]  }
  0x13   :  { %24 = dma.vmem_to_smem %s22_s5, 16, %s1416_s25, [#allocation3] }
  0x14   :  { %1406 = dma.done.wait [#allocation3], 16 }
  0x15   :  { %1407 = vsyncadd [#allocation3], 4294967280 }
  0x16   :  { %26 = sfence }
  0x17   :  { %s1509_s26 = smov 0  }
  0x18 LB: > { %1835 = sst [smem:[#allocation6_spill]] %s1410_s26  ;;  %s1251_s27 = sadd.s32 4294967295, %s1410_s26   ;;  %s1410_s26 = sphi %s1509_s26, %s32_s26  }
  0x19   : > { %p1255_p5 = scmp.ge.s32.totalorder %s1410_s26, 1  ;;  %p555_p6 = scmp.lt.s32.totalorder %s1410_s26, 4 }
  0x1b   : > { %p556_p7 = pnand %p1255_p5, %p555_p6 }
  0x1c   : > { %p648_p8 = scmp.lt.s32.totalorder (!%p556_p7), %s1251_s27, 2  ;;  %s1519_s28 = sld [smem:[#allocation4 + %s1251_s27]] (!%p556_p7) }
  0x1d   : > { %559 = sbr.rel (%p556_p7) target bundleno = 1543 (0x607), region = 80 }
  0x22   : > { %v1417_v0 = vmov 0.0   ;;  %vm1418_vm0 = vmmov 0   ;;  %s1517_s5 = scalar_select %p648_p8, %s1251_s27, 2  ;;  %vm817_vm1 = vcmask 254976   ;;  %v709_v43 = vld [vmem:[%s1815_s1] sm:$0x3] }
  0x23   : > { %1303 = vmatprep.subr.bf16.mxu0 %v1417_v0  ;;  %1307 = vmatprep.mubr.msk.bf16.mxu0 %vm1418_vm0, %v1417_v0  ;;  %v758_v58 = vpack.c.bf16 %v709_v43, %v709_v43  ;;  %vm772_vm2 = vcmask 261120   ;;  %p1268_p9 = scmp.le.s32.totalorder %s1519_s28, 0 }
  0x24   : > { %s1256_s29 = sshll.u32 %s1517_s5, 1  ;;  %s1279_s30 = sshll.u32 %s1517_s5, 5 }
  0x25   : > { %s651_s18 = scalar_lea.vmem %s1816_s2, %s1256_s29  ;;  %s656_s21 = scalar_lea.vmem %s1817_s3, %s1279_s30 }
  0x26   : > { %s1534_s24 = scalar_lea.vmem %s1818_s4, %s1279_s30  ;;  %s667_s27 = scalar_lea.vmem %s1820_s6, %s1517_s5  ;;  %v1540_v1 = vld [vmem:[%s656_s21] sm:$0xff]  ;;  %v1542_v2 = vld [vmem:[%s656_s21 + $0x8] sm:$0xff]  ;;  %v1544_v3 = vld [vmem:[%s656_s21 + $0x10] sm:$0xff] }
  0x27   : > { %s670_s19 = scalar_lea.vmem %s1821_s7, %s1517_s5  ;;  %s1281_s30 = sshll.u32 %s1517_s5, 7  ;;  %v1551_v4 = vld [vmem:[%s656_s21 + $0x18] sm:$0xff]  ;;  %v1555_v6 = vld [vmem:[%s667_s27] ss:$0 sm:$0xff]  ;;  %v761_v7 = vld [vmem:[%s1534_s24 + $0x10] sm:$0xff] }
  0x28   : > { %s1561_s22 = scalar_lea.vmem %s1822_s8, %s1281_s30  ;;  %v1565_v9 = vld [vmem:[%s670_s19] ss:$0 sm:$0xff]  ;;  %v762_v10 = vld [vmem:[%s1534_s24 + $0x18] sm:$0xff]  ;;  %s1282_s21 = sshll.u32 %s1517_s5, 6  ;;  %v760_v56 = vld [vmem:[%s1534_s24 + $0x8] sm:$0xff] }
  0x29   : > { %v816_v11 = vld [vmem:[%s651_s18] sm:$0x3]  ;;  %v1573_v13 = vld [vmem:[%s1561_s22 + $0x8] sm:$0xff]  ;;  %v1576_v14 = vld [vmem:[%s1561_s22 + $0x10] sm:$0xff]  ;;  %v764_v15 = vpack.c.bf16 %v762_v10, %v761_v7  ;;  %s1593_s25 = scalar_lea.vmem %s1824_s10, %s1282_s21  ;;  %s1621_s18 = scalar_lea.vmem %s1830_s16, %s1256_s29 }
  0x2a   : > { %v1570_v12 = vld [vmem:[%s1561_s22] sm:$0xff]  ;;  %818 = vst.msk [vmem:[#allocation2] sm:$0x3] %vm817_vm1, %v816_v11  ;;  %v1580_v16 = vld [vmem:[%s1561_s22 + $0x18] sm:$0xff]  ;;  %v1586_v18 = vld [vmem:[%s1561_s22 + $0x28] sm:$0xff]  ;;  %s678_s0 = scalar_lea.vmem %s1823_s9, %s1517_s5  ;;  %s705_s29 = scvt.s32.f32 %s1519_s28 }
  0x2b   : > { %v1583_v17 = vld [vmem:[%s1561_s22 + $0x20] sm:$0xff]  ;;  %v1600_v20 = vld [vmem:[%s1561_s22 + $0x30] sm:$0xff]  ;;  %v1603_v21 = vld [vmem:[%s1561_s22 + $0x38] sm:$0xff]  ;;  %1304 = vmatpush3.bf16.msra.mxu0 %v764_v15  ;;  %s686_s20 = scalar_lea.vmem %s1825_s11, %s1517_s5  ;;  %s689_s27 = scalar_lea.vmem %s1826_s12, %s1517_s5 }
  0x2c   : > { %v1606_v22 = vld [vmem:[%s1561_s22 + $0x40] sm:$0xff]  ;;  %v734_v24 = vpack.c.bf16 %v1586_v18, %v1583_v17  ;;  %v1624_v25 = vld [vmem:[%s1561_s22 + $0x48] sm:$0xff]  ;;  %v1627_v26 = vld [vmem:[%s1561_s22 + $0x50] sm:$0xff]  ;;  %v735_v28 = vpack.c.bf16 %v1603_v21, %v1600_v20  ;;  %1305 = vmatprep.subr.bf16.mxu0 %v1417_v0  ;;  %s692_s19 = scalar_lea.vmem %s1827_s13, %s1517_s5  ;;  %v706_v44 = vstv %s705_s29 }
  0x2d   : > { %v1630_v27 = vld [vmem:[%s1561_s22 + $0x58] sm:$0xff]  ;;  %v1639_v29 = vld [vmem:[%s1561_s22 + $0x60] sm:$0xff]  ;;  %v1642_v30 = vld [vmem:[%s1561_s22 + $0x68] sm:$0xff]  ;;  %v736_v32 = vpack.c.bf16 %v1624_v25, %v1606_v22  ;;  %1374 = vrcp.f32 %v706_v44 }
  0x2e   : > { %v1645_v31 = vld [vmem:[%s1561_s22 + $0x70] sm:$0xff]  ;;  %v737_v33 = vpack.c.bf16 %v1630_v27, %v1627_v26  ;;  %v1661_v34 = vld [vmem:[%s1561_s22 + $0x78] sm:$0xff]  ;;  %v738_v35 = vpack.c.bf16 %v1642_v30, %v1639_v29  ;;  %v1666_v36 = vld [vmem:[%s1593_s25] sm:$0xff] }
  0x2f   : > { %v1669_v37 = vld [vmem:[%s1593_s25 + $0x8] sm:$0xff]  ;;  %v739_v38 = vpack.c.bf16 %v1661_v34, %v1645_v31  ;;  %v1678_v39 = vld [vmem:[%s1593_s25 + $0x10] sm:$0xff]  ;;  %v1681_v40 = vld [vmem:[%s1593_s25 + $0x18] sm:$0xff] }
  0x30   : > { %v1684_v41 = vld [vmem:[%s1593_s25 + $0x20] sm:$0xff]  ;;  %v748_v42 = vpack.c.bf16 %v1669_v37, %v1666_v36  ;;  %v1692_v45 = vld [vmem:[%s1593_s25 + $0x28] sm:$0xff]  ;;  %v1695_v46 = vld [vmem:[%s1593_s25 + $0x30] sm:$0xff]  ;;  %v749_v48 = vpack.c.bf16 %v1681_v40, %v1678_v39 }
  0x31   : > { %v1698_v47 = vld [vmem:[%s1593_s25 + $0x38] sm:$0xff]  ;;  %v750_v49 = vpack.c.bf16 %v1692_v45, %v1684_v41  ;;  %v1706_v51 = vld [vmem:[%s678_s0] ss:$0 sm:$0xff]  ;;  %s1836_s0 = sld [smem:[#allocation8_spill]] }
  0x32   : > { %v751_v50 = vpack.c.bf16 %v1698_v47, %v1695_v46  ;;  %v1708_v52 = vld [vmem:[%s686_s20] ss:$0 sm:$0xff] }
  0x33   : > { %v1710_v53 = vld [vmem:[%s689_s27] sm:$0x1] }
  0x34   : > { %v1712_v54 = vld [vmem:[%s692_s19] sm:$0x1] }
  0x35   : > { %v759_v55 = vld [vmem:[%s1534_s24] sm:$0xff]  ;;  %s1726_s24 = smov (!%p1268_p9), 0  }
  0x36   : > { %v763_v57 = vpack.c.bf16 %v760_v56, %v759_v55 }
  0x37   : > { %s664_s29 = scalar_lea.vmem %s1836_s0, %s1517_s5 }
  0x38   : > { %1306 = vmatpush3.bf16.msra.mxu0 %v763_v57  ;;  %v1266_v60 = vld [vmem:[%s664_s29] ss:$0 sm:$0xff] }
  0x3a   : > { %v1375_v59 = vpop.eup %1374 }
  0x3b   : > { %1308 = vmatmul.mubr.msk.bf16.vlgmr.msra.gmra.mxu0 %vm772_vm2, %v758_v58  ;;  %1351 = vpush %v1375_v59 }
  0x6c   : > { %s1717_s25 = spop %1351 }
  0xfb   : > { %v810_v61 = vpop.f32.mrf.mxu0 }
  0xfc   : > { %v1723_v62 = vadd.f32 %v1266_v60, %v810_v61 }
  0xfd   : > { %v1309_v63 = vpop.f32.mrf.mxu0  ;;  %1150 = sbr.rel (%p1268_p9) target bundleno = 1227 (0x4cb), region = 150 }
  0xff   : > { %v813_v0 = vpop.f32.mrf.mxu0 }
 0x101   : > { %v1310_v7 = vpop.f32.mrf.mxu0 }
 0x102 LB: >> { %v1419_v10 = vmov 0.0   ;;  %vm1420_vm3 = vmmov 0   ;;  %v1837_v8 = vpack.c.bf16 %v1551_v4, %v1544_v3  ;;  %v1735_v11 = vld [vmem:[#allocation2] sm:$0x3]  ;;  %v1838_v5 = vpack.c.bf16 %v1542_v2, %v1540_v1  ;;  %s1015_s20 = scvt.s32.f32 %s1414_s24  ;;  %s822_s24 = sadd.s32 1, %s1414_s24   ;;  %s1414_s24 = sphi %s1726_s24, %s822_s24  }
 0x103   : >> { %1311 = vmatprep.subr.bf16.mxu0 %v1419_v10  ;;  %1315 = vmatprep.mubr.msk.bf16.mxu0 %vm1420_vm3, %v1419_v10  ;;  %v826_v15 = vpack.c.bf16 %v1735_v11, %v1735_v11  ;;  %v1839_v23 = vpack.c.bf16 %v1580_v16, %v1576_v14  ;;  %v1840_v19 = vpack.c.bf16 %v1573_v13, %v1570_v12  ;;  %vm870_vm4 = vcmask 1041408   ;;  %p821_p10 = scmp.ge.s32.totalorder %s822_s24, %s1519_s28 }
 0x104   : >> { %1312 = vmatpush3.bf16.msra.mxu0 %v1837_v8  ;;  %1319 = vmatprep.subr.bf16.mxu1 %v1419_v10  ;;  %vm971_vm5 = vcmask 523264   ;;  %s1016_s21 = smul.f32 %s1717_s25, %s1015_s20 }
 0x105   : >> { %1313 = vmatprep.subr.bf16.mxu0 %v1419_v10  ;;  %1320 = vmatpush3.bf16.msra.mxu1 %v739_v38 }
 0x106   : >> { %1321 = vmatprep.subr.bf16.mxu1 %v1419_v10  ;;  %1335 = vmatprep.mubr.msk.bf16.mxu1 %vm1420_vm3, %v1419_v10 }
 0x108   : >> { %1314 = vmatpush3.bf16.msra.mxu0 %v1838_v5 }
 0x109   : >> { %1322 = vmatpush3.bf16.msra.mxu1 %v738_v35  ;;  %1339 = vmatprep.subr.bf16.mxu0 %v1419_v10 }
 0x10a   : >> { %1323 = vmatprep.subr.bf16.mxu1 %v1419_v10 }
 0x10b   : >> { %1316 = vmatmul.mubr.msk.bf16.vlgmr.msra.gmra.mxu0 %vm772_vm2, %v826_v15 }
 0x10c   : >> { %1340 = vmatpush3.bf16.msra.mxu0 %v751_v50  ;;  %1347 = vmatprep.mubr.msk.bf16.mxu0 %vm1420_vm3, %v1419_v10 }
 0x10d   : >> { %1324 = vmatpush3.bf16.msra.mxu1 %v737_v33  ;;  %1341 = vmatprep.subr.bf16.mxu0 %v1419_v10 }
 0x10e   : >> { %1325 = vmatprep.subr.bf16.mxu1 %v1419_v10 }
 0x110   : >> { %1342 = vmatpush3.bf16.msra.mxu0 %v750_v49 }
 0x111   : >> { %1326 = vmatpush3.bf16.msra.mxu1 %v736_v32  ;;  %1343 = vmatprep.subr.bf16.mxu0 %v1419_v10 }
 0x112   : >> { %1327 = vmatprep.subr.bf16.mxu1 %v1419_v10 }
 0x114   : >> { %1344 = vmatpush3.bf16.msra.mxu0 %v749_v48 }
 0x115   : >> { %1328 = vmatpush3.bf16.msra.mxu1 %v735_v28  ;;  %1345 = vmatprep.subr.bf16.mxu0 %v1419_v10 }
 0x116   : >> { %1329 = vmatprep.subr.bf16.mxu1 %v1419_v10 }
 0x118   : >> { %1346 = vmatpush3.bf16.msra.mxu0 %v748_v42 }
 0x119   : >> { %1330 = vmatpush3.bf16.msra.mxu1 %v734_v24 }
 0x11a   : >> { %1331 = vmatprep.subr.bf16.mxu1 %v1419_v10 }
 0x11d   : >> { %1332 = vmatpush3.bf16.msra.mxu1 %v1839_v23 }
 0x11e   : >> { %1333 = vmatprep.subr.bf16.mxu1 %v1419_v10 }
 0x121   : >> { %1334 = vmatpush3.bf16.msra.mxu1 %v1840_v19 }
 0x1cb   : >> { %v864_v43 = vpop.f32.mrf.mxu0 }
 0x1cc   : >> { %v865_v44 = vadd.f32 %v864_v43, %v1723_v62 }
 0x1cd   : >> { %v1317_v55 = vpop.f32.mrf.mxu0 }
 0x1ce   : >> { %v871_v56 = vsel %vm870_vm4, %v865_v44, 0.0 }
 0x1cf   : >> { %872 = vadd.xlane.f32.xlu0 %v871_v56  ;;  %v867_v57 = vpop.f32.mrf.mxu0 }
 0x1d1   : >> { %v1318_v58 = vpop.f32.mrf.mxu0 }
 0x258   : >> { %v873_v59 = vpop.xlane.xlu0 %872 }
 0x259   : >> { %v875_v60 = vmul.f32 0.0078125, %v873_v59 }
 0x25b   : >> { %v876_v61 = vsub.f32 %v865_v44, %v875_v60 }
 0x25d   : >> { %v877_v63 = vmul.f32 %v876_v61, %v876_v61 }
 0x25f   : >> { %v878_v0 = vsel %vm870_vm4, %v877_v63, 0.0 }
 0x260   : >> { %879 = vadd.xlane.f32.xlu0 %v878_v0 }
 0x2e9   : >> { %v880_v7 = vpop.xlane.xlu0 %879 }
 0x2ea   : >> { %v881_v10 = vmul.f32 0.0078125, %v880_v7 }
 0x2ec   : >> { %v882_v15 = vadd.f32 1e-05, %v881_v10 }
 0x2ee   : >> { %1376 = vrsqrt.f32 %v882_v15 }
 0x2fb   : >> { %v1377_v5 = vpop.eup %1376 }
 0x2fc   : >> { %v884_v8 = vmul.f32 %v1377_v5, %v876_v61 }
 0x2fe   : >> { %v891_v19 = vmul.f32 %v1555_v6, %v884_v8 }
 0x300   : >> { %v898_v43 = vadd.f32 %v1565_v9, %v891_v19 }
 0x302   : >> { %v900_v55 = vmul.f32 0.044715, %v898_v43  ;;  %v899_v59 = vmul.f32 0.5, %v898_v43 }
 0x304   : >> { %v901_v56 = vmul.f32 %v900_v55, %v898_v43 }
 0x306   : >> { %v902_v57 = vmul.f32 %v901_v56, %v898_v43 }
 0x308   : >> { %v903_v58 = vadd.f32 %v902_v57, %v898_v43 }
 0x30a   : >> { %v904_v23 = vmul.f32 0.7978846, %v903_v58 }
 0x30c   : >> { %1378 = vtanh.f32 %v904_v23 }
 0x319   : >> { %v1379_v44 = vpop.eup %1378 }
 0x31a   : >> { %v906_v60 = vadd.f32 1.0, %v1379_v44 }
 0x31c   : >> { %v907_v63 = vmul.f32 %v906_v60, %v899_v59  ;;  %v1017_v60 = vstv %s1016_s21 }
 0x31e   : >> { %v908_v0 = vpack.c.bf16 %v907_v63, %v907_v63  ;;  %v1018_v63 = vmul.f32 %v1017_v60, %v1710_v53 }
 0x320   : >> { %1336 = vmatmul.mubr.bf16.vlgmr.msra.gmra.mxu1 %v908_v0  ;;  %v1019_v0 = vadd.f32 %v1018_v63, %v1712_v54 }
 0x3e0   : >> { %v949_v7 = vpop.f32.mrf.mxu1 }
 0x3e1   : >> { %v950_v10 = vadd.f32 %v1706_v51, %v949_v7  ;;  %v1024_v7 = vlaneseq }
 0x3e2   : >> { %v1337_v5 = vpop.f32.mrf.mxu1 }
 0x3e3   : >> { %v956_v8 = vmul.f32 0.044715, %v950_v10  ;;  %v955_v43 = vmul.f32 0.5, %v950_v10  ;;  %v1025_v5 = vshrl.u32 %v1024_v7, 7 }
 0x3e4   : >> { %v952_v19 = vpop.f32.mrf.mxu1 }
 0x3e5   : >> { %v957_v61 = vmul.f32 %v956_v8, %v950_v10  ;;  %v1026_v8 = vsub.s32 0, %v1025_v5 }
 0x3e6   : >> { %v1338_v15 = vpop.f32.mrf.mxu1 }
 0x3e7   : >> { %v958_v55 = vmul.f32 %v957_v61, %v950_v10 }
 0x3e9   : >> { %v959_v56 = vadd.f32 %v958_v55, %v950_v10  ;;  %v1021_v10 = vstv %s1717_s25 }
 0x3eb   : >> { %v960_v57 = vmul.f32 0.7978846, %v959_v56 }
 0x3ed   : >> { %1380 = vtanh.f32 %v960_v57 }
 0x3ee   : >> { %1382 = vtanh.f32 %v1019_v0 }
 0x3fa   : >> { %v1381_v23 = vpop.eup %1380 }
 0x3fb   : >> { %v962_v58 = vadd.f32 1.0, %v1381_v23  ;;  %v1383_v19 = vpop.eup %1382 }
 0x3fc   : >> { %v1027_v55 = vrot.slane %v1383_v19, %v1026_v8 }
 0x3fd   : >> { %v963_v44 = vmul.f32 %v962_v58, %v955_v43 }
 0x3ff   : >> { %v964_v59 = vpack.c.bf16 %v963_v44, %v963_v44 }
 0x401   : >> { %1348 = vmatmul.mubr.msk.bf16.vlgmr.msra.gmra.mxu0 %vm971_vm5, %v964_v59 }
 0x4c1   : >> { %v1009_v61 = vpop.f32.mrf.mxu0 }
 0x4c2   : >> { %v1010_v15 = vadd.f32 %v1708_v52, %v1009_v61 }
 0x4c3   : >> { %v1349_v56 = vpop.f32.mrf.mxu0 }
 0x4c4   : >> { %v1022_v57 = vmul.f32 %v1021_v10, %v1010_v15 }
 0x4c5   : >> { %v1012_v23 = vpop.f32.mrf.mxu0 }
 0x4c6   : >> { %v1029_v43 = vmul.f32 %v1027_v55, %v1022_v57  ;;  %824 = sbr.rel (!%p821_p10) target bundleno = 258 (0x102), region = 156 }
 0x4c7   : >> { %v1350_v58 = vpop.f32.mrf.mxu0 }
 0x4c8   : >> { %v1030_v44 = vadd.f32 %v1029_v43, %v1735_v11 }
 0x4ca   : >> { %1031 = vst.msk [vmem:[#allocation2] sm:$0x3] %vm817_vm1, %v1030_v44 }
 0x4cb PF: > { %s1841_s27 = scalar_lea.vmem %s1828_s14, %s1517_s5  ;;  %s1842_s30 = scalar_lea.vmem %s1829_s15, %s1517_s5 }
 0x4cc   : > { %v1275_v1 = vld [vmem:[%s1841_s27] ss:$0 sm:$0xff] }
 0x4cd   : > { %v1276_v3 = vld [vmem:[%s1842_s30] ss:$0 sm:$0xff] }
 0x4d1   : > { %v1032_v59 = vld [vmem:[#allocation2] sm:$0x3] }
 0x4d2   : > { %v1035_v60 = vsel %vm817_vm1, %v1032_v59, 0.0 }
 0x4d3   : > { %1036 = vadd.xlane.f32.xlu0 %v1035_v60 }
 0x55c   : > { %v1037_v63 = vpop.xlane.xlu0 %1036 }
 0x55d   : > { %v1039_v0 = vmul.f32 0.03125, %v1037_v63 }
 0x55f   : > { %v1040_v11 = vsub.f32 %v1032_v59, %v1039_v0 }
 0x561   : > { %v1041_v7 = vmul.f32 %v1040_v11, %v1040_v11 }
 0x563   : > { %v1042_v5 = vsel %vm817_vm1, %v1041_v7, 0.0 }
 0x564   : > { %1043 = vadd.xlane.f32.xlu0 %v1042_v5 }
 0x5ed   : > { %v1044_v8 = vpop.xlane.xlu0 %1043 }
 0x5ee   : > { %v1045_v19 = vmul.f32 0.03125, %v1044_v8 }
 0x5f0   : > { %v1046_v61 = vadd.f32 1e-05, %v1045_v19 }
 0x5f2   : > { %1384 = vrsqrt.f32 %v1046_v61 }
 0x5ff   : > { %v1385_v10 = vpop.eup %1384 }
 0x600   : > { %v1048_v2 = vmul.f32 %v1385_v10, %v1040_v11 }
 0x602   : > { %v1055_v4 = vmul.f32 %v1275_v1, %v1048_v2 }
 0x604   : > { %v1062_v6 = vadd.f32 %v1276_v3, %v1055_v4 }
 0x606   : > { %1063 = vst.msk [vmem:[%s1621_s18] sm:$0x3] %vm817_vm1, %v1062_v6 }
 0x607 PF: > { %s1843_s25 = sld [smem:[#allocation6_spill]] }
 0x60d   : > { %s32_s26 = sadd.s32 1, %s1843_s25  }
 0x60e   : > { %p29_p11 = scmp.ge.s32.totalorder %s32_s26, 5  }
 0x610   :  { %31 = sbr.rel (!%p29_p11) target bundleno = 24 (0x18), region = 167 }

// kernel: fwd.7
= control target key start
LH: loop header
LB: loop body
LE: loop exit
PB: predicated region body
PF: predicated region fallthrough
CT: control target
= control target key end

     0   :  { %s1865_s0 = inlined_call_operand.vmem [shape: f32[16,32], index: 0, kind: input, shape index: {}]   ;;  %s1866_s1 = inlined_call_operand.vmem [shape: f32[16,4], index: 1, kind: input, shape index: {}]   ;;  %s1867_s2 = inlined_call_operand.vmem [shape: f32[4,32,512], index: 2, kind: input, shape index: {}]   ;;  %s1868_s3 = inlined_call_operand.vmem [shape: f32[4,1,512], index: 3, kind: input, shape index: {}]   ;;  %s1869_s4 = inlined_call_operand.vmem [shape: f32[4,1,512], index: 4, kind: input, shape index: {}]   ;;  %s1870_s5 = inlined_call_operand.vmem [shape: f32[4,1,512], index: 5, kind: input, shape index: {}]   ;;  %s1871_s6 = inlined_call_operand.vmem [shape: f32[4,512,32], index: 6, kind: input, shape index: {}]   ;;  %s1872_s7 = inlined_call_operand.vmem [shape: f32[4,1,32], index: 7, kind: input, shape index: {}]   ;;  %s1873_s8 = inlined_call_operand.vmem [shape: f32[1,32], index: 8, kind: input, shape index: {}]   ;;  %s1874_s9 = inlined_call_operand.vmem [shape: f32[1,32], index: 9, kind: input, shape index: {}]   ;;  %s1875_s10 = inlined_call_operand.hbm [shape: f32[16,32], index: 10, kind: output, shape index: {}]  }
   0x1   :  { %1877 = sst [smem:[#allocation8_spill]] %s1867_s2 }
   0x2   :  { %15 = vsyncpa [#allocation4], 0  ;;  %s1533_s13 = smov 0   ;;  %s1535_s14 = smov 0  }
   0x3   :  { %s1537_s15 = smov 0  }
   0x4 LB: > { %1878 = sst [smem:[#allocation6_spill]] %s1466_s14  ;;  %s30_s17 = sadd.s32 1, %s1466_s14  ;;  %s1470_s15 = sphi %s1537_s15, %s21_s15   ;;  %s1466_s14 = sphi %s1535_s14, %s1884_s14   ;;  %s1462_s13 = sphi %s1533_s13, %s1883_s13  }
   0x5   : > { %p31_p0 = scmp.ge.s32.totalorder %s30_s17, 4  ;;  %p1286_p1 = scmp.ge.s32.totalorder %s1470_s15, 1 }
   0x6   : > { %p392_p2 = scmp.lt.s32.totalorder %s1470_s15, 5 }
   0x7   : > { %s1886_s17 = smov (%p31_p0, %s30_s17), 0 }
   0x8   : > { %1879 = sst [smem:[#allocation7_spill]] %s1886_s17  ;;  %p393_p3 = pnand %p1286_p1, %p392_p2 }
   0x9   : > { %p467_p4 = scmp.lt.s32.totalorder (!%p393_p3), %s1462_s13, 3  ;;  %s1880_s2 = sld [smem:[#allocation8_spill]] (!%p393_p3) }
   0xa   : > { %396 = sbr.rel (%p393_p3) target bundleno = 1141 (0x475), region = 60  ;;  %p1294_p5 = scmp.ne.s32.totalorder (!%p393_p3), %s1462_s13, 0 }
   0xf   : > { %s1556_s18 = scalar_select %p467_p4, %s1462_s13, 3 }
  0x11   : > { %s1310_s19 = sshll.u32 %s1556_s18, 7  ;;  %s1560_s20 = sshll.u32 %s1556_s18, 2 }
  0x12   : > { %s1565_s23 = scalar_lea.vmem %s1880_s2, %s1310_s19  ;;  %s475_s26 = scalar_lea.vmem %s1868_s3, %s1560_s20 }
  0x13   : > { %s479_s29 = scalar_lea.vmem %s1869_s4, %s1560_s20  ;;  %s483_s12 = scalar_lea.vmem %s1870_s5, %s1560_s20 }
  0x14   : > { %s1311_s16 = sshll.u32 %s1556_s18, 9  ;;  %s491_s22 = scalar_lea.vmem %s1872_s7, %s1556_s18 }
  0x15   : > { %s1587_s2 = scalar_lea.vmem %s1871_s6, %s1311_s16  ;;  %497 = sbr.rel (%p1294_p5) target bundleno = 28 (0x1c), region = 64 }
  0x1a   : > { %vm498_vm0 = vcmask 261120   ;;  %v1472_v0 = vmov 0.0  }
  0x1b   : > { %499 = vst.msk [vmem:[#allocation2] sm:$0xff] %vm498_vm0, %v1472_v0  ;;  %500 = vst.msk [vmem:[#allocation2 + $0x8] sm:$0xff] %vm498_vm0, %v1472_v0 }
  0x1c PF: > { %v534_v1 = vld [vmem:[%s1565_s23 + $0x48] sm:$0xff]  ;;  %v536_v3 = vld [vmem:[%s1565_s23 + $0x58] sm:$0xff]  ;;  %v533_v6 = vld [vmem:[%s1565_s23 + $0x40] sm:$0xff]  ;;  %v1473_v8 = vmov 0   ;;  %vm571_vm1 = vcmask 261120   ;;  %v504_v29 = vlaneseq  ;;  %v1474_v48 = vmov 0.0  }
  0x1d   : > { %v538_v2 = vld [vmem:[%s1565_s23 + $0x68] sm:$0xff]  ;;  %v540_v5 = vld [vmem:[%s1565_s23 + $0x78] sm:$0xff]  ;;  %v537_v7 = vld [vmem:[%s1565_s23 + $0x60] sm:$0xff]  ;;  %607 = vmatprep.mubr.bf16.mxu0 %v1473_v8  ;;  %650 = vmatprep.mubr.bf16.mxu1 %v1473_v8  ;;  %vm1060_vm6 = vcmask 31744   ;;  %p1303_p6 = scmp.ne.s32.totalorder %s1462_s13, 3 }
  0x1e   : > { %v546_v4 = vpack.c.bf16 %v538_v2, %v534_v1  ;;  %v548_v9 = vpack.c.bf16 %v540_v5, %v536_v3  ;;  %v545_v10 = vpack.c.bf16 %v537_v7, %v533_v6  ;;  %v535_v11 = vld [vmem:[%s1565_s23 + $0x50] sm:$0xff]  ;;  %v526_v13 = vld [vmem:[%s1565_s23 + $0x8] sm:$0xff]  ;;  %v528_v16 = vld [vmem:[%s1565_s23 + $0x18] sm:$0xff]  ;;  %v552_v30 = vshrl.u32 %v504_v29, 7 }
  0x1f   : > { %v539_v12 = vld [vmem:[%s1565_s23 + $0x70] sm:$0xff]  ;;  %v530_v15 = vld [vmem:[%s1565_s23 + $0x28] sm:$0xff]  ;;  %v532_v17 = vld [vmem:[%s1565_s23 + $0x38] sm:$0xff]  ;;  %v1615_v31 = vand.u32 127, %v504_v29 }
  0x20   : > { %587 = vmatprep.subr.bf16.mxu0 %v546_v4  ;;  %v547_v14 = vpack.c.bf16 %v539_v12, %v535_v11  ;;  %630 = vmatprep.subr.bf16.mxu1 %v548_v9  ;;  %v542_v18 = vpack.c.bf16 %v530_v15, %v526_v13  ;;  %v544_v19 = vpack.c.bf16 %v532_v17, %v528_v16  ;;  %v525_v20 = vld [vmem:[%s1565_s23] sm:$0xff]  ;;  %v527_v22 = vld [vmem:[%s1565_s23 + $0x10] sm:$0xff]  ;;  %v523_v26 = vld [vmem:[%s1865_s0 + $0x8] sm:$0xff]  ;;  %v1619_v32 = vsub.s32 0, %v552_v30 }
  0x21   : > { %588 = vmatpush1.bf16.msra.mxu0 %v545_v10  ;;  %v529_v21 = vld [vmem:[%s1565_s23 + $0x20] sm:$0xff]  ;;  %v531_v24 = vld [vmem:[%s1565_s23 + $0x30] sm:$0xff]  ;;  %s1312_s23 = sshll.u32 %s1462_s13, 7  ;;  %v1626_v34 = vsub.s32 2, %v552_v30  ;;  %v507_v35 = vadd.s32 256, %v1615_v31  ;;  %v506_v36 = vadd.s32 128, %v1615_v31 }
  0x22   : > { %631 = vmatpush1.bf16.msra.mxu1 %v547_v14  ;;  %v541_v23 = vpack.c.bf16 %v529_v21, %v525_v20  ;;  %v522_v25 = vld [vmem:[%s1865_s0] sm:$0xff]  ;;  %589 = vmatprep.subr.bf16.mxu0 %v542_v18  ;;  %v543_v27 = vpack.c.bf16 %v531_v24, %v527_v22  ;;  %s1617_s25 = sadd.s32 128, %s1312_s23  ;;  %v1630_v37 = vsub.s32 1, %v552_v30  ;;  %v1633_v39 = vsub.s32 3, %v552_v30 }
  0x23   : > { %632 = vmatprep.subr.bf16.mxu1 %v544_v19  ;;  %v524_v28 = vpack.c.bf16 %v523_v26, %v522_v25  ;;  %v549_v33 = vld [vmem:[%s475_s26] sm:$0xf]  ;;  %v509_v38 = vstv %s1617_s25  ;;  %v508_v41 = vadd.s32 384, %v1615_v31  ;;  %s503_s26 = scvt.s32.f32 %s1617_s25 }
  0x24   : > { %v554_v40 = vrot.slane %v549_v33, %v1619_v32  ;;  %v562_v42 = vrot.slane %v549_v33, %v1626_v34  ;;  %vm510_vm2 = vcmp.lt.s32.totalorder %v1615_v31, %v509_v38  ;;  %vm512_vm3 = vcmp.lt.s32.totalorder %v507_v35, %v509_v38 }
  0x25   : > { %590 = vmatpush1.bf16.msra.mxu0 %v541_v23  ;;  %vm511_vm4 = vcmp.lt.s32.totalorder %v506_v36, %v509_v38  ;;  %v558_v43 = vrot.slane %v549_v33, %v1630_v37  ;;  %v566_v45 = vrot.slane %v549_v33, %v1633_v39  ;;  %vm513_vm5 = vcmp.lt.s32.totalorder %v508_v41, %v509_v38 }
  0x26   : > { %633 = vmatpush1.bf16.msra.mxu1 %v543_v27  ;;  %v1296_v49 = vsel %vm510_vm2, 1.0, %v1474_v48  ;;  %v1298_v50 = vsel %vm512_vm3, 1.0, %v1474_v48  ;;  %v1297_v52 = vsel %vm511_vm4, 1.0, %v1474_v48  ;;  %v1299_v58 = vsel %vm513_vm5, 1.0, %v1474_v48 }
  0x27   : > { %v679_v16 = vstv %s503_s26 }
  0x28   : > { %1300 = vmatmul.mubr.msk.bf16.vlgmr.msra.gmra.mxu0 %vm571_vm1, %v524_v28  ;;  %1394 = vrcp.f32 %v679_v16  ;;  %v893_v16 = vld [vmem:[%s1587_s2 + $0xd0] sm:$0xff] }
  0x29   : > { %1301 = vmatmul.mubr.msk.bf16.vlgmr.msra.gmra.mxu1 %vm571_vm1, %v524_v28 }
  0x35   : > { %v1642_v17 = vpop.eup %1394 }
  0xe8   : > { %v609_v44 = vpop.f32.mrf.mxu0 }
  0xe9   : > { %v610_v46 = vadd.f32 %v609_v44, %v554_v40  ;;  %v652_v47 = vpop.f32.mrf.mxu1 }
  0xea   : > { %v653_v51 = vadd.f32 %v652_v47, %v562_v42  ;;  %v611_v53 = vpop.f32.mrf.mxu0 }
  0xeb   : > { %v612_v54 = vadd.f32 %v611_v53, %v558_v43  ;;  %v654_v55 = vpop.f32.mrf.mxu1  ;;  %v661_v59 = vmul.f32 %v1296_v49, %v610_v46 }
  0xec   : > { %v655_v56 = vadd.f32 %v654_v55, %v566_v45  ;;  %v613_v57 = vpop.f32.mrf.mxu0  ;;  %v663_v60 = vmul.f32 %v1298_v50, %v653_v51 }
  0xed   : > { %v662_v61 = vmul.f32 %v1297_v52, %v612_v54  ;;  %v614_v62 = vadd.f32 %v613_v57, %v554_v40  ;;  %v656_v63 = vpop.f32.mrf.mxu1  ;;  %v897_v57 = vld [vmem:[%s1587_s2 + $0xf0] sm:$0xff] }
  0xee   : > { %v615_v0 = vpop.f32.mrf.mxu0  ;;  %v657_v1 = vadd.f32 %v656_v63, %v562_v42  ;;  %v664_v5 = vmul.f32 %v1299_v58, %v655_v56  ;;  %v882_v63 = vld [vmem:[%s1587_s2 + $0x78] sm:$0xff] }
  0xef   : > { %v616_v2 = vadd.f32 %v615_v0, %v558_v43  ;;  %v658_v3 = vpop.f32.mrf.mxu1  ;;  %v669_v4 = vadd.f32 %v662_v61, %v661_v59  ;;  %v665_v6 = vmul.f32 %v1296_v49, %v614_v62  ;;  %v929_v59 = vld [vmem:[%s1587_s2 + $0x1f0] sm:$0xff]  ;;  %v930_v61 = vld [vmem:[%s1587_s2 + $0x1f8] sm:$0xff] }
  0xf0   : > { %v659_v8 = vadd.f32 %v658_v3, %v566_v45  ;;  %v667_v10 = vmul.f32 %v1298_v50, %v657_v1  ;;  %v962_v0 = vpack.c.bf16 %v930_v61, %v929_v59  ;;  %v914_v3 = vld [vmem:[%s1587_s2 + $0x178] sm:$0xff] }
  0xf1   : > { %v666_v7 = vmul.f32 %v1297_v52, %v616_v2  ;;  %v670_v9 = vadd.f32 %v669_v4, %v663_v60  ;;  %v895_v4 = vld [vmem:[%s1587_s2 + $0xe0] sm:$0xff]  ;;  %v874_v61 = vld [vmem:[%s1587_s2 + $0x38] sm:$0xff] }
  0xf2   : > { %v668_v13 = vmul.f32 %v1299_v58, %v659_v8  ;;  %1336 = vmatprep.subr.bf16.mxu1 %v962_v0  ;;  %v906_v0 = vld [vmem:[%s1587_s2 + $0x138] sm:$0xff] }
  0xf3   : > { %v674_v11 = vadd.f32 %v666_v7, %v665_v6  ;;  %v671_v12 = vadd.f32 %v670_v9, %v664_v5  ;;  %v896_v6 = vld [vmem:[%s1587_s2 + $0xe8] sm:$0xff]  ;;  %v927_v7 = vld [vmem:[%s1587_s2 + $0x1e0] sm:$0xff] }
  0xf4   : > { %v945_v9 = vpack.c.bf16 %v896_v6, %v895_v4  ;;  %v920_v4 = vld [vmem:[%s1587_s2 + $0x1a8] sm:$0xff] }
  0xf5   : > { %672 = vadd.xlane.f32.xlu0 %v671_v12  ;;  %v675_v14 = vadd.f32 %v674_v11, %v667_v10  ;;  %v879_v11 = vld [vmem:[%s1587_s2 + $0x60] sm:$0xff]  ;;  %v880_v12 = vld [vmem:[%s1587_s2 + $0x68] sm:$0xff] }
  0xf7   : > { %v676_v15 = vadd.f32 %v675_v14, %v668_v13  ;;  %v911_v13 = vld [vmem:[%s1587_s2 + $0x160] sm:$0xff]  ;;  %v937_v14 = vpack.c.bf16 %v880_v12, %v879_v11  ;;  %v904_v12 = vld [vmem:[%s1587_s2 + $0x128] sm:$0xff] }
  0xf9   : > { %677 = vadd.xlane.f32.xlu0 %v676_v15  ;;  %v912_v15 = vld [vmem:[%s1587_s2 + $0x168] sm:$0xff] }
 0x17e   : > { %v673_v18 = vpop.xlane.xlu0 %672 }
 0x17f   : > { %v681_v19 = vmul.f32 %v1642_v17, %v673_v18  ;;  %v894_v18 = vld [vmem:[%s1587_s2 + $0xd8] sm:$0xff] }
 0x181   : > { %v683_v20 = vsub.f32 %v610_v46, %v681_v19  ;;  %v684_v21 = vsub.f32 %v612_v54, %v681_v19  ;;  %v685_v22 = vsub.f32 %v653_v51, %v681_v19  ;;  %v686_v24 = vsub.f32 %v655_v56, %v681_v19 }
 0x182   : > { %v678_v23 = vpop.xlane.xlu0 %677  ;;  %v953_v19 = vpack.c.bf16 %v912_v15, %v911_v13  ;;  %v885_v13 = vld [vmem:[%s1587_s2 + $0x90] sm:$0xff] }
 0x183   : > { %v682_v25 = vmul.f32 %v1642_v17, %v678_v23  ;;  %v1646_v26 = vmul.f32 %v1296_v49, %v683_v20  ;;  %v1648_v27 = vmul.f32 %v1297_v52, %v684_v21  ;;  %v1650_v28 = vmul.f32 %v1298_v50, %v685_v22  ;;  %v925_v21 = vld [vmem:[%s1587_s2 + $0x1d0] sm:$0xff]  ;;  %v926_v22 = vld [vmem:[%s1587_s2 + $0x1d8] sm:$0xff] }
 0x184   : > { %v1654_v36 = vmul.f32 %v1299_v58, %v686_v24  ;;  %v944_v20 = vpack.c.bf16 %v894_v18, %v893_v16  ;;  %v877_v23 = vld [vmem:[%s1587_s2 + $0x50] sm:$0xff]  ;;  %v960_v24 = vpack.c.bf16 %v926_v22, %v925_v21  ;;  %v918_v16 = vld [vmem:[%s1587_s2 + $0x198] sm:$0xff] }
 0x185   : > { %v687_v29 = vsub.f32 %v614_v62, %v682_v25  ;;  %v688_v30 = vsub.f32 %v616_v2, %v682_v25  ;;  %v689_v33 = vsub.f32 %v657_v1, %v682_v25  ;;  %v699_v35 = vmul.f32 %v1646_v26, %v1646_v26  ;;  %v881_v62 = vld [vmem:[%s1587_s2 + $0x70] sm:$0xff]  ;;  %v870_v22 = vld [vmem:[%s1587_s2 + $0x18] sm:$0xff] }
 0x186   : > { %v700_v38 = vmul.f32 %v1648_v27, %v1648_v27  ;;  %v690_v40 = vsub.f32 %v659_v8, %v682_v25  ;;  %v701_v44 = vmul.f32 %v1650_v28, %v1650_v28  ;;  %v938_v1 = vpack.c.bf16 %v882_v63, %v881_v62  ;;  %v913_v2 = vld [vmem:[%s1587_s2 + $0x170] sm:$0xff]  ;;  %v928_v8 = vld [vmem:[%s1587_s2 + $0x1e8] sm:$0xff]  ;;  %v878_v25 = vld [vmem:[%s1587_s2 + $0x58] sm:$0xff] }
 0x187   : > { %v1658_v41 = vmul.f32 %v1296_v49, %v687_v29  ;;  %v1660_v42 = vmul.f32 %v1297_v52, %v688_v30  ;;  %v1662_v43 = vmul.f32 %v1298_v50, %v689_v33  ;;  %v702_v49 = vmul.f32 %v1654_v36, %v1654_v36  ;;  %v909_v29 = vld [vmem:[%s1587_s2 + $0x150] sm:$0xff]  ;;  %v910_v30 = vld [vmem:[%s1587_s2 + $0x158] sm:$0xff] }
 0x188   : > { %v707_v45 = vadd.f32 %v700_v38, %v699_v35  ;;  %v1666_v46 = vmul.f32 %v1299_v58, %v690_v40  ;;  %v898_v58 = vld [vmem:[%s1587_s2 + $0xf8] sm:$0xff]  ;;  %v954_v5 = vpack.c.bf16 %v914_v3, %v913_v2  ;;  %v961_v10 = vpack.c.bf16 %v928_v8, %v927_v7  ;;  %v891_v35 = vld [vmem:[%s1587_s2 + $0xc0] sm:$0xff]  ;;  %v892_v38 = vld [vmem:[%s1587_s2 + $0xc8] sm:$0xff] }
 0x189   : > { %v703_v47 = vmul.f32 %v1658_v41, %v1658_v41  ;;  %v704_v48 = vmul.f32 %v1660_v42, %v1660_v42  ;;  %v705_v51 = vmul.f32 %v1662_v43, %v1662_v43  ;;  %v946_v60 = vpack.c.bf16 %v898_v58, %v897_v57  ;;  %v923_v40 = vld [vmem:[%s1587_s2 + $0x1c0] sm:$0xff]  ;;  %v905_v62 = vld [vmem:[%s1587_s2 + $0x130] sm:$0xff]  ;;  %v888_v2 = vld [vmem:[%s1587_s2 + $0xa8] sm:$0xff] }
 0x18a   : > { %v708_v50 = vadd.f32 %v707_v45, %v701_v44  ;;  %v706_v54 = vmul.f32 %v1666_v46, %v1666_v46  ;;  %1337 = vmatpush3.bf16.msra.mxu1 %v954_v5  ;;  %v936_v33 = vpack.c.bf16 %v878_v25, %v877_v23  ;;  %v952_v44 = vpack.c.bf16 %v910_v30, %v909_v29  ;;  %v919_v3 = vld [vmem:[%s1587_s2 + $0x1a0] sm:$0xff]  ;;  %v917_v15 = vld [vmem:[%s1587_s2 + $0x190] sm:$0xff]  ;;  %v902_v25 = vld [vmem:[%s1587_s2 + $0x118] sm:$0xff] }
 0x18b   : > { %v712_v52 = vadd.f32 %v704_v48, %v703_v47  ;;  %1314 = vmatprep.subr.bf16.mxu0 %v946_v60  ;;  %1338 = vmatprep.subr.bf16.mxu1 %v961_v10  ;;  %v943_v45 = vpack.c.bf16 %v892_v38, %v891_v35  ;;  %v924_v47 = vld [vmem:[%s1587_s2 + $0x1c8] sm:$0xff]  ;;  %v875_v48 = vld [vmem:[%s1587_s2 + $0x40] sm:$0xff]  ;;  %v873_v60 = vld [vmem:[%s1587_s2 + $0x30] sm:$0xff]  ;;  %v950_v6 = vpack.c.bf16 %v906_v0, %v905_v62 }
 0x18c   : > { %v709_v53 = vadd.f32 %v708_v50, %v702_v49  ;;  %1315 = vmatpush3.bf16.msra.mxu0 %v938_v1  ;;  %v876_v49 = vld [vmem:[%s1587_s2 + $0x48] sm:$0xff]  ;;  %v959_v50 = vpack.c.bf16 %v924_v47, %v923_v40  ;;  %v887_v1 = vld [vmem:[%s1587_s2 + $0xa0] sm:$0xff]  ;;  %v934_v5 = vpack.c.bf16 %v874_v61, %v873_v60  ;;  %v957_v11 = vpack.c.bf16 %v920_v4, %v919_v3  ;;  %v869_v21 = vld [vmem:[%s1587_s2 + $0x10] sm:$0xff] }
 0x18d   : > { %v713_v55 = vadd.f32 %v712_v52, %v705_v51  ;;  %1316 = vmatprep.subr.bf16.mxu0 %v945_v9  ;;  %v907_v51 = vld [vmem:[%s1587_s2 + $0x140] sm:$0xff]  ;;  %v908_v52 = vld [vmem:[%s1587_s2 + $0x148] sm:$0xff]  ;;  %v935_v57 = vpack.c.bf16 %v876_v49, %v875_v48  ;;  %v941_v7 = vpack.c.bf16 %v888_v2, %v887_v1  ;;  %v901_v23 = vld [vmem:[%s1587_s2 + $0x110] sm:$0xff]  ;;  %v932_v38 = vpack.c.bf16 %v870_v22, %v869_v21 }
 0x18e   : > { %710 = vadd.xlane.f32.xlu1 %v709_v53  ;;  %1339 = vmatpush3.bf16.msra.mxu1 %v953_v19  ;;  %v889_v53 = vld [vmem:[%s1587_s2 + $0xb0] sm:$0xff]  ;;  %v951_v58 = vpack.c.bf16 %v908_v52, %v907_v51  ;;  %v871_v8 = vld [vmem:[%s1587_s2 + $0x20] sm:$0xff]  ;;  %v872_v9 = vld [vmem:[%s1587_s2 + $0x28] sm:$0xff]  ;;  %v948_v40 = vpack.c.bf16 %v902_v25, %v901_v23 }
 0x18f   : > { %v714_v56 = vadd.f32 %v713_v55, %v706_v54  ;;  %1340 = vmatprep.subr.bf16.mxu1 %v960_v24  ;;  %v890_v54 = vld [vmem:[%s1587_s2 + $0xb8] sm:$0xff]  ;;  %v921_v55 = vld [vmem:[%s1587_s2 + $0x1b0] sm:$0xff]  ;;  %v903_v10 = vld [vmem:[%s1587_s2 + $0x120] sm:$0xff]  ;;  %v933_v18 = vpack.c.bf16 %v872_v9, %v871_v8  ;;  %v956_v24 = vpack.c.bf16 %v918_v16, %v917_v15 }
 0x190   : > { %1317 = vmatpush3.bf16.msra.mxu0 %v937_v14  ;;  %v942_v59 = vpack.c.bf16 %v890_v54, %v889_v53  ;;  %v886_v14 = vld [vmem:[%s1587_s2 + $0x98] sm:$0xff]  ;;  %v949_v19 = vpack.c.bf16 %v904_v12, %v903_v10  ;;  %v883_v29 = vld [vmem:[%s1587_s2 + $0x80] sm:$0xff]  ;;  %v884_v30 = vld [vmem:[%s1587_s2 + $0x88] sm:$0xff]  ;;  %v1052_v53 = vstv %s1462_s13 }
 0x191   : > { %1318 = vmatprep.subr.bf16.mxu0 %v944_v20  ;;  %v940_v20 = vpack.c.bf16 %v886_v14, %v885_v13  ;;  %v916_v35 = vld [vmem:[%s1587_s2 + $0x188] sm:$0xff]  ;;  %v899_v49 = vld [vmem:[%s1587_s2 + $0x100] sm:$0xff]  ;;  %vm1053_vm7 = vcmp.eq.s32.totalorder %v1615_v31, %v1052_v53 }
 0x192   : > { %715 = vadd.xlane.f32.xlu1 %v714_v56  ;;  %v922_v56 = vld [vmem:[%s1587_s2 + $0x1b8] sm:$0xff]  ;;  %1341 = vmatpush3.bf16.msra.mxu1 %v952_v44  ;;  %v939_v44 = vpack.c.bf16 %v884_v30, %v883_v29  ;;  %v868_v47 = vld [vmem:[%s1587_s2 + $0x8] sm:$0xff]  ;;  %v1054_v54 = vld [vmem:[%s1866_s1] sm:$0xff] }
 0x193   : > { %1342 = vmatprep.subr.bf16.mxu1 %v959_v50  ;;  %v958_v63 = vpack.c.bf16 %v922_v56, %v921_v55  ;;  %v900_v50 = vld [vmem:[%s1587_s2 + $0x108] sm:$0xff]  ;;  %v1058_v56 = vsel %vm1053_vm7, %v1054_v54, 0.0  ;;  %v731_v31 = vld [vmem:[%s479_s29] sm:$0xf] }
 0x194   : > { %1319 = vmatpush3.bf16.msra.mxu0 %v936_v33  ;;  %v915_v33 = vld [vmem:[%s1587_s2 + $0x180] sm:$0xff]  ;;  %v947_v52 = vpack.c.bf16 %v900_v50, %v899_v49  ;;  %v1055_v55 = vld [vmem:[%s1866_s1 + $0x8] sm:$0xff]  ;;  %v736_v3 = vrot.slane %v731_v31, %v1619_v32  ;;  %v740_v4 = vrot.slane %v731_v31, %v1630_v37  ;;  %v744_v12 = vrot.slane %v731_v31, %v1626_v34 }
 0x195   : > { %1320 = vmatprep.subr.bf16.mxu0 %v943_v45  ;;  %v867_v45 = vld [vmem:[%s1587_s2] sm:$0xff]  ;;  %v955_v48 = vpack.c.bf16 %v916_v35, %v915_v33 }
 0x196   : > { %1343 = vmatpush3.bf16.msra.mxu1 %v951_v58  ;;  %v931_v51 = vpack.c.bf16 %v868_v47, %v867_v45  ;;  %v1061_v58 = vsel %vm1060_vm6, %v1058_v56, 0.0  ;;  %v761_v2 = vld [vmem:[%s483_s12] sm:$0xf] }
 0x197   : > { %1344 = vmatprep.subr.bf16.mxu1 %v958_v63  ;;  %1062 = vadd.xlane.f32.xlu0 %v1061_v58 }
 0x198   : > { %1321 = vmatpush3.bf16.msra.mxu0 %v935_v57  ;;  %v1059_v57 = vsel %vm1053_vm7, %v1055_v55, 0.0 }
 0x199   : > { %1322 = vmatprep.subr.bf16.mxu0 %v942_v59  ;;  %v1064_v59 = vsel %vm1060_vm6, %v1059_v57, 0.0 }
 0x19a   : > { %1345 = vmatpush3.bf16.msra.mxu1 %v950_v6  ;;  %1065 = vadd.xlane.f32.xlu1 %v1064_v59 }
 0x19b   : > { %1346 = vmatprep.subr.bf16.mxu1 %v957_v11  ;;  %v766_v11 = vrot.slane %v761_v2, %v1619_v32 }
 0x19c   : > { %1323 = vmatpush3.bf16.msra.mxu0 %v934_v5  ;;  %v748_v5 = vrot.slane %v731_v31, %v1633_v39 }
 0x19d   : > { %1324 = vmatprep.subr.bf16.mxu0 %v941_v7  ;;  %v778_v7 = vrot.slane %v761_v2, %v1633_v39 }
 0x19e   : > { %1347 = vmatpush3.bf16.msra.mxu1 %v949_v19 }
 0x19f   : > { %1348 = vmatprep.subr.bf16.mxu1 %v956_v24 }
 0x1a0   : > { %1325 = vmatpush3.bf16.msra.mxu0 %v933_v18 }
 0x1a1   : > { %1326 = vmatprep.subr.bf16.mxu0 %v940_v20 }
 0x1a2   : > { %1349 = vmatpush3.bf16.msra.mxu1 %v948_v40 }
 0x1a3   : > { %1350 = vmatprep.subr.bf16.mxu1 %v955_v48 }
 0x1a4   : > { %1327 = vmatpush3.bf16.msra.mxu0 %v932_v38 }
 0x1a5   : > { %1328 = vmatprep.subr.bf16.mxu0 %v939_v44 }
 0x1a6   : > { %1351 = vmatpush3.bf16.msra.mxu1 %v947_v52 }
 0x1a8   : > { %1329 = vmatpush3.bf16.msra.mxu0 %v931_v51 }
 0x217   : > { %v711_v60 = vpop.xlane.xlu1 %710 }
 0x218   : > { %v717_v61 = vmul.f32 %v1642_v17, %v711_v60 }
 0x21a   : > { %v719_v62 = vadd.f32 1e-05, %v717_v61 }
 0x21b   : > { %v716_v63 = vpop.xlane.xlu1 %715 }
 0x21c   : > { %1396 = vrsqrt.f32 %v719_v62  ;;  %v718_v0 = vmul.f32 %v1642_v17, %v716_v63  ;;  %v770_v17 = vrot.slane %v761_v2, %v1630_v37  ;;  %v774_v37 = vrot.slane %v761_v2, %v1626_v34 }
 0x21e   : > { %v720_v1 = vadd.f32 1e-05, %v718_v0 }
 0x220   : > { %1398 = vrsqrt.f32 %v720_v1 }
 0x229   : > { %v1397_v6 = vpop.eup %1396 }
 0x22a   : > { %v724_v8 = vmul.f32 %v1397_v6, %v1648_v27  ;;  %v726_v9 = vmul.f32 %v1397_v6, %v1654_v36  ;;  %v723_v10 = vmul.f32 %v1397_v6, %v1646_v26  ;;  %v725_v13 = vmul.f32 %v1397_v6, %v1650_v28 }
 0x22c   : > { %v754_v14 = vmul.f32 %v740_v4, %v724_v8  ;;  %v756_v15 = vmul.f32 %v748_v5, %v726_v9  ;;  %v753_v16 = vmul.f32 %v736_v3, %v723_v10  ;;  %v755_v20 = vmul.f32 %v744_v12, %v725_v13 }
 0x22d   : > { %v1399_v18 = vpop.eup %1398 }
 0x22e   : > { %v728_v39 = vmul.f32 %v1399_v18, %v1660_v42  ;;  %v1775_v19 = vadd.f32 %v770_v17, %v754_v14  ;;  %v730_v27 = vmul.f32 %v1399_v18, %v1666_v46  ;;  %v1778_v36 = vadd.f32 %v778_v7, %v756_v15 }
 0x22f   : > { %v727_v32 = vmul.f32 %v1399_v18, %v1658_v41  ;;  %v1781_v26 = vadd.f32 %v766_v11, %v753_v16  ;;  %v729_v28 = vmul.f32 %v1399_v18, %v1662_v43  ;;  %v1791_v43 = vadd.f32 %v774_v37, %v755_v20 }
 0x230   : > { %v758_v21 = vmul.f32 %v740_v4, %v728_v39  ;;  %v800_v22 = vmul.f32 0.044715, %v1775_v19  ;;  %v760_v23 = vmul.f32 %v748_v5, %v730_v27  ;;  %v802_v34 = vmul.f32 0.044715, %v1778_v36 }
 0x231   : > { %v757_v42 = vmul.f32 %v736_v3, %v727_v32  ;;  %v799_v29 = vmul.f32 0.044715, %v1781_v26  ;;  %v759_v33 = vmul.f32 %v744_v12, %v729_v28  ;;  %v801_v54 = vmul.f32 0.044715, %v1791_v43 }
 0x232   : > { %v788_v24 = vadd.f32 %v770_v17, %v758_v21  ;;  %v808_v25 = vmul.f32 %v800_v22, %v1775_v19  ;;  %v790_v46 = vadd.f32 %v778_v7, %v760_v23  ;;  %v810_v41 = vmul.f32 %v802_v34, %v1778_v36 }
 0x233   : > { %v1789_v30 = vadd.f32 %v766_v11, %v757_v42  ;;  %v807_v49 = vmul.f32 %v799_v29, %v1781_v26  ;;  %v789_v50 = vadd.f32 %v774_v37, %v759_v33  ;;  %v809_v0 = vmul.f32 %v801_v54, %v1791_v43 }
 0x234   : > { %v804_v35 = vmul.f32 0.044715, %v788_v24  ;;  %v816_v38 = vmul.f32 %v808_v25, %v1775_v19  ;;  %v806_v40 = vmul.f32 0.044715, %v790_v46  ;;  %v818_v44 = vmul.f32 %v810_v41, %v1778_v36 }
 0x235   : > { %v803_v45 = vmul.f32 0.044715, %v1789_v30  ;;  %v815_v57 = vmul.f32 %v807_v49, %v1781_v26  ;;  %v805_v61 = vmul.f32 0.044715, %v789_v50  ;;  %v817_v5 = vmul.f32 %v809_v0, %v1791_v43 }
 0x236   : > { %v812_v47 = vmul.f32 %v804_v35, %v788_v24  ;;  %v824_v48 = vadd.f32 %v816_v38, %v1775_v19  ;;  %v814_v51 = vmul.f32 %v806_v40, %v790_v46  ;;  %v826_v52 = vadd.f32 %v818_v44, %v1778_v36 }
 0x237   : > { %v811_v53 = vmul.f32 %v803_v45, %v1789_v30  ;;  %v823_v63 = vadd.f32 %v815_v57, %v1781_v26  ;;  %v813_v2 = vmul.f32 %v805_v61, %v789_v50  ;;  %v825_v8 = vadd.f32 %v817_v5, %v1791_v43 }
 0x238   : > { %v820_v55 = vmul.f32 %v812_v47, %v788_v24  ;;  %v832_v56 = vmul.f32 0.7978846, %v824_v48  ;;  %v822_v58 = vmul.f32 %v814_v51, %v790_v46  ;;  %v834_v59 = vmul.f32 0.7978846, %v826_v52 }
 0x239   : > { %v819_v60 = vmul.f32 %v811_v53, %v1789_v30  ;;  %v831_v4 = vmul.f32 0.7978846, %v823_v63  ;;  %v821_v7 = vmul.f32 %v813_v2, %v789_v50  ;;  %v833_v10 = vmul.f32 0.7978846, %v825_v8 }
 0x23a   : > { %v828_v62 = vadd.f32 %v820_v55, %v788_v24  ;;  %1400 = vtanh.f32 %v832_v56  ;;  %v830_v1 = vadd.f32 %v822_v58, %v790_v46  ;;  %v792_v37 = vmul.f32 0.5, %v1775_v19 }
 0x23b   : > { %1402 = vtanh.f32 %v834_v59  ;;  %v827_v31 = vadd.f32 %v819_v60, %v1789_v30  ;;  %v829_v9 = vadd.f32 %v821_v7, %v789_v50  ;;  %v796_v39 = vmul.f32 0.5, %v788_v24  ;;  %v1063_v59 = vpop.xlane.xlu0 %1062 }
 0x23c   : > { %v836_v3 = vmul.f32 0.7978846, %v828_v62  ;;  %v838_v6 = vmul.f32 0.7978846, %v830_v1  ;;  %v794_v28 = vmul.f32 0.5, %v1778_v36  ;;  %v798_v20 = vmul.f32 0.5, %v790_v46 }
 0x23d   : > { %v835_v17 = vmul.f32 0.7978846, %v827_v31  ;;  %v837_v11 = vmul.f32 0.7978846, %v829_v9  ;;  %v791_v42 = vmul.f32 0.5, %v1781_v26  ;;  %v795_v35 = vmul.f32 0.5, %v1789_v30 }
 0x23e   : > { %1404 = vtanh.f32 %v836_v3  ;;  %v793_v40 = vmul.f32 0.5, %v1791_v43  ;;  %v797_v44 = vmul.f32 0.5, %v789_v50  ;;  %v1302_v43 = vld [vmem:[%s491_s22] ss:$0 sm:$0xff] }
 0x23f   : > { %1406 = vtanh.f32 %v838_v6  ;;  %v1067_v1 = vld [vmem:[#allocation2] sm:$0xff] }
 0x240   : > { %1408 = vtanh.f32 %v831_v4  ;;  %v1066_v4 = vpop.xlane.xlu1 %1065 }
 0x241   : > { %1410 = vtanh.f32 %v835_v17  ;;  %v1068_v17 = vld [vmem:[#allocation2 + $0x8] sm:$0xff] }
 0x242   : > { %1412 = vtanh.f32 %v833_v10 }
 0x243   : > { %1414 = vtanh.f32 %v837_v11 }
 0x247   : > { %v1401_v12 = vpop.eup %1400 }
 0x248   : > { %v1403_v13 = vpop.eup %1402  ;;  %v848_v14 = vadd.f32 1.0, %v1401_v12 }
 0x249   : > { %v850_v16 = vadd.f32 1.0, %v1403_v13 }
 0x24a   : > { %v856_v23 = vmul.f32 %v848_v14, %v792_v37 }
 0x24b   : > { %v1405_v15 = vpop.eup %1404  ;;  %v858_v41 = vmul.f32 %v850_v16, %v794_v28 }
 0x24c   : > { %v1407_v18 = vpop.eup %1406  ;;  %v852_v27 = vadd.f32 1.0, %v1405_v15 }
 0x24d   : > { %v1409_v32 = vpop.eup %1408  ;;  %v854_v21 = vadd.f32 1.0, %v1407_v18 }
 0x24e   : > { %v1411_v22 = vpop.eup %1410  ;;  %v860_v34 = vmul.f32 %v852_v27, %v796_v39  ;;  %v847_v25 = vadd.f32 1.0, %v1409_v32 }
 0x24f   : > { %v1413_v29 = vpop.eup %1412  ;;  %v862_v33 = vmul.f32 %v854_v21, %v798_v20  ;;  %v851_v38 = vadd.f32 1.0, %v1411_v22 }
 0x250   : > { %v1415_v19 = vpop.eup %1414  ;;  %v864_v24 = vpack.c.bf16 %v860_v34, %v856_v23  ;;  %v849_v36 = vadd.f32 1.0, %v1413_v29  ;;  %v855_v45 = vmul.f32 %v847_v25, %v791_v42 }
 0x251   : > { %v866_v46 = vpack.c.bf16 %v862_v33, %v858_v41  ;;  %v859_v47 = vmul.f32 %v851_v38, %v795_v35  ;;  %v853_v48 = vadd.f32 1.0, %v1415_v19 }
 0x252   : > { %1002 = vmatprep.mubr.bf16.mxu0 %v864_v24  ;;  %v857_v49 = vmul.f32 %v849_v36, %v793_v40 }
 0x253   : > { %1043 = vmatprep.mubr.bf16.mxu1 %v866_v46  ;;  %v863_v26 = vpack.c.bf16 %v859_v47, %v855_v45  ;;  %v861_v51 = vmul.f32 %v853_v48, %v797_v44 }
 0x255   : > { %1003 = vmatmul.mubr.bf16.vlgmr.msra.gmra.mxu0 %v863_v26  ;;  %v865_v52 = vpack.c.bf16 %v861_v51, %v857_v49 }
 0x257   : > { %1044 = vmatmul.mubr.bf16.vlgmr.msra.gmra.mxu1 %v865_v52 }
 0x315   : > { %v1330_v30 = vpop.f32.mrf.mxu0 }
 0x317   : > { %v1352_v53 = vpop.f32.mrf.mxu1  ;;  %v1331_v50 = vpop.f32.mrf.mxu0 }
 0x318   : > { %v1332_v54 = vadd.f32 %v1331_v50, %v1330_v30 }
 0x319   : > { %v1353_v55 = vpop.f32.mrf.mxu1  ;;  %v1333_v56 = vpop.f32.mrf.mxu0 }
 0x31a   : > { %v1005_v57 = vadd.f32 %v1332_v54, %v1302_v43  ;;  %v1354_v58 = vadd.f32 %v1353_v55, %v1352_v53 }
 0x31b   : > { %v1355_v60 = vpop.f32.mrf.mxu1  ;;  %v1334_v61 = vpop.f32.mrf.mxu0 }
 0x31c   : > { %v1335_v62 = vadd.f32 %v1334_v61, %v1333_v56  ;;  %v1046_v63 = vadd.f32 %v1354_v58, %v1005_v57 }
 0x31d   : > { %v1356_v0 = vpop.f32.mrf.mxu1 }
 0x31e   : > { %v1008_v31 = vadd.f32 %v1335_v62, %v1302_v43  ;;  %v1357_v2 = vadd.f32 %v1356_v0, %v1355_v60  ;;  %v1069_v3 = vmul.f32 %v1063_v59, %v1046_v63 }
 0x320   : > { %v1071_v5 = vadd.f32 %v1069_v3, %v1067_v1  ;;  %v1049_v6 = vadd.f32 %v1357_v2, %v1008_v31 }
 0x322   : > { %1073 = vst.msk [vmem:[#allocation2] sm:$0xff] %vm571_vm1, %v1071_v5  ;;  %v1070_v7 = vmul.f32 %v1066_v4, %v1049_v6  ;;  %1078 = sbr.rel (%p1303_p6) target bundleno = 1125 (0x465), region = 68 }
 0x324   : > { %v1072_v8 = vadd.f32 %v1070_v7, %v1068_v17 }
 0x326   : > { %1074 = vst.msk [vmem:[#allocation2 + $0x8] sm:$0xff] %vm571_vm1, %v1072_v8 }
 0x327   : > { %v1079_v9 = vld [vmem:[%s1865_s0] sm:$0xff]  ;;  %v1080_v11 = vld [vmem:[%s1865_s0 + $0x8] sm:$0xff] }
 0x328   : > { %v1304_v38 = vld [vmem:[%s1873_s8] ss:$0 sm:$0xff] }
 0x329   : > { %v1081_v10 = vld [vmem:[#allocation2] sm:$0xff] }
 0x32a   : > { %v1083_v12 = vadd.f32 %v1081_v10, %v1079_v9  ;;  %v1305_v24 = vld [vmem:[%s1874_s9] ss:$0 sm:$0xff] }
 0x32c   : > { %v1087_v15 = vsel %vm571_vm1, %v1083_v12, 0.0 }
 0x32d   : > { %v1082_v13 = vld [vmem:[#allocation2 + $0x8] sm:$0xff]  ;;  %1088 = vadd.xlane.f32.xlu0 %v1087_v15 }
 0x32e   : > { %v1084_v14 = vadd.f32 %v1082_v13, %v1080_v11 }
 0x330   : > { %v1090_v16 = vsel %vm571_vm1, %v1084_v14, 0.0 }
 0x331   : > { %1091 = vadd.xlane.f32.xlu0 %v1090_v16 }
 0x3b6   : > { %v1089_v18 = vpop.xlane.xlu0 %1088 }
 0x3b7   : > { %v1094_v37 = vmul.f32 0.03125, %v1089_v18 }
 0x3b9   : > { %v1096_v39 = vsub.f32 %v1083_v12, %v1094_v37 }
 0x3ba   : > { %v1092_v27 = vpop.xlane.xlu0 %1091 }
 0x3bb   : > { %v1095_v32 = vmul.f32 0.03125, %v1092_v27  ;;  %v1098_v28 = vmul.f32 %v1096_v39, %v1096_v39 }
 0x3bd   : > { %v1097_v20 = vsub.f32 %v1084_v14, %v1095_v32  ;;  %v1100_v21 = vsel %vm571_vm1, %v1098_v28, 0.0 }
 0x3be   : > { %1101 = vadd.xlane.f32.xlu1 %v1100_v21 }
 0x3bf   : > { %v1099_v22 = vmul.f32 %v1097_v20, %v1097_v20 }
 0x3c1   : > { %v1103_v23 = vsel %vm571_vm1, %v1099_v22, 0.0 }
 0x3c2   : > { %1104 = vadd.xlane.f32.xlu1 %v1103_v23 }
 0x447   : > { %v1102_v34 = vpop.xlane.xlu1 %1101 }
 0x448   : > { %v1106_v42 = vmul.f32 0.03125, %v1102_v34 }
 0x44a   : > { %v1108_v25 = vadd.f32 1e-05, %v1106_v42 }
 0x44b   : > { %v1105_v29 = vpop.xlane.xlu1 %1104 }
 0x44c   : > { %1416 = vrsqrt.f32 %v1108_v25  ;;  %v1107_v41 = vmul.f32 0.03125, %v1105_v29 }
 0x44e   : > { %v1109_v33 = vadd.f32 1e-05, %v1107_v41 }
 0x450   : > { %1418 = vrsqrt.f32 %v1109_v33 }
 0x459   : > { %v1417_v35 = vpop.eup %1416 }
 0x45a   : > { %v1112_v19 = vmul.f32 %v1417_v35, %v1096_v39 }
 0x45c   : > { %v1120_v40 = vmul.f32 %v1304_v38, %v1112_v19 }
 0x45d   : > { %v1419_v44 = vpop.eup %1418 }
 0x45e   : > { %v1128_v36 = vadd.f32 %v1305_v24, %v1120_v40  ;;  %v1113_v46 = vmul.f32 %v1419_v44, %v1097_v20 }
 0x460   : > { %1130 = vst.msk [vmem:[#allocation3] sm:$0xff] %vm571_vm1, %v1128_v36  ;;  %v1121_v45 = vmul.f32 %v1304_v38, %v1113_v46 }
 0x462   : > { %v1129_v47 = vadd.f32 %v1305_v24, %v1121_v45 }
 0x464   : > { %1131 = vst.msk [vmem:[#allocation3 + $0x8] sm:$0xff] %vm571_vm1, %v1129_v47 }
 0x465 PF: > { %s1881_s28 = sadd.s32 4294967295, %s1470_s15   ;;  %s1475_s30 = smov [#allocation3]  }
 0x466   : > { %p1841_p7 = scmp.eq.s32.totalorder %s1881_s28, 3  ;;  %s1141_s11 = sshll.u32 %s1475_s30, 4  ;;  %s1142_s11 = int_to_ptr.vmem [resolvable:$true] %s1141_s11 }
 0x467   : > { %s1420_s21 = scalar_lea.vmem %s1142_s11, 256  ;;  %p1427_p11 = scmp.lt.s32.totalorder %s1142_s11, %s1142_s11 }
 0x468   : > { %p1421_p8 = scmp.ne.s32.totalorder %s1142_s11, %s1420_s21  ;;  %p1428_p12 = scmp.lt.s32.totalorder %s1420_s21, %s1420_s21 }
 0x46a   : > { %p1422_p9 = pnand %p1421_p8, %p1841_p7  ;;  %p1429_p13 = por %p1428_p12, %p1427_p11 }
 0x46c   : > { %p1423_p10 = pneg %p1422_p9 }
 0x46e   : > { %p1430_p0 = pnand %p1429_p13, %p1423_p10 }
 0x470   : > { %1433 = shalt.err (!%p1430_p0)
}
 0x471   : > { %s1476_s19 = smov 128   ;;  %s1477_s2 = smov 8  }
 0x472   : > { %1359 = dma.vmem_to_hbm [thread:$0]  (%p1841_p7), %s1142_s11, 256, %s1875_s10, [#allocation4], %s1476_s19, %s1476_s19, %s1477_s2  }
 0x473   : > { %1457 = dma.done.wait (%p1841_p7), [#allocation4], 256  }
 0x474   : > { %1459 = vsyncadd (%p1841_p7), [#allocation4], 4294967040 }
 0x475 PF: > { %s21_s15 = sadd.s32 1, %s1470_s15   ;;  %s1883_s13 = sld [smem:[#allocation6_spill]] }
 0x476   : > { %p18_p1 = scmp.ge.s32.totalorder %s21_s15, 6   ;;  %s1884_s14 = sld [smem:[#allocation7_spill]] }
 0x478   :  { %20 = sbr.rel (!%p18_p1) target bundleno = 4 (0x4), region = 117 }
 0x47d   :  { %1157 = vsyncpa [#allocation4], 1 }
 0x47e   :  { %1159 = vsyncpa [#allocation4 + $0x1], 1 }

</bundles_post_ra>
